<compile_context>
chip_gen: v7x
topology: tpu7x:2x2x1
jax: 0.10.0
libtpu: 0.0.40
codegen_flags: <defaults>
</compile_context>

<pallas_src>
import functools
import math

import jax
import jax.numpy as jnp
from jax.experimental import pallas as pl
from jax.experimental.pallas import tpu as pltpu


_NEG_INF = -1e30
_VMEM_LIMIT = 64 * 1024 * 1024
_ROW_TILES = (512, 256, 128, 64, 32, 16, 8)
_COL_TILES = (512, 256, 128)
_HID_TILES = (256, 128)


def _pick_tile(n, candidates):
    for c in candidates:
        if c <= n and n % c == 0:
            return c
    return n  # fall back to the full (untiled) dimension


# ----------------------------- Pallas kernels -----------------------------


def _norm_matmul_kernel(x_ref, g_ref, w_ref, o_ref, *, eps):
    # Fused RMSNorm (over full feature dim) + matmul.
    # x: (tm, D), g: (1, D), w: (D, tn), o: (tm, tn)
    x = x_ref[...].astype(jnp.float32)
    var = jnp.mean(x * x, axis=-1, keepdims=True)
    xn = x * jax.lax.rsqrt(var + eps) * g_ref[...].astype(jnp.float32)
    o_ref[...] = jnp.dot(
        xn.astype(w_ref.dtype), w_ref[...], preferred_element_type=jnp.float32
    ).astype(o_ref.dtype)


def _matmul_kernel(x_ref, w_ref, o_ref):
    # x: (tm, K), w: (K, tn)
    o_ref[...] = jnp.dot(
        x_ref[...], w_ref[...], preferred_element_type=jnp.float32
    ).astype(o_ref.dtype)


def _ffn_kernel(x_ref, g_ref, w1_ref, w3_ref, w2_ref, o_ref, acc_ref, *, eps):
    # Fused RMSNorm + SwiGLU FFN + residual, accumulating over hidden blocks.
    # grid = (rows, hidden_blocks); output block constant across hidden axis.
    j = pl.program_id(1)
    x = x_ref[...].astype(jnp.float32)
    var = jnp.mean(x * x, axis=-1, keepdims=True)
    xn = (x * jax.lax.rsqrt(var + eps) * g_ref[...].astype(jnp.float32)).astype(
        w1_ref.dtype)
    h1 = jnp.dot(xn, w1_ref[...], preferred_element_type=jnp.float32)
    h3 = jnp.dot(xn, w3_ref[...], preferred_element_type=jnp.float32)
    h = (h1 * jax.nn.sigmoid(h1)) * h3

    @pl.when(j == 0)
    def _():
        acc_ref[...] = x          # residual = pre-norm input (f32)

    acc_ref[...] += jnp.dot(
        h.astype(w2_ref.dtype), w2_ref[...], preferred_element_type=jnp.float32)

    @pl.when(j == pl.num_programs(1) - 1)
    def _():
        o_ref[...] = acc_ref[...].astype(o_ref.dtype)


def _rotate_half_rope(x, cos, sin):
    # x: (S, Dh), cos/sin: (S, Dh); NeoX rotate-half convention.
    half = x.shape[-1] // 2
    x1 = x[:, :half]
    x2 = x[:, half:]
    rot = jnp.concatenate([-x2, x1], axis=-1)
    return x * cos + rot * sin


def _self_attn_kernel(q_ref, k_ref, v_ref, cos_ref, sin_ref, wo_ref, res_ref,
                      o_ref, *, n_heads, head_dim, scale):
    # Causal self-attention + RoPE for one batch element, all heads in-kernel,
    # wo projection + residual fused into the epilogue.
    # q/k/v: (1, S, H*Dh), cos/sin: (S, Dh), wo: (H*Dh, D), res: (1, S, D).
    Sq = q_ref.shape[1]
    Sk = k_ref.shape[1]
    q_all = q_ref[0].astype(jnp.float32)
    k_all = k_ref[0].astype(jnp.float32)
    v_all = v_ref[0].astype(jnp.float32)
    cos = cos_ref[...]
    sin = sin_ref[...]

    row = jax.lax.broadcasted_iota(jnp.int32, (Sq, Sk), 0)
    col = jax.lax.broadcasted_iota(jnp.int32, (Sq, Sk), 1)
    causal = jnp.where(row >= col, 0.0, _NEG_INF).astype(jnp.float32)

    outs = []
    for h in range(n_heads):
        lo = h * head_dim
        hi = lo + head_dim
        q = _rotate_half_rope(q_all[:, lo:hi], cos, sin)
        k = _rotate_half_rope(k_all[:, lo:hi], cos, sin)
        v = v_all[:, lo:hi]
        s = jnp.dot(q * scale, k.T, preferred_element_type=jnp.float32) + causal
        m = jnp.max(s, axis=-1, keepdims=True)
        p = jnp.exp(s - m)
        denom = jnp.sum(p, axis=-1, keepdims=True)
        o = jnp.dot(p, v, preferred_element_type=jnp.float32)
        outs.append(o * pl.reciprocal(denom, approx=True))

    attn = jnp.concatenate(outs, axis=-1)
    proj = jnp.dot(attn.astype(wo_ref.dtype), wo_ref[...],
                   preferred_element_type=jnp.float32)
    o_ref[0] = (proj + res_ref[0].astype(jnp.float32)).astype(o_ref.dtype)


def _cross_attn_kernel(q_ref, k_ref, v_ref, bias_ref, wo_ref, res_ref, o_ref,
                       *, n_heads, head_dim, scale):
    # Non-causal cross-attention (no RoPE) for one batch element; key-length
    # mask passed as additive bias (1, 1, P); wo + residual fused in epilogue.
    Sq = q_ref.shape[1]
    Sk = k_ref.shape[1]
    q_all = q_ref[0].astype(jnp.float32)
    k_all = k_ref[0].astype(jnp.float32)
    v_all = v_ref[0].astype(jnp.float32)
    bias = jnp.broadcast_to(bias_ref[0].astype(jnp.float32), (Sq, Sk))

    outs = []
    for h in range(n_heads):
        lo = h * head_dim
        hi = lo + head_dim
        q = q_all[:, lo:hi]
        k = k_all[:, lo:hi]
        v = v_all[:, lo:hi]
        s = jnp.dot(q * scale, k.T, preferred_element_type=jnp.float32) + bias
        m = jnp.max(s, axis=-1, keepdims=True)
        p = jnp.exp(s - m)
        denom = jnp.sum(p, axis=-1, keepdims=True)
        o = jnp.dot(p, v, preferred_element_type=jnp.float32)
        outs.append(o * pl.reciprocal(denom, approx=True))

    attn = jnp.concatenate(outs, axis=-1)
    proj = jnp.dot(attn.astype(wo_ref.dtype), wo_ref[...],
                   preferred_element_type=jnp.float32)
    o_ref[0] = (proj + res_ref[0].astype(jnp.float32)).astype(o_ref.dtype)


# ----------------------------- pallas_call wrappers -----------------------------


def rmsnorm_matmul(x2d, g, w, eps):
    M, K = x2d.shape
    N = w.shape[1]
    tm = _pick_tile(M, _ROW_TILES)
    tn = _pick_tile(N, _COL_TILES)
    return pl.pallas_call(
        functools.partial(_norm_matmul_kernel, eps=eps),
        out_shape=jax.ShapeDtypeStruct((M, N), x2d.dtype),
        grid=(M // tm, N // tn),
        in_specs=[
            pl.BlockSpec((tm, K), lambda i, j: (i, 0)),
            pl.BlockSpec((1, K), lambda i, j: (0, 0)),
            pl.BlockSpec((K, tn), lambda i, j: (0, j)),
        ],
        out_specs=pl.BlockSpec((tm, tn), lambda i, j: (i, j)),
        compiler_params=pltpu.CompilerParams(
            dimension_semantics=("parallel", "parallel"),
            vmem_limit_bytes=_VMEM_LIMIT),
    )(x2d, g.reshape(1, -1), w)


def matmul(x2d, w):
    M, K = x2d.shape
    N = w.shape[1]
    tm = _pick_tile(M, _ROW_TILES)
    tn = _pick_tile(N, _COL_TILES)
    return pl.pallas_call(
        _matmul_kernel,
        out_shape=jax.ShapeDtypeStruct((M, N), x2d.dtype),
        grid=(M // tm, N // tn),
        in_specs=[
            pl.BlockSpec((tm, K), lambda i, j: (i, 0)),
            pl.BlockSpec((K, tn), lambda i, j: (0, j)),
        ],
        out_specs=pl.BlockSpec((tm, tn), lambda i, j: (i, j)),
        compiler_params=pltpu.CompilerParams(
            dimension_semantics=("parallel", "parallel"),
            vmem_limit_bytes=_VMEM_LIMIT),
    )(x2d, w)


def feed_forward(x2d, g, w1, w3, w2, eps):
    M, D = x2d.shape
    H = w1.shape[1]
    tm = _pick_tile(M, _ROW_TILES)
    th = _pick_tile(H, _HID_TILES)
    return pl.pallas_call(
        functools.partial(_ffn_kernel, eps=eps),
        out_shape=jax.ShapeDtypeStruct((M, D), x2d.dtype),
        grid=(M // tm, H // th),
        in_specs=[
            pl.BlockSpec((tm, D), lambda i, j: (i, 0)),
            pl.BlockSpec((1, D), lambda i, j: (0, 0)),
            pl.BlockSpec((D, th), lambda i, j: (0, j)),
            pl.BlockSpec((D, th), lambda i, j: (0, j)),
            pl.BlockSpec((th, D), lambda i, j: (j, 0)),
        ],
        out_specs=pl.BlockSpec((tm, D), lambda i, j: (i, 0)),
        scratch_shapes=[pltpu.VMEM((tm, D), jnp.float32)],
        compiler_params=pltpu.CompilerParams(
            dimension_semantics=("parallel", "arbitrary"),
            vmem_limit_bytes=_VMEM_LIMIT),
    )(x2d, g.reshape(1, -1), w1, w3, w2)


def self_attention_wo(qkv, cos, sin, wo, residual, n_heads, head_dim):
    """Causal RoPE'd self-attention + wo projection + residual.

    qkv: (B, S, 3*D) fused QKV projection output; residual: (B, S, D)."""
    B, S, three_d = qkv.shape
    D = n_heads * head_dim
    assert three_d == 3 * D
    if D % 128 == 0:
        arrays = (qkv, qkv, qkv)          # lane-block into the fused qkv slab
        chunks = (0, 1, 2)
    else:  # fallback for lane-unaligned D: split in JAX
        arrays = (qkv[..., :D], qkv[..., D:2 * D], qkv[..., 2 * D:])
        chunks = (0, 0, 0)
    in_specs = [
        pl.BlockSpec((1, S, D), lambda b, c=c: (b, 0, c)) for c in chunks
    ] + [
        pl.BlockSpec((S, head_dim), lambda b: (0, 0)),
        pl.BlockSpec((S, head_dim), lambda b: (0, 0)),
        pl.BlockSpec((D, D), lambda b: (0, 0)),
        pl.BlockSpec((1, S, D), lambda b: (b, 0, 0)),
    ]
    kernel = functools.partial(
        _self_attn_kernel, n_heads=n_heads, head_dim=head_dim,
        scale=1.0 / math.sqrt(head_dim))
    return pl.pallas_call(
        kernel,
        out_shape=jax.ShapeDtypeStruct((B, S, D), residual.dtype),
        grid=(B,),
        in_specs=in_specs,
        out_specs=pl.BlockSpec((1, S, D), lambda b: (b, 0, 0)),
        compiler_params=pltpu.CompilerParams(
            dimension_semantics=("parallel",),
            vmem_limit_bytes=_VMEM_LIMIT),
    )(*arrays, cos, sin, wo, residual)


def cross_attention_wo(q, kv, bias, wo, residual, n_heads, head_dim):
    """Non-causal cross-attention (no RoPE) + wo projection + residual.

    q: (B,S,D), kv: (B,P,2*D), bias: (B,1,P) additive key mask,
    residual: (B,S,D)."""
    B, Sq, D = q.shape
    P = kv.shape[1]
    if D % 128 == 0:
        k_arr, v_arr = kv, kv
        kc, vc = 0, 1
    else:
        k_arr, v_arr = kv[..., :D], kv[..., D:]
        kc, vc = 0, 0
    in_specs = [
        pl.BlockSpec((1, Sq, D), lambda b: (b, 0, 0)),
        pl.BlockSpec((1, P, D), lambda b, c=kc: (b, 0, c)),
        pl.BlockSpec((1, P, D), lambda b, c=vc: (b, 0, c)),
        pl.BlockSpec((1, 1, P), lambda b: (b, 0, 0)),
        pl.BlockSpec((D, D), lambda b: (0, 0)),
        pl.BlockSpec((1, Sq, D), lambda b: (b, 0, 0)),
    ]
    kernel = functools.partial(
        _cross_attn_kernel, n_heads=n_heads, head_dim=head_dim,
        scale=1.0 / math.sqrt(head_dim))
    return pl.pallas_call(
        kernel,
        out_shape=jax.ShapeDtypeStruct((B, Sq, D), residual.dtype),
        grid=(B,),
        in_specs=in_specs,
        out_specs=pl.BlockSpec((1, Sq, D), lambda b: (b, 0, 0)),
        compiler_params=pltpu.CompilerParams(
            dimension_semantics=("parallel",),
            vmem_limit_bytes=_VMEM_LIMIT),
    )(q, k_arr, v_arr, bias, wo, residual)


# ----------------------------- block forward -----------------------------


def _rope_tables(seq_len, head_dim, base):
    half = head_dim // 2
    inv_freq = 1.0 / (base ** (jnp.arange(half, dtype=jnp.float32) / half))
    pos = jnp.arange(seq_len, dtype=jnp.float32)
    ang = pos[:, None] * inv_freq[None, :]                          # (S, half)
    cos = jnp.concatenate([jnp.cos(ang), jnp.cos(ang)], axis=-1)    # (S, Dh)
    sin = jnp.concatenate([jnp.sin(ang), jnp.sin(ang)], axis=-1)
    return cos, sin


def feature_conditioned_block(x, features, mask_features, params,
                              n_heads, head_dim, norm_eps, rope_freq,
                              compute_dtype=None):
    """Forward pass of FeatureConditionedBlock (cache=None path).

    compute_dtype=jnp.bfloat16 enables the bf16-MXU path (f32 accumulation,
    norm/softmax math stays f32); default None keeps everything f32.
    """
    B, S, D = x.shape
    P = features.shape[1]
    M = B * S
    out_dtype = x.dtype

    if compute_dtype is None:
        cast = lambda a: a
    else:
        cast = lambda a: a.astype(compute_dtype)
        x = x.astype(compute_dtype)
        features = features.astype(compute_dtype)

    wqkv = cast(params["attention"]["wqkv"])
    wo_s = cast(params["attention"]["wo"])
    wq_f = cast(params["attention_feat"]["wq"])
    wkv_f = cast(params["attention_feat"]["wkv"])
    wo_f = cast(params["attention_feat"]["wo"])
    w1 = cast(params["ffn"]["w1"])
    w3 = cast(params["ffn"]["w3"])
    w2 = cast(params["ffn"]["w2"])

    x2d = x.reshape(M, D)

    # --- causal self-attention with RoPE ---
    # norm fused into QKV projection; wo + residual fused into attention kernel.
    qkv = rmsnorm_matmul(x2d, params["attention_norm"], wqkv, norm_eps)
    qkv = qkv.reshape(B, S, 3 * D)
    cos, sin = _rope_tables(S, head_dim, rope_freq)
    h = self_attention_wo(qkv, cos, sin, wo_s, x, n_heads, head_dim)   # (B,S,D)

    # --- cross attention over encoder features (no RoPE, key-length mask) ---
    q_c = rmsnorm_matmul(h.reshape(M, D), params["attention_feat_norm"],
                         wq_f, norm_eps).reshape(B, S, D)
    kv = matmul(features.reshape(B * P, D), wkv_f).reshape(B, P, 2 * D)
    if mask_features is None:
        bias = jnp.zeros((B, 1, P), jnp.float32)
    else:
        bias = jnp.where(mask_features, 0.0, _NEG_INF).astype(jnp.float32)
        bias = bias.reshape(B, 1, P)
    h = cross_attention_wo(q_c, kv, bias, wo_f, h, n_heads, head_dim)  # (B,S,D)

    # --- SwiGLU feed forward (norm + residual fused) ---
    out2d = feed_forward(h.reshape(M, D), params["ffn_norm"], w1, w3, w2,
                         norm_eps)
    return out2d.reshape(B, S, D).astype(out_dtype)


# ----------------------------- parameter init -----------------------------


def _ffn_hidden_dim(dim, multiple_of):
    hidden = 4 * dim
    hidden = int(2 * hidden / 3)
    hidden = hidden + multiple_of - 1
    return multiple_of * (hidden // multiple_of)


def init_params(key, dim, n_heads, head_dim, multiple_of):
    hidden = _ffn_hidden_dim(dim, multiple_of)
    keys = jax.random.split(key, 11)
    scale = 0.02
    hd = n_heads * head_dim

    def w(k, fan_in, fan_out):
        return jax.random.normal(k, (fan_in, fan_out), jnp.float32) * scale

    attn = dict(
        wqkv=jnp.concatenate(
            [w(keys[0], dim, hd), w(keys[1], dim, hd), w(keys[2], dim, hd)], axis=1),
        wo=w(keys[3], hd, dim))
    attn_feat = dict(
        wq=w(keys[4], dim, hd),
        wkv=jnp.concatenate([w(keys[5], dim, hd), w(keys[6], dim, hd)], axis=1),
        wo=w(keys[7], hd, dim))
    ffn = dict(w1=w(keys[8], dim, hidden),
               w3=w(keys[9], dim, hidden),
               w2=w(keys[10], hidden, dim))
    return dict(attention=attn,
                attention_feat=attn_feat,
                ffn=ffn,
                attention_norm=jnp.ones((dim,), jnp.float32),
                attention_feat_norm=jnp.ones((dim,), jnp.float32),
                ffn_norm=jnp.ones((dim,), jnp.float32))


# ----------------------------- main -----------------------------


if __name__ == "__main__":
    # Small hyper parameters consistent with HyperParams (scaled down).
    dim = 128
    n_heads = 4
    head_dim = dim // n_heads
    multiple_of = 256
    norm_eps = 1e-5
    rope_freq = 10000.0

    batch = 2
    seq = 8            # decoder sequence length
    prompt = 16        # encoder max_prompt_len

    key = jax.random.PRNGKey(0)
    k_in, k_feat, k_params = jax.random.split(key, 3)

    x = jax.random.normal(k_in, (batch, seq, dim), jnp.float32)
    features = jax.random.normal(k_feat, (batch, prompt, dim), jnp.float32)
    lengths = jnp.array([prompt, 10], dtype=jnp.int32)
    mask_features = jnp.arange(prompt)[None, :] < lengths[:, None]   # (B,P) True = valid

    params = init_params(k_params, dim, n_heads, head_dim, multiple_of)

    fwd = jax.jit(functools.partial(
        feature_conditioned_block,
        n_heads=n_heads, head_dim=head_dim,
        norm_eps=norm_eps, rope_freq=rope_freq))

    out = fwd(x, features, mask_features, params)
    jax.block_until_ready(out)
    assert out.shape == (batch, seq, dim)
    assert bool(jnp.all(jnp.isfinite(out)))
    print("KERNEL_OK")
</pallas_src>

<mosaic_0001>
module attributes {stable_mosaic.version = 11 : i64} {
  func.func @_norm_matmul_kernel(%arg0: i32, %arg1: i32, %arg2: memref<16x128xf32, #tpu.memory_space<vmem>>, %arg3: memref<1x128xf32, #tpu.memory_space<vmem>>, %arg4: memref<128x128xf32, #tpu.memory_space<vmem>>, %arg5: memref<16x128xf32, #tpu.memory_space<vmem>>) attributes {dimension_semantics = [#tpu.dimension_semantics<parallel>, #tpu.dimension_semantics<parallel>], iteration_bounds = array<i64: 1, 3>, scalar_prefetch = 0 : i64, scratch_operands = 0 : i64, tpu.core_type = #tpu.core_type<tc>, window_params = [{transform_indices = @transform_0, window_bounds = array<i64: 16, 128>}, {pipeline_mode = #tpu.pipeline_mode<synchronous>, transform_indices = @transform_1, window_bounds = array<i64: 1, 128>}, {transform_indices = @transform_2, window_bounds = array<i64: 128, 128>}, {transform_indices = @transform_3, window_bounds = array<i64: 16, 128>}]} {
    %c0 = arith.constant 0 : index
    %c0_0 = arith.constant 0 : index
    %0 = vector.load %arg2[%c0, %c0_0] : memref<16x128xf32, #tpu.memory_space<vmem>>, vector<16x128xf32>
    %1 = arith.mulf %0, %0 : vector<16x128xf32>
    %cst = arith.constant dense<0.000000e+00> : vector<16xf32>
    %2 = vector.multi_reduction <add>, %1, %cst [1] : vector<16x128xf32> to vector<16xf32>
    %3 = vector.shape_cast %2 : vector<16xf32> to vector<16x1xf32>
    %cst_1 = arith.constant 1.280000e+02 : f32
    %4 = vector.broadcast %cst_1 : f32 to vector<16x1xf32>
    %5 = arith.divf %3, %4 : vector<16x1xf32>
    %cst_2 = arith.constant 9.99999974E-6 : f32
    %6 = vector.broadcast %cst_2 : f32 to vector<16x1xf32>
    %7 = arith.addf %5, %6 : vector<16x1xf32>
    %8 = math.rsqrt %7 : vector<16x1xf32>
    %9 = vector.broadcast %8 : vector<16x1xf32> to vector<16x128xf32>
    %10 = arith.mulf %0, %9 : vector<16x128xf32>
    %c0_3 = arith.constant 0 : index
    %c0_4 = arith.constant 0 : index
    %11 = vector.load %arg3[%c0_3, %c0_4] : memref<1x128xf32, #tpu.memory_space<vmem>>, vector<1x128xf32>
    %12 = vector.broadcast %11 : vector<1x128xf32> to vector<16x128xf32>
    %13 = arith.mulf %10, %12 : vector<16x128xf32>
    %c0_5 = arith.constant 0 : index
    %c0_6 = arith.constant 0 : index
    %14 = vector.load %arg4[%c0_5, %c0_6] : memref<128x128xf32, #tpu.memory_space<vmem>>, vector<128x128xf32>
    %cst_7 = arith.constant dense<0.000000e+00> : vector<16x128xf32>
    %15 = tpu.matmul %13, %14, %cst_7 {dimension_numbers = #tpu.dot_dimension_numbers<[1], [0], [0], [1], [0, 0, 1, 1], [], []>} : vector<16x128xf32>, vector<128x128xf32>, vector<16x128xf32> -> vector<16x128xf32>
    %c0_8 = arith.constant 0 : index
    %c0_9 = arith.constant 0 : index
    %16 = vector.load %arg5[%c0_8, %c0_9] : memref<16x128xf32, #tpu.memory_space<vmem>>, vector<16x128xf32>
    tpu.vector_store %arg5[%c0_8, %c0_9], %15 {strides = array<i32>} : memref<16x128xf32, #tpu.memory_space<vmem>>, vector<16x128xf32>,
    return
  }
  func.func @transform_0(%arg0: i32, %arg1: i32) -> (i32, i32) {
    %c0_i32 = arith.constant 0 : i32
    %c0_i32_0 = arith.constant 0 : i32
    return %arg0, %c0_i32 : i32, i32
  }
  func.func @transform_1(%arg0: i32, %arg1: i32) -> (i32, i32) {
    %c0_i32 = arith.constant 0 : i32
    %c0_i32_0 = arith.constant 0 : i32
    %c0_i32_1 = arith.constant 0 : i32
    return %c0_i32, %c0_i32_0 : i32, i32
  }
  func.func @transform_2(%arg0: i32, %arg1: i32) -> (i32, i32) {
    %c0_i32 = arith.constant 0 : i32
    %c0_i32_0 = arith.constant 0 : i32
    return %c0_i32, %arg1 : i32, i32
  }
  func.func @transform_3(%arg0: i32, %arg1: i32) -> (i32, i32) {
    %c0_i32 = arith.constant 0 : i32
    return %arg0, %arg1 : i32, i32
  }
}

module attributes {stable_mosaic.version = 11 : i64} {
  func.func @_self_attn_kernel(%arg0: i32, %arg1: memref<1x8x128xf32, #tpu.memory_space<vmem>>, %arg2: memref<1x8x128xf32, #tpu.memory_space<vmem>>, %arg3: memref<1x8x128xf32, #tpu.memory_space<vmem>>, %arg4: memref<8x32xf32, #tpu.memory_space<vmem>>, %arg5: memref<8x32xf32, #tpu.memory_space<vmem>>, %arg6: memref<128x128xf32, #tpu.memory_space<vmem>>, %arg7: memref<1x8x128xf32, #tpu.memory_space<vmem>>, %arg8: memref<1x8x128xf32, #tpu.memory_space<vmem>>) attributes {dimension_semantics = [#tpu.dimension_semantics<parallel>], iteration_bounds = array<i64: 2>, scalar_prefetch = 0 : i64, scratch_operands = 0 : i64, tpu.core_type = #tpu.core_type<tc>, window_params = [{transform_indices = @transform_0, window_bounds = array<i64: 1, 8, 128>}, {transform_indices = @transform_1, window_bounds = array<i64: 1, 8, 128>}, {transform_indices = @transform_2, window_bounds = array<i64: 1, 8, 128>}, {pipeline_mode = #tpu.pipeline_mode<synchronous>, transform_indices = @transform_3, window_bounds = array<i64: 8, 32>}, {pipeline_mode = #tpu.pipeline_mode<synchronous>, transform_indices = @transform_4, window_bounds = array<i64: 8, 32>}, {pipeline_mode = #tpu.pipeline_mode<synchronous>, transform_indices = @transform_5, window_bounds = array<i64: 128, 128>}, {transform_indices = @transform_6, window_bounds = array<i64: 1, 8, 128>}, {transform_indices = @transform_7, window_bounds = array<i64: 1, 8, 128>}]} {
    %c0 = arith.constant 0 : index
    %c0_0 = arith.constant 0 : index
    %c0_1 = arith.constant 0 : index
    %0 = vector.load %arg1[%c0, %c0_0, %c0_1] : memref<1x8x128xf32, #tpu.memory_space<vmem>>, vector<1x8x128xf32>
    %1 = vector.shape_cast %0 : vector<1x8x128xf32> to vector<8x128xf32>
    %c0_2 = arith.constant 0 : index
    %c0_3 = arith.constant 0 : index
    %c0_4 = arith.constant 0 : index
    %2 = vector.load %arg2[%c0_2, %c0_3, %c0_4] : memref<1x8x128xf32, #tpu.memory_space<vmem>>, vector<1x8x128xf32>
    %3 = vector.shape_cast %2 : vector<1x8x128xf32> to vector<8x128xf32>
    %c0_5 = arith.constant 0 : index
    %c0_6 = arith.constant 0 : index
    %c0_7 = arith.constant 0 : index
    %4 = vector.load %arg3[%c0_5, %c0_6, %c0_7] : memref<1x8x128xf32, #tpu.memory_space<vmem>>, vector<1x8x128xf32>
    %5 = vector.shape_cast %4 : vector<1x8x128xf32> to vector<8x128xf32>
    %c0_8 = arith.constant 0 : index
    %c0_9 = arith.constant 0 : index
    %6 = vector.load %arg4[%c0_8, %c0_9] : memref<8x32xf32, #tpu.memory_space<vmem>>, vector<8x32xf32>
    %c0_10 = arith.constant 0 : index
    %c0_11 = arith.constant 0 : index
    %7 = vector.load %arg5[%c0_10, %c0_11] : memref<8x32xf32, #tpu.memory_space<vmem>>, vector<8x32xf32>
    %8 = tpu.iota {dimensions = array<i32: 0>} : vector<8x8xi32>
    %9 = tpu.iota {dimensions = array<i32: 1>} : vector<8x8xi32>
    %10 = arith.cmpi sge, %8, %9 : vector<8x8xi32>
    %cst = arith.constant 0.000000e+00 : f32
    %cst_12 = arith.constant -1.000000e+30 : f32
    %11 = vector.broadcast %cst : f32 to vector<8x8xf32>
    %12 = vector.broadcast %cst_12 : f32 to vector<8x8xf32>
    %13 = arith.select %10, %11, %12 : vector<8x8xi1>, vector<8x8xf32>
    %14 = vector.extract_strided_slice %1 {offsets = [0, 0], sizes = [8, 32], strides = [1, 1]} : vector<8x128xf32> to vector<8x32xf32>
    %15 = vector.extract_strided_slice %14 {offsets = [0, 0], sizes = [8, 16], strides = [1, 1]} : vector<8x32xf32> to vector<8x16xf32>
    %16 = vector.extract_strided_slice %14 {offsets = [0, 16], sizes = [8, 16], strides = [1, 1]} : vector<8x32xf32> to vector<8x16xf32>
    %cst_13 = arith.constant 0.000000e+00 : f32
    %17 = vector.broadcast %cst_13 : f32 to vector<8x16xf32>
    %18 = arith.subf %17, %16 : vector<8x16xf32>
    %19 = tpu.concatenate %18, %15 in 1 : vector<8x16xf32>, vector<8x16xf32> -> vector<8x32xf32>
    %20 = arith.mulf %14, %6 : vector<8x32xf32>
    %21 = arith.mulf %19, %7 : vector<8x32xf32>
    %22 = arith.addf %20, %21 : vector<8x32xf32>
    %23 = vector.extract_strided_slice %3 {offsets = [0, 0], sizes = [8, 32], strides = [1, 1]} : vector<8x128xf32> to vector<8x32xf32>
    %24 = vector.extract_strided_slice %23 {offsets = [0, 0], sizes = [8, 16], strides = [1, 1]} : vector<8x32xf32> to vector<8x16xf32>
    %25 = vector.extract_strided_slice %23 {offsets = [0, 16], sizes = [8, 16], strides = [1, 1]} : vector<8x32xf32> to vector<8x16xf32>
    %cst_14 = arith.constant 0.000000e+00 : f32
    %26 = vector.broadcast %cst_14 : f32 to vector<8x16xf32>
    %27 = arith.subf %26, %25 : vector<8x16xf32>
    %28 = tpu.concatenate %27, %24 in 1 : vector<8x16xf32>, vector<8x16xf32> -> vector<8x32xf32>
    %29 = arith.mulf %23, %6 : vector<8x32xf32>
    %30 = arith.mulf %28, %7 : vector<8x32xf32>
    %31 = arith.addf %29, %30 : vector<8x32xf32>
    %32 = vector.extract_strided_slice %5 {offsets = [0, 0], sizes = [8, 32], strides = [1, 1]} : vector<8x128xf32> to vector<8x32xf32>
    %cst_15 = arith.constant 0.176776692 : f32
    %33 = vector.broadcast %cst_15 : f32 to vector<8x32xf32>
    %34 = arith.mulf %22, %33 : vector<8x32xf32>
    %35 = tpu.transpose %31, [1, 0] : vector<8x32xf32> -> vector<32x8xf32>
    %cst_16 = arith.constant dense<0.000000e+00> : vector<8x8xf32>
    %36 = tpu.matmul %34, %35, %cst_16 {dimension_numbers = #tpu.dot_dimension_numbers<[1], [0], [0], [1], [0, 0, 1, 1], [], []>} : vector<8x32xf32>, vector<32x8xf32>, vector<8x8xf32> -> vector<8x8xf32>
    %37 = arith.addf %36, %13 : vector<8x8xf32>
    %cst_17 = arith.constant dense<0xFF800000> : vector<8xf32>
    %38 = vector.multi_reduction <maximumf>, %37, %cst_17 [1] : vector<8x8xf32> to vector<8xf32>
    %39 = vector.shape_cast %38 : vector<8xf32> to vector<8x1xf32>
    %40 = vector.broadcast %39 : vector<8x1xf32> to vector<8x8xf32>
    %41 = arith.subf %37, %40 : vector<8x8xf32>
    %42 = math.exp %41 : vector<8x8xf32>
    %cst_18 = arith.constant dense<0.000000e+00> : vector<8xf32>
    %43 = vector.multi_reduction <add>, %42, %cst_18 [1] : vector<8x8xf32> to vector<8xf32>
    %44 = vector.shape_cast %43 : vector<8xf32> to vector<8x1xf32>
    %cst_19 = arith.constant dense<0.000000e+00> : vector<8x32xf32>
    %45 = tpu.matmul %42, %32, %cst_19 {dimension_numbers = #tpu.dot_dimension_numbers<[1], [0], [0], [1], [0, 0, 1, 1], [], []>} : vector<8x8xf32>, vector<8x32xf32>, vector<8x32xf32> -> vector<8x32xf32>
    %46 = tpu.reciprocal %44 {approx = true} : vector<8x1xf32> -> vector<8x1xf32>
    %47 = vector.broadcast %46 : vector<8x1xf32> to vector<8x32xf32>
    %48 = arith.mulf %45, %47 : vector<8x32xf32>
    %49 = vector.extract_strided_slice %1 {offsets = [0, 32], sizes = [8, 32], strides = [1, 1]} : vector<8x128xf32> to vector<8x32xf32>
    %50 = vector.extract_strided_slice %49 {offsets = [0, 0], sizes = [8, 16], strides = [1, 1]} : vector<8x32xf32> to vector<8x16xf32>
    %51 = vector.extract_strided_slice %49 {offsets = [0, 16], sizes = [8, 16], strides = [1, 1]} : vector<8x32xf32> to vector<8x16xf32>
    %cst_20 = arith.constant 0.000000e+00 : f32
    %52 = vector.broadcast %cst_20 : f32 to vector<8x16xf32>
    %53 = arith.subf %52, %51 : vector<8x16xf32>
    %54 = tpu.concatenate %53, %50 in 1 : vector<8x16xf32>, vector<8x16xf32> -> vector<8x32xf32>
    %55 = arith.mulf %49, %6 : vector<8x32xf32>
    %56 = arith.mulf %54, %7 : vector<8x32xf32>
    %57 = arith.addf %55, %56 : vector<8x32xf32>
    %58 = vector.extract_strided_slice %3 {offsets = [0, 32], sizes = [8, 32], strides = [1, 1]} : vector<8x128xf32> to vector<8x32xf32>
    %59 = vector.extract_strided_slice %58 {offsets = [0, 0], sizes = [8, 16], strides = [1, 1]} : vector<8x32xf32> to vector<8x16xf32>
    %60 = vector.extract_strided_slice %58 {offsets = [0, 16], sizes = [8, 16], strides = [1, 1]} : vector<8x32xf32> to vector<8x16xf32>
    %cst_21 = arith.constant 0.000000e+00 : f32
    %61 = vector.broadcast %cst_21 : f32 to vector<8x16xf32>
    %62 = arith.subf %61, %60 : vector<8x16xf32>
    %63 = tpu.concatenate %62, %59 in 1 : vector<8x16xf32>, vector<8x16xf32> -> vector<8x32xf32>
    %64 = arith.mulf %58, %6 : vector<8x32xf32>
    %65 = arith.mulf %63, %7 : vector<8x32xf32>
    %66 = arith.addf %64, %65 : vector<8x32xf32>
    %67 = vector.extract_strided_slice %5 {offsets = [0, 32], sizes = [8, 32], strides = [1, 1]} : vector<8x128xf32> to vector<8x32xf32>
    %cst_22 = arith.constant 0.176776692 : f32
    %68 = vector.broadcast %cst_22 : f32 to vector<8x32xf32>
    %69 = arith.mulf %57, %68 : vector<8x32xf32>
    %70 = tpu.transpose %66, [1, 0] : vector<8x32xf32> -> vector<32x8xf32>
    %cst_23 = arith.constant dense<0.000000e+00> : vector<8x8xf32>
    %71 = tpu.matmul %69, %70, %cst_23 {dimension_numbers = #tpu.dot_dimension_numbers<[1], [0], [0], [1], [0, 0, 1, 1], [], []>} : vector<8x32xf32>, vector<32x8xf32>, vector<8x8xf32> -> vector<8x8xf32>
    %72 = arith.addf %71, %13 : vector<8x8xf32>
    %cst_24 = arith.constant dense<0xFF800000> : vector<8xf32>
    %73 = vector.multi_reduction <maximumf>, %72, %cst_24 [1] : vector<8x8xf32> to vector<8xf32>
    %74 = vector.shape_cast %73 : vector<8xf32> to vector<8x1xf32>
    %75 = vector.broadcast %74 : vector<8x1xf32> to vector<8x8xf32>
    %76 = arith.subf %72, %75 : vector<8x8xf32>
    %77 = math.exp %76 : vector<8x8xf32>
    %cst_25 = arith.constant dense<0.000000e+00> : vector<8xf32>
    %78 = vector.multi_reduction <add>, %77, %cst_25 [1] : vector<8x8xf32> to vector<8xf32>
    %79 = vector.shape_cast %78 : vector<8xf32> to vector<8x1xf32>
    %cst_26 = arith.constant dense<0.000000e+00> : vector<8x32xf32>
    %80 = tpu.matmul %77, %67, %cst_26 {dimension_numbers = #tpu.dot_dimension_numbers<[1], [0], [0], [1], [0, 0, 1, 1], [], []>} : vector<8x8xf32>, vector<8x32xf32>, vector<8x32xf32> -> vector<8x32xf32>
    %81 = tpu.reciprocal %79 {approx = true} : vector<8x1xf32> -> vector<8x1xf32>
    %82 = vector.broadcast %81 : vector<8x1xf32> to vector<8x32xf32>
    %83 = arith.mulf %80, %82 : vector<8x32xf32>
    %84 = vector.extract_strided_slice %1 {offsets = [0, 64], sizes = [8, 32], strides = [1, 1]} : vector<8x128xf32> to vector<8x32xf32>
    %85 = vector.extract_strided_slice %84 {offsets = [0, 0], sizes = [8, 16], strides = [1, 1]} : vector<8x32xf32> to vector<8x16xf32>
    %86 = vector.extract_strided_slice %84 {offsets = [0, 16], sizes = [8, 16], strides = [1, 1]} : vector<8x32xf32> to vector<8x16xf32>
    %cst_27 = arith.constant 0.000000e+00 : f32
    %87 = vector.broadcast %cst_27 : f32 to vector<8x16xf32>
    %88 = arith.subf %87, %86 : vector<8x16xf32>
    %89 = tpu.concatenate %88, %85 in 1 : vector<8x16xf32>, vector<8x16xf32> -> vector<8x32xf32>
    %90 = arith.mulf %84, %6 : vector<8x32xf32>
    %91 = arith.mulf %89, %7 : vector<8x32xf32>
    %92 = arith.addf %90, %91 : vector<8x32xf32>
    %93 = vector.extract_strided_slice %3 {offsets = [0, 64], sizes = [8, 32], strides = [1, 1]} : vector<8x128xf32> to vector<8x32xf32>
    %94 = vector.extract_strided_slice %93 {offsets = [0, 0], sizes = [8, 16], strides = [1, 1]} : vector<8x32xf32> to vector<8x16xf32>
    %95 = vector.extract_strided_slice %93 {offsets = [0, 16], sizes = [8, 16], strides = [1, 1]} : vector<8x32xf32> to vector<8x16xf32>
    %cst_28 = arith.constant 0.000000e+00 : f32
    %96 = vector.broadcast %cst_28 : f32 to vector<8x16xf32>
    %97 = arith.subf %96, %95 : vector<8x16xf32>
    %98 = tpu.concatenate %97, %94 in 1 : vector<8x16xf32>, vector<8x16xf32> -> vector<8x32xf32>
    %99 = arith.mulf %93, %6 : vector<8x32xf32>
    %100 = arith.mulf %98, %7 : vector<8x32xf32>
    %101 = arith.addf %99, %100 : vector<8x32xf32>
    %102 = vector.extract_strided_slice %5 {offsets = [0, 64], sizes = [8, 32], strides = [1, 1]} : vector<8x128xf32> to vector<8x32xf32>
    %cst_29 = arith.constant 0.176776692 : f32
    %103 = vector.broadcast %cst_29 : f32 to vector<8x32xf32>
    %104 = arith.mulf %92, %103 : vector<8x32xf32>
    %105 = tpu.transpose %101, [1, 0] : vector<8x32xf32> -> vector<32x8xf32>
    %cst_30 = arith.constant dense<0.000000e+00> : vector<8x8xf32>
    %106 = tpu.matmul %104, %105, %cst_30 {dimension_numbers = #tpu.dot_dimension_numbers<[1], [0], [0], [1], [0, 0, 1, 1], [], []>} : vector<8x32xf32>, vector<32x8xf32>, vector<8x8xf32> -> vector<8x8xf32>
    %107 = arith.addf %106, %13 : vector<8x8xf32>
    %cst_31 = arith.constant dense<0xFF800000> : vector<8xf32>
    %108 = vector.multi_reduction <maximumf>, %107, %cst_31 [1] : vector<8x8xf32> to vector<8xf32>
    %109 = vector.shape_cast %108 : vector<8xf32> to vector<8x1xf32>
    %110 = vector.broadcast %109 : vector<8x1xf32> to vector<8x8xf32>
    %111 = arith.subf %107, %110 : vector<8x8xf32>
    %112 = math.exp %111 : vector<8x8xf32>
    %cst_32 = arith.constant dense<0.000000e+00> : vector<8xf32>
    %113 = vector.multi_reduction <add>, %112, %cst_32 [1] : vector<8x8xf32> to vector<8xf32>
    %114 = vector.shape_cast %113 : vector<8xf32> to vector<8x1xf32>
    %cst_33 = arith.constant dense<0.000000e+00> : vector<8x32xf32>
    %115 = tpu.matmul %112, %102, %cst_33 {dimension_numbers = #tpu.dot_dimension_numbers<[1], [0], [0], [1], [0, 0, 1, 1], [], []>} : vector<8x8xf32>, vector<8x32xf32>, vector<8x32xf32> -> vector<8x32xf32>
    %116 = tpu.reciprocal %114 {approx = true} : vector<8x1xf32> -> vector<8x1xf32>
    %117 = vector.broadcast %116 : vector<8x1xf32> to vector<8x32xf32>
    %118 = arith.mulf %115, %117 : vector<8x32xf32>
    %119 = vector.extract_strided_slice %1 {offsets = [0, 96], sizes = [8, 32], strides = [1, 1]} : vector<8x128xf32> to vector<8x32xf32>
    %120 = vector.extract_strided_slice %119 {offsets = [0, 0], sizes = [8, 16], strides = [1, 1]} : vector<8x32xf32> to vector<8x16xf32>
    %121 = vector.extract_strided_slice %119 {offsets = [0, 16], sizes = [8, 16], strides = [1, 1]} : vector<8x32xf32> to vector<8x16xf32>
    %cst_34 = arith.constant 0.000000e+00 : f32
    %122 = vector.broadcast %cst_34 : f32 to vector<8x16xf32>
    %123 = arith.subf %122, %121 : vector<8x16xf32>
    %124 = tpu.concatenate %123, %120 in 1 : vector<8x16xf32>, vector<8x16xf32> -> vector<8x32xf32>
    %125 = arith.mulf %119, %6 : vector<8x32xf32>
    %126 = arith.mulf %124, %7 : vector<8x32xf32>
    %127 = arith.addf %125, %126 : vector<8x32xf32>
    %128 = vector.extract_strided_slice %3 {offsets = [0, 96], sizes = [8, 32], strides = [1, 1]} : vector<8x128xf32> to vector<8x32xf32>
    %129 = vector.extract_strided_slice %128 {offsets = [0, 0], sizes = [8, 16], strides = [1, 1]} : vector<8x32xf32> to vector<8x16xf32>
    %130 = vector.extract_strided_slice %128 {offsets = [0, 16], sizes = [8, 16], strides = [1, 1]} : vector<8x32xf32> to vector<8x16xf32>
    %cst_35 = arith.constant 0.000000e+00 : f32
    %131 = vector.broadcast %cst_35 : f32 to vector<8x16xf32>
    %132 = arith.subf %131, %130 : vector<8x16xf32>
    %133 = tpu.concatenate %132, %129 in 1 : vector<8x16xf32>, vector<8x16xf32> -> vector<8x32xf32>
    %134 = arith.mulf %128, %6 : vector<8x32xf32>
    %135 = arith.mulf %133, %7 : vector<8x32xf32>
    %136 = arith.addf %134, %135 : vector<8x32xf32>
    %137 = vector.extract_strided_slice %5 {offsets = [0, 96], sizes = [8, 32], strides = [1, 1]} : vector<8x128xf32> to vector<8x32xf32>
    %cst_36 = arith.constant 0.176776692 : f32
    %138 = vector.broadcast %cst_36 : f32 to vector<8x32xf32>
    %139 = arith.mulf %127, %138 : vector<8x32xf32>
    %140 = tpu.transpose %136, [1, 0] : vector<8x32xf32> -> vector<32x8xf32>
    %cst_37 = arith.constant dense<0.000000e+00> : vector<8x8xf32>
    %141 = tpu.matmul %139, %140, %cst_37 {dimension_numbers = #tpu.dot_dimension_numbers<[1], [0], [0], [1], [0, 0, 1, 1], [], []>} : vector<8x32xf32>, vector<32x8xf32>, vector<8x8xf32> -> vector<8x8xf32>
    %142 = arith.addf %141, %13 : vector<8x8xf32>
    %cst_38 = arith.constant dense<0xFF800000> : vector<8xf32>
    %143 = vector.multi_reduction <maximumf>, %142, %cst_38 [1] : vector<8x8xf32> to vector<8xf32>
    %144 = vector.shape_cast %143 : vector<8xf32> to vector<8x1xf32>
    %145 = vector.broadcast %144 : vector<8x1xf32> to vector<8x8xf32>
    %146 = arith.subf %142, %145 : vector<8x8xf32>
    %147 = math.exp %146 : vector<8x8xf32>
    %cst_39 = arith.constant dense<0.000000e+00> : vector<8xf32>
    %148 = vector.multi_reduction <add>, %147, %cst_39 [1] : vector<8x8xf32> to vector<8xf32>
    %149 = vector.shape_cast %148 : vector<8xf32> to vector<8x1xf32>
    %cst_40 = arith.constant dense<0.000000e+00> : vector<8x32xf32>
    %150 = tpu.matmul %147, %137, %cst_40 {dimension_numbers = #tpu.dot_dimension_numbers<[1], [0], [0], [1], [0, 0, 1, 1], [], []>} : vector<8x8xf32>, vector<8x32xf32>, vector<8x32xf32> -> vector<8x32xf32>
    %151 = tpu.reciprocal %149 {approx = true} : vector<8x1xf32> -> vector<8x1xf32>
    %152 = vector.broadcast %151 : vector<8x1xf32> to vector<8x32xf32>
    %153 = arith.mulf %150, %152 : vector<8x32xf32>
    %154 = tpu.concatenate %48, %83, %118, %153 in 1 : vector<8x32xf32>, vector<8x32xf32>, vector<8x32xf32>, vector<8x32xf32> -> vector<8x128xf32>
    %c0_41 = arith.constant 0 : index
    %c0_42 = arith.constant 0 : index
    %155 = vector.load %arg6[%c0_41, %c0_42] : memref<128x128xf32, #tpu.memory_space<vmem>>, vector<128x128xf32>
    %cst_43 = arith.constant dense<0.000000e+00> : vector<8x128xf32>
    %156 = tpu.matmul %154, %155, %cst_43 {dimension_numbers = #tpu.dot_dimension_numbers<[1], [0], [0], [1], [0, 0, 1, 1], [], []>} : vector<8x128xf32>, vector<128x128xf32>, vector<8x128xf32> -> vector<8x128xf32>
    %c0_44 = arith.constant 0 : index
    %c0_45 = arith.constant 0 : index
    %c0_46 = arith.constant 0 : index
    %157 = vector.load %arg7[%c0_44, %c0_45, %c0_46] : memref<1x8x128xf32, #tpu.memory_space<vmem>>, vector<1x8x128xf32>
    %158 = vector.shape_cast %157 : vector<1x8x128xf32> to vector<8x128xf32>
    %159 = arith.addf %156, %158 : vector<8x128xf32>
    %c0_47 = arith.constant 0 : index
    %c0_48 = arith.constant 0 : index
    %c0_49 = arith.constant 0 : index
    %160 = vector.load %arg8[%c0_47, %c0_48, %c0_49] : memref<1x8x128xf32, #tpu.memory_space<vmem>>, vector<1x8x128xf32>
    %161 = vector.shape_cast %160 : vector<1x8x128xf32> to vector<8x128xf32>
    %162 = vector.shape_cast %159 : vector<8x128xf32> to vector<1x8x128xf32>
    tpu.vector_store %arg8[%c0_47, %c0_48, %c0_49], %162 {strides = array<i32>} : memref<1x8x128xf32, #tpu.memory_space<vmem>>, vector<1x8x128xf32>,
    return
  }
  func.func @transform_0(%arg0: i32) -> (i32, i32, i32) {
    %c0_i32 = arith.constant 0 : i32
    %c0_i32_0 = arith.constant 0 : i32
    %c0_i32_1 = arith.constant 0 : i32
    return %arg0, %c0_i32, %c0_i32_0 : i32, i32, i32
  }
  func.func @transform_1(%arg0: i32) -> (i32, i32, i32) {
    %c0_i32 = arith.constant 0 : i32
    %c1_i32 = arith.constant 1 : i32
    %c0_i32_0 = arith.constant 0 : i32
    return %arg0, %c0_i32, %c1_i32 : i32, i32, i32
  }
  func.func @transform_2(%arg0: i32) -> (i32, i32, i32) {
    %c0_i32 = arith.constant 0 : i32
    %c2_i32 = arith.constant 2 : i32
    %c0_i32_0 = arith.constant 0 : i32
    return %arg0, %c0_i32, %c2_i32 : i32, i32, i32
  }
  func.func @transform_3(%arg0: i32) -> (i32, i32) {
    %c0_i32 = arith.constant 0 : i32
    %c0_i32_0 = arith.constant 0 : i32
    %c0_i32_1 = arith.constant 0 : i32
    return %c0_i32, %c0_i32_0 : i32, i32
  }
  func.func @transform_4(%arg0: i32) -> (i32, i32) {
    %c0_i32 = arith.constant 0 : i32
    %c0_i32_0 = arith.constant 0 : i32
    %c0_i32_1 = arith.constant 0 : i32
    return %c0_i32, %c0_i32_0 : i32, i32
  }
  func.func @transform_5(%arg0: i32) -> (i32, i32) {
    %c0_i32 = arith.constant 0 : i32
    %c0_i32_0 = arith.constant 0 : i32
    %c0_i32_1 = arith.constant 0 : i32
    return %c0_i32, %c0_i32_0 : i32, i32
  }
  func.func @transform_6(%arg0: i32) -> (i32, i32, i32) {
    %c0_i32 = arith.constant 0 : i32
    %c0_i32_0 = arith.constant 0 : i32
    %c0_i32_1 = arith.constant 0 : i32
    return %arg0, %c0_i32, %c0_i32_0 : i32, i32, i32
  }
  func.func @transform_7(%arg0: i32) -> (i32, i32, i32) {
    %c0_i32 = arith.constant 0 : i32
    %c0_i32_0 = arith.constant 0 : i32
    %c0_i32_1 = arith.constant 0 : i32
    return %arg0, %c0_i32, %c0_i32_0 : i32, i32, i32
  }
}

module attributes {stable_mosaic.version = 11 : i64} {
  func.func @_matmul_kernel(%arg0: i32, %arg1: i32, %arg2: memref<32x128xf32, #tpu.memory_space<vmem>>, %arg3: memref<128x256xf32, #tpu.memory_space<vmem>>, %arg4: memref<32x256xf32, #tpu.memory_space<vmem>>) attributes {dimension_semantics = [#tpu.dimension_semantics<parallel>, #tpu.dimension_semantics<parallel>], iteration_bounds = array<i64: 1, 1>, scalar_prefetch = 0 : i64, scratch_operands = 0 : i64, tpu.core_type = #tpu.core_type<tc>, window_params = [{transform_indices = @transform_0, window_bounds = array<i64: 32, 128>}, {transform_indices = @transform_1, window_bounds = array<i64: 128, 256>}, {transform_indices = @transform_2, window_bounds = array<i64: 32, 256>}]} {
    %c0 = arith.constant 0 : index
    %c0_0 = arith.constant 0 : index
    %0 = vector.load %arg2[%c0, %c0_0] : memref<32x128xf32, #tpu.memory_space<vmem>>, vector<32x128xf32>
    %c0_1 = arith.constant 0 : index
    %c0_2 = arith.constant 0 : index
    %1 = vector.load %arg3[%c0_1, %c0_2] : memref<128x256xf32, #tpu.memory_space<vmem>>, vector<128x256xf32>
    %cst = arith.constant dense<0.000000e+00> : vector<32x256xf32>
    %2 = tpu.matmul %0, %1, %cst {dimension_numbers = #tpu.dot_dimension_numbers<[1], [0], [0], [1], [0, 0, 1, 1], [], []>} : vector<32x128xf32>, vector<128x256xf32>, vector<32x256xf32> -> vector<32x256xf32>
    %c0_3 = arith.constant 0 : index
    %c0_4 = arith.constant 0 : index
    %3 = vector.load %arg4[%c0_3, %c0_4] : memref<32x256xf32, #tpu.memory_space<vmem>>, vector<32x256xf32>
    tpu.vector_store %arg4[%c0_3, %c0_4], %2 {strides = array<i32>} : memref<32x256xf32, #tpu.memory_space<vmem>>, vector<32x256xf32>,
    return
  }
  func.func @transform_0(%arg0: i32, %arg1: i32) -> (i32, i32) {
    %c0_i32 = arith.constant 0 : i32
    %c0_i32_0 = arith.constant 0 : i32
    return %arg0, %c0_i32 : i32, i32
  }
  func.func @transform_1(%arg0: i32, %arg1: i32) -> (i32, i32) {
    %c0_i32 = arith.constant 0 : i32
    %c0_i32_0 = arith.constant 0 : i32
    return %c0_i32, %arg1 : i32, i32
  }
  func.func @transform_2(%arg0: i32, %arg1: i32) -> (i32, i32) {
    %c0_i32 = arith.constant 0 : i32
    return %arg0, %arg1 : i32, i32
  }
}

module attributes {stable_mosaic.version = 11 : i64} {
  func.func @_norm_matmul_kernel(%arg0: i32, %arg1: i32, %arg2: memref<16x128xf32, #tpu.memory_space<vmem>>, %arg3: memref<1x128xf32, #tpu.memory_space<vmem>>, %arg4: memref<128x128xf32, #tpu.memory_space<vmem>>, %arg5: memref<16x128xf32, #tpu.memory_space<vmem>>) attributes {dimension_semantics = [#tpu.dimension_semantics<parallel>, #tpu.dimension_semantics<parallel>], iteration_bounds = array<i64: 1, 1>, scalar_prefetch = 0 : i64, scratch_operands = 0 : i64, tpu.core_type = #tpu.core_type<tc>, window_params = [{transform_indices = @transform_0, window_bounds = array<i64: 16, 128>}, {pipeline_mode = #tpu.pipeline_mode<synchronous>, transform_indices = @transform_1, window_bounds = array<i64: 1, 128>}, {transform_indices = @transform_2, window_bounds = array<i64: 128, 128>}, {transform_indices = @transform_3, window_bounds = array<i64: 16, 128>}]} {
    %c0 = arith.constant 0 : index
    %c0_0 = arith.constant 0 : index
    %0 = vector.load %arg2[%c0, %c0_0] : memref<16x128xf32, #tpu.memory_space<vmem>>, vector<16x128xf32>
    %1 = arith.mulf %0, %0 : vector<16x128xf32>
    %cst = arith.constant dense<0.000000e+00> : vector<16xf32>
    %2 = vector.multi_reduction <add>, %1, %cst [1] : vector<16x128xf32> to vector<16xf32>
    %3 = vector.shape_cast %2 : vector<16xf32> to vector<16x1xf32>
    %cst_1 = arith.constant 1.280000e+02 : f32
    %4 = vector.broadcast %cst_1 : f32 to vector<16x1xf32>
    %5 = arith.divf %3, %4 : vector<16x1xf32>
    %cst_2 = arith.constant 9.99999974E-6 : f32
    %6 = vector.broadcast %cst_2 : f32 to vector<16x1xf32>
    %7 = arith.addf %5, %6 : vector<16x1xf32>
    %8 = math.rsqrt %7 : vector<16x1xf32>
    %9 = vector.broadcast %8 : vector<16x1xf32> to vector<16x128xf32>
    %10 = arith.mulf %0, %9 : vector<16x128xf32>
    %c0_3 = arith.constant 0 : index
    %c0_4 = arith.constant 0 : index
    %11 = vector.load %arg3[%c0_3, %c0_4] : memref<1x128xf32, #tpu.memory_space<vmem>>, vector<1x128xf32>
    %12 = vector.broadcast %11 : vector<1x128xf32> to vector<16x128xf32>
    %13 = arith.mulf %10, %12 : vector<16x128xf32>
    %c0_5 = arith.constant 0 : index
    %c0_6 = arith.constant 0 : index
    %14 = vector.load %arg4[%c0_5, %c0_6] : memref<128x128xf32, #tpu.memory_space<vmem>>, vector<128x128xf32>
    %cst_7 = arith.constant dense<0.000000e+00> : vector<16x128xf32>
    %15 = tpu.matmul %13, %14, %cst_7 {dimension_numbers = #tpu.dot_dimension_numbers<[1], [0], [0], [1], [0, 0, 1, 1], [], []>} : vector<16x128xf32>, vector<128x128xf32>, vector<16x128xf32> -> vector<16x128xf32>
    %c0_8 = arith.constant 0 : index
    %c0_9 = arith.constant 0 : index
    %16 = vector.load %arg5[%c0_8, %c0_9] : memref<16x128xf32, #tpu.memory_space<vmem>>, vector<16x128xf32>
    tpu.vector_store %arg5[%c0_8, %c0_9], %15 {strides = array<i32>} : memref<16x128xf32, #tpu.memory_space<vmem>>, vector<16x128xf32>,
    return
  }
  func.func @transform_0(%arg0: i32, %arg1: i32) -> (i32, i32) {
    %c0_i32 = arith.constant 0 : i32
    %c0_i32_0 = arith.constant 0 : i32
    return %arg0, %c0_i32 : i32, i32
  }
  func.func @transform_1(%arg0: i32, %arg1: i32) -> (i32, i32) {
    %c0_i32 = arith.constant 0 : i32
    %c0_i32_0 = arith.constant 0 : i32
    %c0_i32_1 = arith.constant 0 : i32
    return %c0_i32, %c0_i32_0 : i32, i32
  }
  func.func @transform_2(%arg0: i32, %arg1: i32) -> (i32, i32) {
    %c0_i32 = arith.constant 0 : i32
    %c0_i32_0 = arith.constant 0 : i32
    return %c0_i32, %arg1 : i32, i32
  }
  func.func @transform_3(%arg0: i32, %arg1: i32) -> (i32, i32) {
    %c0_i32 = arith.constant 0 : i32
    return %arg0, %arg1 : i32, i32
  }
}

module attributes {stable_mosaic.version = 11 : i64} {
  func.func @_ffn_kernel(%arg0: i32, %arg1: i32, %arg2: memref<16x128xf32, #tpu.memory_space<vmem>>, %arg3: memref<1x128xf32, #tpu.memory_space<vmem>>, %arg4: memref<128x256xf32, #tpu.memory_space<vmem>>, %arg5: memref<128x256xf32, #tpu.memory_space<vmem>>, %arg6: memref<256x128xf32, #tpu.memory_space<vmem>>, %arg7: memref<16x128xf32, #tpu.memory_space<vmem>>, %arg8: memref<16x128xf32, #tpu.memory_space<vmem>>) attributes {dimension_semantics = [#tpu.dimension_semantics<parallel>, #tpu.dimension_semantics<arbitrary>], iteration_bounds = array<i64: 1, 2>, scalar_prefetch = 0 : i64, scratch_operands = 1 : i64, tpu.core_type = #tpu.core_type<tc>, window_params = [{transform_indices = @transform_0, window_bounds = array<i64: 16, 128>}, {pipeline_mode = #tpu.pipeline_mode<synchronous>, transform_indices = @transform_1, window_bounds = array<i64: 1, 128>}, {transform_indices = @transform_2, window_bounds = array<i64: 128, 256>}, {transform_indices = @transform_3, window_bounds = array<i64: 128, 256>}, {transform_indices = @transform_4, window_bounds = array<i64: 256, 128>}, {transform_indices = @transform_5, window_bounds = array<i64: 16, 128>}]} {
    %c0 = arith.constant 0 : index
    %c0_0 = arith.constant 0 : index
    %0 = vector.load %arg2[%c0, %c0_0] : memref<16x128xf32, #tpu.memory_space<vmem>>, vector<16x128xf32>
    %1 = arith.mulf %0, %0 : vector<16x128xf32>
    %cst = arith.constant dense<0.000000e+00> : vector<16xf32>
    %2 = vector.multi_reduction <add>, %1, %cst [1] : vector<16x128xf32> to vector<16xf32>
    %3 = vector.shape_cast %2 : vector<16xf32> to vector<16x1xf32>
    %cst_1 = arith.constant 1.280000e+02 : f32
    %4 = vector.broadcast %cst_1 : f32 to vector<16x1xf32>
    %5 = arith.divf %3, %4 : vector<16x1xf32>
    %cst_2 = arith.constant 9.99999974E-6 : f32
    %6 = vector.broadcast %cst_2 : f32 to vector<16x1xf32>
    %7 = arith.addf %5, %6 : vector<16x1xf32>
    %8 = math.rsqrt %7 : vector<16x1xf32>
    %9 = vector.broadcast %8 : vector<16x1xf32> to vector<16x128xf32>
    %10 = arith.mulf %0, %9 : vector<16x128xf32>
    %c0_3 = arith.constant 0 : index
    %c0_4 = arith.constant 0 : index
    %11 = vector.load %arg3[%c0_3, %c0_4] : memref<1x128xf32, #tpu.memory_space<vmem>>, vector<1x128xf32>
    %12 = vector.broadcast %11 : vector<1x128xf32> to vector<16x128xf32>
    %13 = arith.mulf %10, %12 : vector<16x128xf32>
    %c0_5 = arith.constant 0 : index
    %c0_6 = arith.constant 0 : index
    %14 = vector.load %arg4[%c0_5, %c0_6] : memref<128x256xf32, #tpu.memory_space<vmem>>, vector<128x256xf32>
    %cst_7 = arith.constant dense<0.000000e+00> : vector<16x256xf32>
    %15 = tpu.matmul %13, %14, %cst_7 {dimension_numbers = #tpu.dot_dimension_numbers<[1], [0], [0], [1], [0, 0, 1, 1], [], []>} : vector<16x128xf32>, vector<128x256xf32>, vector<16x256xf32> -> vector<16x256xf32>
    %c0_8 = arith.constant 0 : index
    %c0_9 = arith.constant 0 : index
    %16 = vector.load %arg5[%c0_8, %c0_9] : memref<128x256xf32, #tpu.memory_space<vmem>>, vector<128x256xf32>
    %cst_10 = arith.constant dense<0.000000e+00> : vector<16x256xf32>
    %17 = tpu.matmul %13, %16, %cst_10 {dimension_numbers = #tpu.dot_dimension_numbers<[1], [0], [0], [1], [0, 0, 1, 1], [], []>} : vector<16x128xf32>, vector<128x256xf32>, vector<16x256xf32> -> vector<16x256xf32>
    %18 = arith.negf %15 : vector<16x256xf32>
    %19 = math.exp %18 : vector<16x256xf32>
    %cst_11 = arith.constant 1.000000e+00 : f32
    %20 = vector.broadcast %cst_11 : f32 to vector<16x256xf32>
    %21 = arith.addf %20, %19 : vector<16x256xf32>
    %22 = arith.divf %20, %21 : vector<16x256xf32>
    %23 = arith.mulf %15, %22 : vector<16x256xf32>
    %24 = arith.mulf %23, %17 : vector<16x256xf32>
    %c0_i32 = arith.constant 0 : i32
    %25 = arith.cmpi eq, %arg1, %c0_i32 : i32
    %26 = arith.extui %25 : i1 to i32
    %c0_i32_12 = arith.constant 0 : i32
    %27 = arith.cmpi ne, %26, %c0_i32_12 : i32
    scf.if %27 {
      %c0_21 = arith.constant 0 : index
      %c0_22 = arith.constant 0 : index
      %36 = vector.load %arg8[%c0_21, %c0_22] : memref<16x128xf32, #tpu.memory_space<vmem>>, vector<16x128xf32>
      tpu.vector_store %arg8[%c0_21, %c0_22], %0 {strides = array<i32>} : memref<16x128xf32, #tpu.memory_space<vmem>>, vector<16x128xf32>,
    } else {
    }
    %c0_13 = arith.constant 0 : index
    %c0_14 = arith.constant 0 : index
    %28 = vector.load %arg8[%c0_13, %c0_14] : memref<16x128xf32, #tpu.memory_space<vmem>>, vector<16x128xf32>
    %c0_15 = arith.constant 0 : index
    %c0_16 = arith.constant 0 : index
    %29 = vector.load %arg6[%c0_15, %c0_16] : memref<256x128xf32, #tpu.memory_space<vmem>>, vector<256x128xf32>
    %cst_17 = arith.constant dense<0.000000e+00> : vector<16x128xf32>
    %30 = tpu.matmul %24, %29, %cst_17 {dimension_numbers = #tpu.dot_dimension_numbers<[1], [0], [0], [1], [0, 0, 1, 1], [], []>} : vector<16x256xf32>, vector<256x128xf32>, vector<16x128xf32> -> vector<16x128xf32>
    %31 = arith.addf %28, %30 : vector<16x128xf32>
    %c0_18 = arith.constant 0 : index
    %c0_19 = arith.constant 0 : index
    %32 = vector.load %arg8[%c0_18, %c0_19] : memref<16x128xf32, #tpu.memory_space<vmem>>, vector<16x128xf32>
    tpu.vector_store %arg8[%c0_18, %c0_19], %31 {strides = array<i32>} : memref<16x128xf32, #tpu.memory_space<vmem>>, vector<16x128xf32>,
    %c1_i32 = arith.constant 1 : i32
    %33 = arith.cmpi eq, %arg1, %c1_i32 : i32
    %34 = arith.extui %33 : i1 to i32
    %c0_i32_20 = arith.constant 0 : i32
    %35 = arith.cmpi ne, %34, %c0_i32_20 : i32
    scf.if %35 {
      %c0_21 = arith.constant 0 : index
      %c0_22 = arith.constant 0 : index
      %36 = vector.load %arg8[%c0_21, %c0_22] : memref<16x128xf32, #tpu.memory_space<vmem>>, vector<16x128xf32>
      %c0_23 = arith.constant 0 : index
      %c0_24 = arith.constant 0 : index
      %37 = vector.load %arg7[%c0_23, %c0_24] : memref<16x128xf32, #tpu.memory_space<vmem>>, vector<16x128xf32>
      tpu.vector_store %arg7[%c0_23, %c0_24], %36 {strides = array<i32>} : memref<16x128xf32, #tpu.memory_space<vmem>>, vector<16x128xf32>,
    } else {
    }
    return
  }
  func.func @transform_0(%arg0: i32, %arg1: i32) -> (i32, i32) {
    %c0_i32 = arith.constant 0 : i32
    %c0_i32_0 = arith.constant 0 : i32
    return %arg0, %c0_i32 : i32, i32
  }
  func.func @transform_1(%arg0: i32, %arg1: i32) -> (i32, i32) {
    %c0_i32 = arith.constant 0 : i32
    %c0_i32_0 = arith.constant 0 : i32
    %c0_i32_1 = arith.constant 0 : i32
    return %c0_i32, %c0_i32_0 : i32, i32
  }
  func.func @transform_2(%arg0: i32, %arg1: i32) -> (i32, i32) {
    %c0_i32 = arith.constant 0 : i32
    %c0_i32_0 = arith.constant 0 : i32
    return %c0_i32, %arg1 : i32, i32
  }
  func.func @transform_3(%arg0: i32, %arg1: i32) -> (i32, i32) {
    %c0_i32 = arith.constant 0 : i32
    %c0_i32_0 = arith.constant 0 : i32
    return %c0_i32, %arg1 : i32, i32
  }
  func.func @transform_4(%arg0: i32, %arg1: i32) -> (i32, i32) {
    %c0_i32 = arith.constant 0 : i32
    %c0_i32_0 = arith.constant 0 : i32
    return %arg1, %c0_i32 : i32, i32
  }
  func.func @transform_5(%arg0: i32, %arg1: i32) -> (i32, i32) {
    %c0_i32 = arith.constant 0 : i32
    %c0_i32_0 = arith.constant 0 : i32
    return %arg0, %c0_i32 : i32, i32
  }
}

module attributes {stable_mosaic.version = 11 : i64} {
  func.func @_cross_attn_kernel(%arg0: i32, %arg1: memref<1x8x128xf32, #tpu.memory_space<vmem>>, %arg2: memref<1x16x128xf32, #tpu.memory_space<vmem>>, %arg3: memref<1x16x128xf32, #tpu.memory_space<vmem>>, %arg4: memref<1x1x16xf32, #tpu.memory_space<vmem>>, %arg5: memref<128x128xf32, #tpu.memory_space<vmem>>, %arg6: memref<1x8x128xf32, #tpu.memory_space<vmem>>, %arg7: memref<1x8x128xf32, #tpu.memory_space<vmem>>) attributes {dimension_semantics = [#tpu.dimension_semantics<parallel>], iteration_bounds = array<i64: 2>, scalar_prefetch = 0 : i64, scratch_operands = 0 : i64, tpu.core_type = #tpu.core_type<tc>, window_params = [{transform_indices = @transform_0, window_bounds = array<i64: 1, 8, 128>}, {transform_indices = @transform_1, window_bounds = array<i64: 1, 16, 128>}, {transform_indices = @transform_2, window_bounds = array<i64: 1, 16, 128>}, {transform_indices = @transform_3, window_bounds = array<i64: 1, 1, 16>}, {pipeline_mode = #tpu.pipeline_mode<synchronous>, transform_indices = @transform_4, window_bounds = array<i64: 128, 128>}, {transform_indices = @transform_5, window_bounds = array<i64: 1, 8, 128>}, {transform_indices = @transform_6, window_bounds = array<i64: 1, 8, 128>}]} {
    %c0 = arith.constant 0 : index
    %c0_0 = arith.constant 0 : index
    %c0_1 = arith.constant 0 : index
    %0 = vector.load %arg1[%c0, %c0_0, %c0_1] : memref<1x8x128xf32, #tpu.memory_space<vmem>>, vector<1x8x128xf32>
    %1 = vector.shape_cast %0 : vector<1x8x128xf32> to vector<8x128xf32>
    %c0_2 = arith.constant 0 : index
    %c0_3 = arith.constant 0 : index
    %c0_4 = arith.constant 0 : index
    %2 = vector.load %arg2[%c0_2, %c0_3, %c0_4] : memref<1x16x128xf32, #tpu.memory_space<vmem>>, vector<1x16x128xf32>
    %3 = vector.shape_cast %2 : vector<1x16x128xf32> to vector<16x128xf32>
    %c0_5 = arith.constant 0 : index
    %c0_6 = arith.constant 0 : index
    %c0_7 = arith.constant 0 : index
    %4 = vector.load %arg3[%c0_5, %c0_6, %c0_7] : memref<1x16x128xf32, #tpu.memory_space<vmem>>, vector<1x16x128xf32>
    %5 = vector.shape_cast %4 : vector<1x16x128xf32> to vector<16x128xf32>
    %c0_8 = arith.constant 0 : index
    %c0_9 = arith.constant 0 : index
    %c0_10 = arith.constant 0 : index
    %6 = vector.load %arg4[%c0_8, %c0_9, %c0_10] : memref<1x1x16xf32, #tpu.memory_space<vmem>>, vector<1x1x16xf32>
    %7 = vector.shape_cast %6 : vector<1x1x16xf32> to vector<1x16xf32>
    %8 = vector.shape_cast %7 : vector<1x16xf32> to vector<1x16xf32>
    %9 = vector.broadcast %8 : vector<1x16xf32> to vector<8x16xf32>
    %10 = vector.extract_strided_slice %1 {offsets = [0, 0], sizes = [8, 32], strides = [1, 1]} : vector<8x128xf32> to vector<8x32xf32>
    %11 = vector.extract_strided_slice %3 {offsets = [0, 0], sizes = [16, 32], strides = [1, 1]} : vector<16x128xf32> to vector<16x32xf32>
    %12 = vector.extract_strided_slice %5 {offsets = [0, 0], sizes = [16, 32], strides = [1, 1]} : vector<16x128xf32> to vector<16x32xf32>
    %cst = arith.constant 0.176776692 : f32
    %13 = vector.broadcast %cst : f32 to vector<8x32xf32>
    %14 = arith.mulf %10, %13 : vector<8x32xf32>
    %15 = tpu.transpose %11, [1, 0] : vector<16x32xf32> -> vector<32x16xf32>
    %cst_11 = arith.constant dense<0.000000e+00> : vector<8x16xf32>
    %16 = tpu.matmul %14, %15, %cst_11 {dimension_numbers = #tpu.dot_dimension_numbers<[1], [0], [0], [1], [0, 0, 1, 1], [], []>} : vector<8x32xf32>, vector<32x16xf32>, vector<8x16xf32> -> vector<8x16xf32>
    %17 = arith.addf %16, %9 : vector<8x16xf32>
    %cst_12 = arith.constant dense<0xFF800000> : vector<8xf32>
    %18 = vector.multi_reduction <maximumf>, %17, %cst_12 [1] : vector<8x16xf32> to vector<8xf32>
    %19 = vector.shape_cast %18 : vector<8xf32> to vector<8x1xf32>
    %20 = vector.broadcast %19 : vector<8x1xf32> to vector<8x16xf32>
    %21 = arith.subf %17, %20 : vector<8x16xf32>
    %22 = math.exp %21 : vector<8x16xf32>
    %cst_13 = arith.constant dense<0.000000e+00> : vector<8xf32>
    %23 = vector.multi_reduction <add>, %22, %cst_13 [1] : vector<8x16xf32> to vector<8xf32>
    %24 = vector.shape_cast %23 : vector<8xf32> to vector<8x1xf32>
    %cst_14 = arith.constant dense<0.000000e+00> : vector<8x32xf32>
    %25 = tpu.matmul %22, %12, %cst_14 {dimension_numbers = #tpu.dot_dimension_numbers<[1], [0], [0], [1], [0, 0, 1, 1], [], []>} : vector<8x16xf32>, vector<16x32xf32>, vector<8x32xf32> -> vector<8x32xf32>
    %26 = tpu.reciprocal %24 {approx = true} : vector<8x1xf32> -> vector<8x1xf32>
    %27 = vector.broadcast %26 : vector<8x1xf32> to vector<8x32xf32>
    %28 = arith.mulf %25, %27 : vector<8x32xf32>
    %29 = vector.extract_strided_slice %1 {offsets = [0, 32], sizes = [8, 32], strides = [1, 1]} : vector<8x128xf32> to vector<8x32xf32>
    %30 = vector.extract_strided_slice %3 {offsets = [0, 32], sizes = [16, 32], strides = [1, 1]} : vector<16x128xf32> to vector<16x32xf32>
    %31 = vector.extract_strided_slice %5 {offsets = [0, 32], sizes = [16, 32], strides = [1, 1]} : vector<16x128xf32> to vector<16x32xf32>
    %cst_15 = arith.constant 0.176776692 : f32
    %32 = vector.broadcast %cst_15 : f32 to vector<8x32xf32>
    %33 = arith.mulf %29, %32 : vector<8x32xf32>
    %34 = tpu.transpose %30, [1, 0] : vector<16x32xf32> -> vector<32x16xf32>
    %cst_16 = arith.constant dense<0.000000e+00> : vector<8x16xf32>
    %35 = tpu.matmul %33, %34, %cst_16 {dimension_numbers = #tpu.dot_dimension_numbers<[1], [0], [0], [1], [0, 0, 1, 1], [], []>} : vector<8x32xf32>, vector<32x16xf32>, vector<8x16xf32> -> vector<8x16xf32>
    %36 = arith.addf %35, %9 : vector<8x16xf32>
    %cst_17 = arith.constant dense<0xFF800000> : vector<8xf32>
    %37 = vector.multi_reduction <maximumf>, %36, %cst_17 [1] : vector<8x16xf32> to vector<8xf32>
    %38 = vector.shape_cast %37 : vector<8xf32> to vector<8x1xf32>
    %39 = vector.broadcast %38 : vector<8x1xf32> to vector<8x16xf32>
    %40 = arith.subf %36, %39 : vector<8x16xf32>
    %41 = math.exp %40 : vector<8x16xf32>
    %cst_18 = arith.constant dense<0.000000e+00> : vector<8xf32>
    %42 = vector.multi_reduction <add>, %41, %cst_18 [1] : vector<8x16xf32> to vector<8xf32>
    %43 = vector.shape_cast %42 : vector<8xf32> to vector<8x1xf32>
    %cst_19 = arith.constant dense<0.000000e+00> : vector<8x32xf32>
    %44 = tpu.matmul %41, %31, %cst_19 {dimension_numbers = #tpu.dot_dimension_numbers<[1], [0], [0], [1], [0, 0, 1, 1], [], []>} : vector<8x16xf32>, vector<16x32xf32>, vector<8x32xf32> -> vector<8x32xf32>
    %45 = tpu.reciprocal %43 {approx = true} : vector<8x1xf32> -> vector<8x1xf32>
    %46 = vector.broadcast %45 : vector<8x1xf32> to vector<8x32xf32>
    %47 = arith.mulf %44, %46 : vector<8x32xf32>
    %48 = vector.extract_strided_slice %1 {offsets = [0, 64], sizes = [8, 32], strides = [1, 1]} : vector<8x128xf32> to vector<8x32xf32>
    %49 = vector.extract_strided_slice %3 {offsets = [0, 64], sizes = [16, 32], strides = [1, 1]} : vector<16x128xf32> to vector<16x32xf32>
    %50 = vector.extract_strided_slice %5 {offsets = [0, 64], sizes = [16, 32], strides = [1, 1]} : vector<16x128xf32> to vector<16x32xf32>
    %cst_20 = arith.constant 0.176776692 : f32
    %51 = vector.broadcast %cst_20 : f32 to vector<8x32xf32>
    %52 = arith.mulf %48, %51 : vector<8x32xf32>
    %53 = tpu.transpose %49, [1, 0] : vector<16x32xf32> -> vector<32x16xf32>
    %cst_21 = arith.constant dense<0.000000e+00> : vector<8x16xf32>
    %54 = tpu.matmul %52, %53, %cst_21 {dimension_numbers = #tpu.dot_dimension_numbers<[1], [0], [0], [1], [0, 0, 1, 1], [], []>} : vector<8x32xf32>, vector<32x16xf32>, vector<8x16xf32> -> vector<8x16xf32>
    %55 = arith.addf %54, %9 : vector<8x16xf32>
    %cst_22 = arith.constant dense<0xFF800000> : vector<8xf32>
    %56 = vector.multi_reduction <maximumf>, %55, %cst_22 [1] : vector<8x16xf32> to vector<8xf32>
    %57 = vector.shape_cast %56 : vector<8xf32> to vector<8x1xf32>
    %58 = vector.broadcast %57 : vector<8x1xf32> to vector<8x16xf32>
    %59 = arith.subf %55, %58 : vector<8x16xf32>
    %60 = math.exp %59 : vector<8x16xf32>
    %cst_23 = arith.constant dense<0.000000e+00> : vector<8xf32>
    %61 = vector.multi_reduction <add>, %60, %cst_23 [1] : vector<8x16xf32> to vector<8xf32>
    %62 = vector.shape_cast %61 : vector<8xf32> to vector<8x1xf32>
    %cst_24 = arith.constant dense<0.000000e+00> : vector<8x32xf32>
    %63 = tpu.matmul %60, %50, %cst_24 {dimension_numbers = #tpu.dot_dimension_numbers<[1], [0], [0], [1], [0, 0, 1, 1], [], []>} : vector<8x16xf32>, vector<16x32xf32>, vector<8x32xf32> -> vector<8x32xf32>
    %64 = tpu.reciprocal %62 {approx = true} : vector<8x1xf32> -> vector<8x1xf32>
    %65 = vector.broadcast %64 : vector<8x1xf32> to vector<8x32xf32>
    %66 = arith.mulf %63, %65 : vector<8x32xf32>
    %67 = vector.extract_strided_slice %1 {offsets = [0, 96], sizes = [8, 32], strides = [1, 1]} : vector<8x128xf32> to vector<8x32xf32>
    %68 = vector.extract_strided_slice %3 {offsets = [0, 96], sizes = [16, 32], strides = [1, 1]} : vector<16x128xf32> to vector<16x32xf32>
    %69 = vector.extract_strided_slice %5 {offsets = [0, 96], sizes = [16, 32], strides = [1, 1]} : vector<16x128xf32> to vector<16x32xf32>
    %cst_25 = arith.constant 0.176776692 : f32
    %70 = vector.broadcast %cst_25 : f32 to vector<8x32xf32>
    %71 = arith.mulf %67, %70 : vector<8x32xf32>
    %72 = tpu.transpose %68, [1, 0] : vector<16x32xf32> -> vector<32x16xf32>
    %cst_26 = arith.constant dense<0.000000e+00> : vector<8x16xf32>
    %73 = tpu.matmul %71, %72, %cst_26 {dimension_numbers = #tpu.dot_dimension_numbers<[1], [0], [0], [1], [0, 0, 1, 1], [], []>} : vector<8x32xf32>, vector<32x16xf32>, vector<8x16xf32> -> vector<8x16xf32>
    %74 = arith.addf %73, %9 : vector<8x16xf32>
    %cst_27 = arith.constant dense<0xFF800000> : vector<8xf32>
    %75 = vector.multi_reduction <maximumf>, %74, %cst_27 [1] : vector<8x16xf32> to vector<8xf32>
    %76 = vector.shape_cast %75 : vector<8xf32> to vector<8x1xf32>
    %77 = vector.broadcast %76 : vector<8x1xf32> to vector<8x16xf32>
    %78 = arith.subf %74, %77 : vector<8x16xf32>
    %79 = math.exp %78 : vector<8x16xf32>
    %cst_28 = arith.constant dense<0.000000e+00> : vector<8xf32>
    %80 = vector.multi_reduction <add>, %79, %cst_28 [1] : vector<8x16xf32> to vector<8xf32>
    %81 = vector.shape_cast %80 : vector<8xf32> to vector<8x1xf32>
    %cst_29 = arith.constant dense<0.000000e+00> : vector<8x32xf32>
    %82 = tpu.matmul %79, %69, %cst_29 {dimension_numbers = #tpu.dot_dimension_numbers<[1], [0], [0], [1], [0, 0, 1, 1], [], []>} : vector<8x16xf32>, vector<16x32xf32>, vector<8x32xf32> -> vector<8x32xf32>
    %83 = tpu.reciprocal %81 {approx = true} : vector<8x1xf32> -> vector<8x1xf32>
    %84 = vector.broadcast %83 : vector<8x1xf32> to vector<8x32xf32>
    %85 = arith.mulf %82, %84 : vector<8x32xf32>
    %86 = tpu.concatenate %28, %47, %66, %85 in 1 : vector<8x32xf32>, vector<8x32xf32>, vector<8x32xf32>, vector<8x32xf32> -> vector<8x128xf32>
    %c0_30 = arith.constant 0 : index
    %c0_31 = arith.constant 0 : index
    %87 = vector.load %arg5[%c0_30, %c0_31] : memref<128x128xf32, #tpu.memory_space<vmem>>, vector<128x128xf32>
    %cst_32 = arith.constant dense<0.000000e+00> : vector<8x128xf32>
    %88 = tpu.matmul %86, %87, %cst_32 {dimension_numbers = #tpu.dot_dimension_numbers<[1], [0], [0], [1], [0, 0, 1, 1], [], []>} : vector<8x128xf32>, vector<128x128xf32>, vector<8x128xf32> -> vector<8x128xf32>
    %c0_33 = arith.constant 0 : index
    %c0_34 = arith.constant 0 : index
    %c0_35 = arith.constant 0 : index
    %89 = vector.load %arg6[%c0_33, %c0_34, %c0_35] : memref<1x8x128xf32, #tpu.memory_space<vmem>>, vector<1x8x128xf32>
    %90 = vector.shape_cast %89 : vector<1x8x128xf32> to vector<8x128xf32>
    %91 = arith.addf %88, %90 : vector<8x128xf32>
    %c0_36 = arith.constant 0 : index
    %c0_37 = arith.constant 0 : index
    %c0_38 = arith.constant 0 : index
    %92 = vector.load %arg7[%c0_36, %c0_37, %c0_38] : memref<1x8x128xf32, #tpu.memory_space<vmem>>, vector<1x8x128xf32>
    %93 = vector.shape_cast %92 : vector<1x8x128xf32> to vector<8x128xf32>
    %94 = vector.shape_cast %91 : vector<8x128xf32> to vector<1x8x128xf32>
    tpu.vector_store %arg7[%c0_36, %c0_37, %c0_38], %94 {strides = array<i32>} : memref<1x8x128xf32, #tpu.memory_space<vmem>>, vector<1x8x128xf32>,
    return
  }
  func.func @transform_0(%arg0: i32) -> (i32, i32, i32) {
    %c0_i32 = arith.constant 0 : i32
    %c0_i32_0 = arith.constant 0 : i32
    %c0_i32_1 = arith.constant 0 : i32
    return %arg0, %c0_i32, %c0_i32_0 : i32, i32, i32
  }
  func.func @transform_1(%arg0: i32) -> (i32, i32, i32) {
    %c0_i32 = arith.constant 0 : i32
    %c0_i32_0 = arith.constant 0 : i32
    %c0_i32_1 = arith.constant 0 : i32
    return %arg0, %c0_i32, %c0_i32_0 : i32, i32, i32
  }
  func.func @transform_2(%arg0: i32) -> (i32, i32, i32) {
    %c0_i32 = arith.constant 0 : i32
    %c1_i32 = arith.constant 1 : i32
    %c0_i32_0 = arith.constant 0 : i32
    return %arg0, %c0_i32, %c1_i32 : i32, i32, i32
  }
  func.func @transform_3(%arg0: i32) -> (i32, i32, i32) {
    %c0_i32 = arith.constant 0 : i32
    %c0_i32_0 = arith.constant 0 : i32
    %c0_i32_1 = arith.constant 0 : i32
    return %arg0, %c0_i32, %c0_i32_0 : i32, i32, i32
  }
  func.func @transform_4(%arg0: i32) -> (i32, i32) {
    %c0_i32 = arith.constant 0 : i32
    %c0_i32_0 = arith.constant 0 : i32
    %c0_i32_1 = arith.constant 0 : i32
    return %c0_i32, %c0_i32_0 : i32, i32
  }
  func.func @transform_5(%arg0: i32) -> (i32, i32, i32) {
    %c0_i32 = arith.constant 0 : i32
    %c0_i32_0 = arith.constant 0 : i32
    %c0_i32_1 = arith.constant 0 : i32
    return %arg0, %c0_i32, %c0_i32_0 : i32, i32, i32
  }
  func.func @transform_6(%arg0: i32) -> (i32, i32, i32) {
    %c0_i32 = arith.constant 0 : i32
    %c0_i32_0 = arith.constant 0 : i32
    %c0_i32_1 = arith.constant 0 : i32
    return %arg0, %c0_i32, %c0_i32_0 : i32, i32, i32
  }
}

</mosaic_0001>

<bundles_post_ra>
// kernel: feature_conditioned_block.6
= control target key start
LH: loop header
LB: loop body
LE: loop exit
PB: predicated region body
PF: predicated region fallthrough
CT: control target
= control target key end

     0   :  { %8 = vsyncpa [#allocation3], 0  ;;  %s1163_s0 = inlined_call_operand.hbm [shape: f32[16,128], index: 0, kind: input, shape index: {}]   ;;  %s1164_s1 = inlined_call_operand.hbm [shape: f32[1,128], index: 1, kind: input, shape index: {}]   ;;  %s1165_s2 = inlined_call_operand.hbm [shape: f32[128,384], index: 2, kind: input, shape index: {}]   ;;  %s1166_s3 = inlined_call_operand.hbm [shape: f32[16,384], index: 3, kind: output, shape index: {}]  }
   0x1   :  { %9 = vsyncpa [#allocation6], 0 }
   0x2   :  { %10 = vsyncpa [#allocation4], 0 }
   0x3   :  { %12 = vsyncpa [#allocation4 + $0x1], 0  ;;  %s880_s12 = smov 0   ;;  %s882_s13 = smov 0  }
   0x4   :  { %s884_s14 = smov 0   ;;  %s886_s15 = smov 0  }
   0x5   :  { %s888_s16 = smov 0   ;;  %s890_s17 = smov 0  }
   0x6 LB: > { %s911_s18 = sadd.s32 4294967295, %s848_s17   ;;  %s477_s19 = sadd.s32 4294967294, %s848_s17   ;;  %s848_s17 = sphi %s890_s17, %s18_s17   ;;  %s844_s16 = sphi %s888_s16, %s1190_s16   ;;  %s840_s15 = sphi %s886_s15, %s1189_s15   ;;  %s836_s14 = sphi %s884_s14, %s1188_s14   ;;  %s832_s13 = sphi %s882_s13, %s1187_s13   ;;  %s828_s12 = sphi %s880_s12, %s1186_s12  }
   0x7   : > { %s84_s20 = sadd.s32 1, %s836_s14  ;;  %p91_p0 = scmp.ne.s32.totalorder %s836_s14, %s832_s13 }
   0x8   : > { %p92_p1 = scmp.eq.s32.totalorder %s848_s17, 0  ;;  %p97_p2 = scmp.ne.s32.totalorder %s832_s13, %s828_s12 }
   0x9   : > { %p1167_p3 = scmp.eq.s32.totalorder %s911_s18, 0  ;;  %p123_p4 = scmp.eq.s32.totalorder %s911_s18, 2 }
   0xa   : > { %p922_p5 = por %p92_p1, %p91_p0  ;;  %p129_p6 = scmp.eq.s32.totalorder %s477_s19, 2 }
   0xb   : > { %p928_p7 = por %p1167_p3, %p97_p2  ;;  %p932_p8 = por %p123_p4, %p91_p0 }
   0xc   : > { %p936_p9 = por %p129_p6, %p97_p2  ;;  %p478_p10 = scmp.ge.s32.totalorder %s848_s17, 1 }
   0xd   : > { %s1172_s22 = scalar_select %p928_p7, 1, 0 }
   0xe   : > { %s1173_s23 = scalar_select %p932_p8, 1, 0 }
   0xf   : > { %s1174_s24 = scalar_select %p936_p9, 1, 0 }
  0x10   : > { %p136_p11 = scmp.lt.s32.totalorder %s848_s17, 4  ;;  %s850_s26 = smov [#allocation2]  }
  0x11   : > { %s151_s27 = sshll.u32 %s850_s26, 4  ;;  %p608_p0 = scmp.lt.s32.totalorder %s848_s17, 3  ;;  %s946_s27 = int_to_ptr.vmem [resolvable:$true] %s151_s27 }
  0x12   : > { %p942_p12 = pnand %p478_p10, %p136_p11  ;;  %s851_s29 = smov [#allocation5]  }
  0x13   : > { %s165_s30 = sshll.u32 %s851_s29, 4  ;;  %p959_p2 = pnand %p608_p0, %p922_p5  ;;  %s963_s30 = int_to_ptr.vmem [resolvable:$true] %s165_s30 }
  0x14   : > { %p591_p13 = pneg %p942_p12  ;;  %s672_s7 = scalar_lea.hbm %s1163_s0, 256 }
  0x15   : > { %p673_p4 = scmp.ne.s32.totalorder %s1163_s0, %s672_s7  ;;  %p679_p5 = scmp.lt.u32.totalorder %s672_s7, %s1163_s0 }
  0x16   : > { %p953_p1 = pnand %p591_p13, %p1167_p3 }
  0x18   : > { %p674_p6 = pneg %p953_p1 }
  0x1a   : > { %p675_p10 = pnand %p674_p6, %p673_p4 }
  0x1c   : > { %p676_p11 = pneg %p675_p10 }
  0x1e   : > { %p681_p13 = pnand %p679_p5, %p676_p11 }
  0x20   : > { %684 = shalt.err (!%p681_p13)
}
  0x21   : > { %s685_s19 = scalar_lea.vmem %s946_s27, 256  ;;  %p693_p8 = scmp.lt.s32.totalorder %s946_s27, %s946_s27 }
  0x22   : > { %p686_p0 = scmp.ne.s32.totalorder %s946_s27, %s685_s19  ;;  %p694_p4 = scmp.lt.s32.totalorder %s685_s19, %s685_s19 }
  0x24   : > { %p688_p3 = pnand %p686_p0, %p674_p6  ;;  %p695_p10 = por %p694_p4, %p693_p8 }
  0x26   : > { %p689_p9 = pneg %p688_p3 }
  0x28   : > { %p696_p7 = pnand %p695_p10, %p689_p9 }
  0x2a   : > { %699 = shalt.err (!%p696_p7)
}
  0x2b   : > { %s1170_s21 = smov 128   ;;  %s853_s26 = smov 8  }
  0x2c   : > { %594 = dma.hbm_to_vmem [thread:$0]  (!%p953_p1), %s1163_s0, 256, %s946_s27, [#allocation3], %s1170_s21, %s1170_s21, %s853_s26  }
  0x2d   : > { %s700_s8 = scalar_lea.hbm %s1164_s1, 16 }
  0x2e   : > { %p701_p3 = scmp.ne.s32.totalorder %s1164_s1, %s700_s8  ;;  %p707_p9 = scmp.lt.u32.totalorder %s700_s8, %s1164_s1 }
  0x30   : > { %p703_p7 = pnand %p701_p3, %p674_p6 }
  0x32   : > { %p704_p8 = pneg %p703_p7 }
  0x34   : > { %p709_p11 = pnand %p707_p9, %p704_p8 }
  0x36   : > { %712 = shalt.err (!%p709_p11)
}
  0x37   : > { %s713_s27 = scalar_lea.vmem %s963_s30, 16  ;;  %s720_s29 = scalar_lea.vmem %s963_s30, 32 }
  0x38   : > { %p714_p5 = scmp.ne.s32.totalorder %s963_s30, %s713_s27  ;;  %p721_p4 = scmp.lt.s32.totalorder %s963_s30, %s963_s30 }
  0x39   : > { %p722_p10 = scmp.lt.s32.totalorder %s720_s29, %s713_s27 }
  0x3a   : > { %p716_p13 = pnand %p714_p5, %p674_p6 }
  0x3b   : > { %p723_p3 = por %p722_p10, %p721_p4 }
  0x3c   : > { %p717_p0 = pneg %p716_p13 }
  0x3e   : > { %p724_p7 = pnand %p723_p3, %p717_p0 }
  0x40   : > { %727 = shalt.err (!%p724_p7)
}
  0x41   : > { %597 = dma.hbm_to_vmem [thread:$0]  (!%p953_p1), %s1164_s1, 16, %s963_s30, [#allocation6]  }
  0x42   : > { %s27_s7 = sadd.s32 1, %s844_s16  ;;  %s176_s8 = sand.u32 1, %s848_s17  }
  0x43   : > { %p28_p6 = scmp.ge.s32.totalorder %s27_s7, 3  ;;  %s178_s9 = sand.u32 1, %s836_s14  }
  0x44   : > { %s483_s10 = sshll.u32 %s844_s16, 7  ;;  %s482_s28 = sshll.u32 %s178_s9, 7 }
  0x45   : > { %s1192_s7 = smov (%p28_p6, %s27_s7), 0  ;;  %s1030_s27 = scalar_lea.hbm %s1165_s2, %s483_s10 }
  0x46   : > { %s81_s30 = ssub.s32 %s844_s16, %s1192_s7  ;;  %s180_s29 = scalar_lea.vmem [#allocation7], %s482_s28 }
  0x47   : > { %p82_p1 = scmp.eq.s32.totalorder %s81_s30, 0  ;;  %s186_s5 = sshll.u32 %s180_s29, 4  ;;  %s1034_s5 = int_to_ptr.vmem [resolvable:$true] %s186_s5 }
  0x48   : > { %s1041_s21 = scalar_lea.sflag [#allocation3], %s176_s8  ;;  %s728_s9 = scalar_lea.hbm %s1030_s27, 2048 }
  0x49   : > { %s1039_s6 = scalar_select %p82_p1, %s836_s14, %s84_s20  }
  0x4a   : > { %p729_p8 = scmp.ne.s32.totalorder %s1030_s27, %s728_s9  ;;  %p730_p9 = pneg %p959_p2 }
  0x4b   : > { %s733_s28 = scalar_lea.hbm %s1165_s2, 6144  ;;  %p734_p13 = scmp.lt.u32.totalorder %s1030_s27, %s1165_s2 }
  0x4c   : > { %p731_p11 = pnand %p730_p9, %p729_p8  ;;  %p735_p0 = scmp.lt.u32.totalorder %s733_s28, %s728_s9 }
  0x4d   : > { %p737_p10 = scmp.lt.u32.totalorder %s728_s9, %s1030_s27 }
  0x4e   : > { %p732_p5 = pneg %p731_p11  ;;  %p736_p4 = por %p735_p0, %p734_p13 }
  0x50   : > { %p738_p3 = por %p737_p10, %p736_p4 }
  0x52   : > { %p739_p7 = pnand %p738_p3, %p732_p5 }
  0x54   : > { %742 = shalt.err (!%p739_p7)
}
  0x55   : > { %s743_s20 = scalar_lea.vmem %s1034_s5, 2048  ;;  %s854_s8 = smov [#allocation7]  }
  0x56   : > { %p744_p6 = scmp.ne.s32.totalorder %s1034_s5, %s743_s20  ;;  %s748_s29 = sshll.u32 %s854_s8, 4  ;;  %s749_s29 = int_to_ptr.vmem [resolvable:$false] %s748_s29 }
  0x57   : > { %s750_s10 = scalar_lea.vmem %s749_s29, 4096  ;;  %p751_p11 = scmp.lt.s32.totalorder %s1034_s5, %s749_s29 }
  0x58   : > { %p746_p1 = pnand %p744_p6, %p730_p9  ;;  %p752_p13 = scmp.lt.s32.totalorder %s750_s10, %s743_s20 }
  0x5a   : > { %p747_p8 = pneg %p746_p1  ;;  %p753_p0 = por %p752_p13, %p751_p11 }
  0x5c   : > { %p754_p4 = pnand %p753_p0, %p747_p8 }
  0x5e   : > { %757 = shalt.err (!%p754_p4)
}
  0x5f   : > { %s855_s9 = smov 384   ;;  %s1178_s11 = smov 128  }
  0x60   : > { %601 = dma.hbm_to_vmem [thread:$0]  (!%p959_p2), %s1030_s27, 2048, %s1034_s5, %s1041_s21, %s855_s9, %s1178_s11, %s853_s26  }
  0x61   : > { %198 = sbr.rel (%p942_p12) target bundleno = 511 (0x1ff), region = 32  ;;  %p1179_p9 = scmp.eq.s32.totalorder (!%p942_p12), %s911_s18, 0 }
  0x68   : > { %811 = dma.done.wait (%p1179_p9), [#allocation3], 256   ;;  %p1180_p5 = pmov %p1179_p9 }
  0x6a   : > { %813 = vsyncadd (%p1180_p5), [#allocation3], 4294967040  ;;  %p1181_p10 = pmov %p1180_p5 }
  0x6b   : > { %p1182_p3 = pmov %p1180_p5 }
  0x6c   : > { %815 = dma.done.wait (%p1181_p10), [#allocation6], 16  }
  0x6d   : > { %817 = vsyncadd (%p1182_p3), [#allocation6], 4294967280  ;;  %s208_s4 = sand.u32 1, %s911_s18   ;;  %s1083_s21 = sand.u32 1, %s832_s13  }
  0x6e   : > { %s487_s25 = sshll.u32 %s1083_s21, 7  ;;  %s209_s26 = scalar_lea.sflag [#allocation3], %s208_s4 }
  0x6f   : > { %s1086_s27 = scalar_lea.vmem [#allocation7], %s487_s25  ;;  %p1183_p12 = scmp.ne.s32.totalorder %s1172_s22, 0 }
  0x71   : > { %819 = dma.done.wait (%p1183_p12), %s209_s26, 2048  }
  0x72   : > { %821 = vsyncadd (%p1183_p12), %s209_s26, 4294965248  ;;  %v237_v0 = vld [vmem:[#allocation2] sm:$0xff]  ;;  %v238_v1 = vld [vmem:[#allocation2 + $0x8] sm:$0xff]  ;;  %s488_s18 = sshll.u32 %s1083_s21, 4  ;;  %s491_s28 = sshll.u32 %s840_s15, 7 }
  0x73   : > { %v263_v2 = vld [vmem:[%s1086_s27] sm:$0xff]  ;;  %v239_v3 = vmul.f32 %v237_v0, %v237_v0  ;;  %v264_v4 = vld [vmem:[%s1086_s27 + $0x8] sm:$0xff]  ;;  %v265_v5 = vld [vmem:[%s1086_s27 + $0x10] sm:$0xff]  ;;  %v240_v9 = vmul.f32 %v238_v1, %v238_v1  ;;  %s234_s22 = scalar_lea.vmem [#allocation8], %s488_s18  ;;  %s1115_s20 = scalar_lea.hbm %s1166_s3, %s491_s28 }
  0x74   : > { %v266_v6 = vld [vmem:[%s1086_s27 + $0x18] sm:$0xff]  ;;  %v547_v7 = vpack.c.bf16 %v264_v4, %v263_v2  ;;  %v267_v10 = vld [vmem:[%s1086_s27 + $0x20] sm:$0xff]  ;;  %v268_v11 = vld [vmem:[%s1086_s27 + $0x28] sm:$0xff]  ;;  %s372_s5 = sshll.u32 %s234_s22, 4  ;;  %s357_s8 = scalar_lea.sflag [#allocation4], %s1083_s21  ;;  %s1110_s5 = int_to_ptr.vmem [resolvable:$true] %s372_s5 }
  0x75   : > { %v551_v8 = vpack.c.bf16 %v266_v6, %v265_v5  ;;  %241 = vadd.xlane.f32.xlu0 %v239_v3  ;;  %v555_v12 = vpack.c.bf16 %v268_v11, %v267_v10  ;;  %v269_v13 = vld [vmem:[%s1086_s27 + $0x30] sm:$0xff]  ;;  %v270_v14 = vld [vmem:[%s1086_s27 + $0x38] sm:$0xff]  ;;  %v271_v16 = vld [vmem:[%s1086_s27 + $0x40] sm:$0xff]  ;;  %s758_s29 = scalar_lea.vmem %s1110_s5, 256  ;;  %p1184_p7 = scmp.ne.s32.totalorder %s1173_s23, 0 }
  0x76   : > { %548 = vmatprep.subr.bf16.mxu0 %v547_v7  ;;  %v559_v15 = vpack.c.bf16 %v270_v14, %v269_v13  ;;  %v272_v17 = vld [vmem:[%s1086_s27 + $0x48] sm:$0xff]  ;;  %v273_v19 = vld [vmem:[%s1086_s27 + $0x50] sm:$0xff]  ;;  %v274_v20 = vld [vmem:[%s1086_s27 + $0x58] sm:$0xff]  ;;  %p759_p2 = scmp.ne.s32.totalorder %s1110_s5, %s758_s29  ;;  %s856_s15 = smov [#allocation8]  }
  0x77   : > { %550 = vmatpush3.bf16.msra.mxu0 %v547_v7  ;;  %v563_v18 = vpack.c.bf16 %v272_v17, %v271_v16  ;;  %v275_v21 = vld [vmem:[%s1086_s27 + $0x60] sm:$0xff]  ;;  %v567_v22 = vpack.c.bf16 %v274_v20, %v273_v19  ;;  %v276_v23 = vld [vmem:[%s1086_s27 + $0x68] sm:$0xff]  ;;  %v277_v25 = vld [vmem:[%s1086_s27 + $0x70] sm:$0xff]  ;;  %s762_s10 = sshll.u32 %s856_s15, 4  ;;  %s763_s10 = int_to_ptr.vmem [resolvable:$false] %s762_s10 }
  0x78   : > { %552 = vmatprep.subr.bf16.mxu0 %v551_v8  ;;  %v571_v24 = vpack.c.bf16 %v276_v23, %v275_v21  ;;  %v278_v26 = vld [vmem:[%s1086_s27 + $0x78] sm:$0xff]  ;;  %p760_p6 = pnand %p759_p2, %p1184_p7  ;;  %s764_s9 = scalar_lea.vmem %s763_s10, 512 }
  0x79   : > { %243 = vadd.xlane.f32.xlu0 %v240_v9  ;;  %v575_v27 = vpack.c.bf16 %v278_v26, %v277_v25  ;;  %v489_v35 = vld [vmem:[#allocation5] ss:$0 sm:$0xff]  ;;  %p765_p8 = scmp.lt.s32.totalorder %s1110_s5, %s763_s10  ;;  %p766_p11 = scmp.lt.s32.totalorder %s764_s9, %s758_s29 }
  0x7a   : > { %p761_p1 = pneg %p760_p6 }
  0x7b   : > { %554 = vmatpush3.bf16.msra.mxu0 %v551_v8  ;;  %p767_p13 = por %p766_p11, %p765_p8 }
  0x7c   : > { %556 = vmatprep.subr.bf16.mxu0 %v555_v12 }
  0x7d   : > { %p768_p0 = pnand %p767_p13, %p761_p1 }
  0x7f   : > { %558 = vmatpush3.bf16.msra.mxu0 %v555_v12 }
  0x80   : > { %560 = vmatprep.subr.bf16.mxu0 %v559_v15 }
  0x83   : > { %562 = vmatpush3.bf16.msra.mxu0 %v559_v15 }
  0x84   : > { %564 = vmatprep.subr.bf16.mxu0 %v563_v18 }
  0x87   : > { %566 = vmatpush3.bf16.msra.mxu0 %v563_v18 }
  0x88   : > { %568 = vmatprep.subr.bf16.mxu0 %v567_v22 }
  0x8b   : > { %570 = vmatpush3.bf16.msra.mxu0 %v567_v22 }
  0x8c   : > { %572 = vmatprep.subr.bf16.mxu0 %v571_v24 }
  0x8f   : > { %574 = vmatpush3.bf16.msra.mxu0 %v571_v24 }
  0x90   : > { %576 = vmatprep.subr.bf16.mxu0 %v575_v27 }
  0x93   : > { %578 = vmatpush3.bf16.msra.mxu0 %v575_v27 }
 0x102   : > { %v242_v28 = vpop.xlane.xlu0 %241 }
 0x103   : > { %v246_v29 = vmul.f32 0.0078125, %v242_v28 }
 0x105   : > { %v248_v30 = vadd.f32 1e-05, %v246_v29 }
 0x106   : > { %v244_v31 = vpop.xlane.xlu0 %243 }
 0x107   : > { %668 = vrsqrt.f32 %v248_v30  ;;  %v247_v32 = vmul.f32 0.0078125, %v244_v31 }
 0x109   : > { %v249_v33 = vadd.f32 1e-05, %v247_v32 }
 0x10b   : > { %670 = vrsqrt.f32 %v249_v33 }
 0x111   : > { %v669_v34 = vpop.eup %668 }
 0x112   : > { %v252_v36 = vmul.f32 %v669_v34, %v237_v0 }
 0x114   : > { %v261_v37 = vmul.f32 %v489_v35, %v252_v36 }
 0x115   : > { %v671_v38 = vpop.eup %670 }
 0x116   : > { %v253_v39 = vmul.f32 %v671_v38, %v238_v1  ;;  %544 = vmatprep.mubr.f32.mxu0 %v261_v37 }
 0x118   : > { %v262_v40 = vmul.f32 %v489_v35, %v253_v39 }
 0x11a   : > { %545 = vmatmul.mubr.f32.vlgmr.msra.gmra.mrb[0].mxu0 %v262_v40 }
 0x1ed   : > { %v546_v41 = vpop.f32.mrb[0].mxu0 }
 0x1ee   : > { %355 = vst [vmem:[%s234_s22 + $0x8] sm:$0xff] %v546_v41  ;;  %v345_v42 = vpop.f32.mrb[1].mxu0 }
 0x1ef   : > { %354 = vst [vmem:[%s234_s22] sm:$0xff] %v345_v42 }
 0x1f0   : > { %771 = shalt.err (!%p768_p0)
}
 0x1f1   : > { %s772_s11 = scalar_lea.hbm %s1115_s20, 256  ;;  %s776_s26 = scalar_lea.hbm %s1166_s3, 768 }
 0x1f2   : > { %p773_p4 = scmp.ne.s32.totalorder %s1115_s20, %s772_s11  ;;  %p777_p10 = scmp.lt.u32.totalorder %s1115_s20, %s1166_s3 }
 0x1f3   : > { %p778_p3 = scmp.lt.u32.totalorder %s776_s26, %s772_s11  ;;  %p780_p2 = scmp.lt.u32.totalorder %s772_s11, %s1115_s20 }
 0x1f4   : > { %p774_p9 = pnand %p773_p4, %p1184_p7 }
 0x1f5   : > { %p779_p12 = por %p778_p3, %p777_p10 }
 0x1f6   : > { %p775_p5 = pneg %p774_p9 }
 0x1f7   : > { %p781_p6 = por %p780_p2, %p779_p12 }
 0x1f9   : > { %p782_p1 = pnand %p781_p6, %p775_p5 }
 0x1fb   : > { %785 = shalt.err (!%p782_p1)
}
 0x1fc   : > { %s857_s22 = smov 128   ;;  %s858_s28 = smov 384  }
 0x1fd   : > { %s859_s19 = smov 8  }
 0x1fe   : > { %589 = dma.vmem_to_hbm [thread:$0]  (%p1184_p7), %s1110_s5, 256, %s1115_s20, %s357_s8, %s857_s22, %s858_s28, %s859_s19  }
 0x1ff PF: > { %p611_p8 = scmp.ge.s32.totalorder %s848_s17, 2  ;;  %s387_s30 = sand.u32 1, %s828_s12  }
 0x200   : > { %p1185_p11 = scmp.ne.s32.totalorder %s1174_s24, 0  ;;  %s388_s29 = scalar_lea.sflag [#allocation4], %s387_s30 }
 0x202   : > { %p603_p13 = pnand %p611_p8, %p1185_p11 }
 0x204   : > { %823 = dma.done.wait (!%p603_p13), %s388_s29, 256  }
 0x205   : > { %825 = vsyncadd (!%p603_p13), %s388_s29, 4294967040  ;;  %s18_s17 = sadd.s32 1, %s848_s17   ;;  %s1186_s12 = smov %s832_s13 }
 0x206   : > { %p15_p0 = scmp.ge.s32.totalorder %s18_s17, 5   ;;  %s1187_s13 = smov %s836_s14 }
 0x207   : > { %s1188_s14 = smov %s1039_s6  ;;  %s1189_s15 = smov %s844_s16 }
 0x208   : > { %s1190_s16 = smov %s1192_s7  ;;  %17 = sbr.rel (!%p15_p0) target bundleno = 6 (0x6), region = 85 }
 0x20f   :  { %393 = vsyncpa [#allocation3], 1 }
 0x210   :  { %395 = vsyncpa [#allocation3 + $0x1], 1 }
 0x211   :  { %396 = vsyncpa [#allocation6], 1 }
 0x212   :  { %397 = vsyncpa [#allocation4], 1 }
 0x213   :  { %399 = vsyncpa [#allocation4 + $0x1], 1 }

// kernel: feature_conditioned_block.9
= control target key start
LH: loop header
LB: loop body
LE: loop exit
PB: predicated region body
PF: predicated region fallthrough
CT: control target
= control target key end

     0   :  { %7 = vsyncpa [#allocation3], 0  ;;  %s388_s0 = inlined_call_operand.hbm [shape: f32[32,128], index: 0, kind: input, shape index: {}]   ;;  %s389_s1 = inlined_call_operand.hbm [shape: f32[128,256], index: 1, kind: input, shape index: {}]   ;;  %s390_s2 = inlined_call_operand.hbm [shape: f32[32,256], index: 2, kind: output, shape index: {}]  }
   0x1   :  { %8 = vsyncpa [#allocation6], 0 }
   0x2   :  { %9 = vsyncpa [#allocation4], 0  ;;  %s319_s9 = smov [#allocation2]   ;;  %s247_s13 = scalar_lea.hbm %s388_s0, 512 }
   0x3   :  { %s15_s10 = sshll.u32 %s319_s9, 4  ;;  %p248_p0 = scmp.ne.s32.totalorder %s388_s0, %s247_s13  ;;  %s16_s10 = int_to_ptr.vmem [resolvable:$true] %s15_s10 }
   0x4   :  { %p251_p1 = scmp.lt.u32.totalorder %s247_s13, %s388_s0 }
   0x6   :  { %p253_p2 = pnand %p251_p1, %p248_p0 }
   0x8   :  { %256 = shalt.err (!%p253_p2)
}
   0x9   :  { %s257_s18 = scalar_lea.vmem %s16_s10, 512  ;;  %p262_p4 = scmp.lt.s32.totalorder %s16_s10, %s16_s10 }
   0xa   :  { %p258_p3 = scmp.ne.s32.totalorder %s16_s10, %s257_s18  ;;  %p263_p5 = scmp.lt.s32.totalorder %s257_s18, %s257_s18 }
   0xc   :  { %p264_p6 = por %p263_p5, %p262_p4 }
   0xe   :  { %p265_p7 = pnand %p264_p6, %p258_p3 }
  0x10   :  { %268 = shalt.err (!%p265_p7)
}
  0x11   :  { %s320_s19 = smov 128   ;;  %s321_s20 = smov 8  }
  0x12   :  { %21 = dma.hbm_to_vmem [thread:$0]  %s388_s0, 512, %s16_s10, [#allocation3], %s320_s19, %s320_s19, %s321_s20  }
  0x13   :  { %s322_s23 = smov [#allocation5]   ;;  %s269_s27 = scalar_lea.hbm %s389_s1, 4096 }
  0x14   :  { %s27_s24 = sshll.u32 %s322_s23, 4  ;;  %p270_p8 = scmp.ne.s32.totalorder %s389_s1, %s269_s27  ;;  %s28_s24 = int_to_ptr.vmem [resolvable:$true] %s27_s24 }
  0x15   :  { %p273_p9 = scmp.lt.u32.totalorder %s269_s27, %s389_s1 }
  0x17   :  { %p275_p10 = pnand %p273_p9, %p270_p8 }
  0x19   :  { %278 = shalt.err (!%p275_p10)
}
  0x1a   :  { %s279_s4 = scalar_lea.vmem %s28_s24, 4096  ;;  %p284_p12 = scmp.lt.s32.totalorder %s28_s24, %s28_s24 }
  0x1b   :  { %p280_p11 = scmp.ne.s32.totalorder %s28_s24, %s279_s4  ;;  %p285_p13 = scmp.lt.s32.totalorder %s279_s4, %s279_s4 }
  0x1d   :  { %p286_p0 = por %p285_p13, %p284_p12 }
  0x1f   :  { %p287_p1 = pnand %p286_p0, %p280_p11 }
  0x21   :  { %290 = shalt.err (!%p287_p1)
}
  0x22   :  { %s323_s0 = smov 256   ;;  %s324_s5 = smov 16  }
  0x23   :  { %33 = dma.hbm_to_vmem [thread:$0]  %s389_s1, 4096, %s28_s24, [#allocation6], %s323_s0, %s323_s0, %s324_s5  }
  0x24   :  { %313 = dma.done.wait [#allocation3], 512  }
  0x25   :  { %314 = vsyncadd [#allocation3], 4294966784 }
  0x26   :  { %315 = dma.done.wait [#allocation6], 4096  }
  0x27   :  { %316 = vsyncadd [#allocation6], 4294963200  ;;  %v325_v0 = vmov 0.0   ;;  %v45_v1 = vld [vmem:[#allocation5 + $0x8] sm:$0xff]  ;;  %v47_v2 = vld [vmem:[#allocation5 + $0x18] sm:$0xff]  ;;  %s326_s1 = smov [#allocation7]  }
  0x28   :  { %140 = vmatprep.mubr.f32.mxu0 %v325_v0  ;;  %152 = vmatprep.mubr.f32.mxu1 %v325_v0  ;;  %v44_v3 = vld [vmem:[#allocation5] sm:$0xff]  ;;  %v191_v4 = vpack.c.bf16 %v47_v2, %v45_v1  ;;  %v46_v5 = vld [vmem:[#allocation5 + $0x10] sm:$0xff]  ;;  %v49_v6 = vld [vmem:[#allocation5 + $0x28] sm:$0xff]  ;;  %s178_s8 = sshll.u32 %s326_s1, 4  ;;  %s179_s8 = int_to_ptr.vmem [resolvable:$true] %s178_s8 }
  0x29   :  { %v51_v7 = vld [vmem:[#allocation5 + $0x38] sm:$0xff]  ;;  %v193_v8 = vpack.c.bf16 %v46_v5, %v44_v3  ;;  %v48_v10 = vld [vmem:[#allocation5 + $0x20] sm:$0xff]  ;;  %v50_v11 = vld [vmem:[#allocation5 + $0x30] sm:$0xff]  ;;  %s291_s9 = scalar_lea.vmem %s179_s8, 1024  ;;  %p296_p3 = scmp.lt.s32.totalorder %s179_s8, %s179_s8 }
  0x2a   :  { %v195_v9 = vpack.c.bf16 %v51_v7, %v49_v6  ;;  %v53_v12 = vld [vmem:[#allocation5 + $0x48] sm:$0xff]  ;;  %192 = vmatprep.subr.bf16.mxu0 %v191_v4  ;;  %223 = vmatprep.subr.bf16.mxu1 %v191_v4  ;;  %v55_v13 = vld [vmem:[#allocation5 + $0x58] sm:$0xff]  ;;  %v197_v14 = vpack.c.bf16 %v50_v11, %v48_v10  ;;  %v52_v16 = vld [vmem:[#allocation5 + $0x40] sm:$0xff]  ;;  %p292_p2 = scmp.ne.s32.totalorder %s179_s8, %s291_s9  ;;  %p297_p4 = scmp.lt.s32.totalorder %s291_s9, %s291_s9 }
  0x2b   :  { %194 = vmatpush1.bf16.msra.mxu0 %v193_v8  ;;  %231 = vmatpush1.bf16.msra.mxu1 %v193_v8  ;;  %v199_v15 = vpack.c.bf16 %v55_v13, %v53_v12  ;;  %v54_v17 = vld [vmem:[#allocation5 + $0x50] sm:$0xff]  ;;  %v57_v18 = vld [vmem:[#allocation5 + $0x68] sm:$0xff]  ;;  %v59_v19 = vld [vmem:[#allocation5 + $0x78] sm:$0xff] }
  0x2c   :  { %196 = vmatprep.subr.bf16.mxu0 %v195_v9  ;;  %224 = vmatprep.subr.bf16.mxu1 %v195_v9  ;;  %v201_v20 = vpack.c.bf16 %v54_v17, %v52_v16  ;;  %v203_v21 = vpack.c.bf16 %v59_v19, %v57_v18  ;;  %v56_v22 = vld [vmem:[#allocation5 + $0x60] sm:$0xff]  ;;  %v58_v23 = vld [vmem:[#allocation5 + $0x70] sm:$0xff]  ;;  %v61_v24 = vld [vmem:[#allocation5 + $0x88] sm:$0xff]  ;;  %p298_p5 = por %p297_p4, %p296_p3 }
  0x2d   :  { %v63_v25 = vld [vmem:[#allocation5 + $0x98] sm:$0xff]  ;;  %v205_v26 = vpack.c.bf16 %v58_v23, %v56_v22  ;;  %v60_v28 = vld [vmem:[#allocation5 + $0x80] sm:$0xff]  ;;  %v62_v29 = vld [vmem:[#allocation5 + $0x90] sm:$0xff] }
  0x2e   :  { %v207_v27 = vpack.c.bf16 %v63_v25, %v61_v24  ;;  %v65_v30 = vld [vmem:[#allocation5 + $0xa8] sm:$0xff]  ;;  %v67_v31 = vld [vmem:[#allocation5 + $0xb8] sm:$0xff]  ;;  %v209_v32 = vpack.c.bf16 %v62_v29, %v60_v28  ;;  %v64_v34 = vld [vmem:[#allocation5 + $0xa0] sm:$0xff]  ;;  %p299_p6 = pnand %p298_p5, %p292_p2 }
  0x2f   :  { %198 = vmatpush1.bf16.msra.mxu0 %v197_v14  ;;  %232 = vmatpush1.bf16.msra.mxu1 %v197_v14  ;;  %v211_v33 = vpack.c.bf16 %v67_v31, %v65_v30  ;;  %v66_v35 = vld [vmem:[#allocation5 + $0xb0] sm:$0xff]  ;;  %v69_v36 = vld [vmem:[#allocation5 + $0xc8] sm:$0xff]  ;;  %v71_v37 = vld [vmem:[#allocation5 + $0xd8] sm:$0xff] }
  0x30   :  { %200 = vmatprep.subr.bf16.mxu0 %v199_v15  ;;  %225 = vmatprep.subr.bf16.mxu1 %v199_v15  ;;  %v213_v38 = vpack.c.bf16 %v66_v35, %v64_v34  ;;  %v215_v39 = vpack.c.bf16 %v71_v37, %v69_v36  ;;  %v68_v40 = vld [vmem:[#allocation5 + $0xc0] sm:$0xff]  ;;  %v70_v41 = vld [vmem:[#allocation5 + $0xd0] sm:$0xff]  ;;  %v73_v42 = vld [vmem:[#allocation5 + $0xe8] sm:$0xff] }
  0x31   :  { %v75_v43 = vld [vmem:[#allocation5 + $0xf8] sm:$0xff]  ;;  %v217_v44 = vpack.c.bf16 %v70_v41, %v68_v40  ;;  %v72_v46 = vld [vmem:[#allocation5 + $0xe0] sm:$0xff]  ;;  %v74_v47 = vld [vmem:[#allocation5 + $0xf0] sm:$0xff] }
  0x32   :  { %v219_v45 = vpack.c.bf16 %v75_v43, %v73_v42  ;;  %v221_v48 = vpack.c.bf16 %v74_v47, %v72_v46  ;;  %v40_v49 = vld [vmem:[#allocation2] sm:$0xff]  ;;  %v42_v50 = vld [vmem:[#allocation2 + $0x10] sm:$0xff]  ;;  %v41_v51 = vld [vmem:[#allocation2 + $0x8] sm:$0xff] }
  0x33   :  { %202 = vmatpush1.bf16.msra.mxu0 %v201_v20  ;;  %233 = vmatpush1.bf16.msra.mxu1 %v201_v20  ;;  %v43_v52 = vld [vmem:[#allocation2 + $0x18] sm:$0xff] }
  0x34   :  { %204 = vmatprep.subr.bf16.mxu0 %v203_v21  ;;  %226 = vmatprep.subr.bf16.mxu1 %v203_v21 }
  0x37   :  { %206 = vmatpush1.bf16.msra.mxu0 %v205_v26  ;;  %234 = vmatpush1.bf16.msra.mxu1 %v205_v26 }
  0x38   :  { %208 = vmatprep.subr.bf16.mxu0 %v207_v27  ;;  %227 = vmatprep.subr.bf16.mxu1 %v207_v27 }
  0x3b   :  { %210 = vmatpush1.bf16.msra.mxu0 %v209_v32  ;;  %235 = vmatpush1.bf16.msra.mxu1 %v209_v32 }
  0x3c   :  { %212 = vmatprep.subr.bf16.mxu0 %v211_v33  ;;  %228 = vmatprep.subr.bf16.mxu1 %v211_v33 }
  0x3f   :  { %214 = vmatpush1.bf16.msra.mxu0 %v213_v38  ;;  %236 = vmatpush1.bf16.msra.mxu1 %v213_v38 }
  0x40   :  { %216 = vmatprep.subr.bf16.mxu0 %v215_v39  ;;  %229 = vmatprep.subr.bf16.mxu1 %v215_v39 }
  0x43   :  { %218 = vmatpush1.bf16.msra.mxu0 %v217_v44  ;;  %237 = vmatpush1.bf16.msra.mxu1 %v217_v44 }
  0x44   :  { %220 = vmatprep.subr.bf16.mxu0 %v219_v45  ;;  %230 = vmatprep.subr.bf16.mxu1 %v219_v45 }
  0x47   :  { %222 = vmatpush1.bf16.msra.mxu0 %v221_v48  ;;  %238 = vmatpush1.bf16.msra.mxu1 %v221_v48 }
  0x4a   :  { %141 = vmatmul.mubr.f32.vlgmr.msra.gmra.mrb[0].mxu0 %v40_v49  ;;  %153 = vmatmul.mubr.f32.vlgmr.msra.gmra.mrb[0].mxu1 %v42_v50 }
  0x4b   :  { %146 = vmatprep.mubr.f32.mxu0 %v325_v0  ;;  %158 = vmatprep.mubr.f32.mxu1 %v325_v0 }
  0x4e   :  { %147 = vmatmul.mubr.f32.gmra.mrb[2].mxu0 %v41_v51  ;;  %159 = vmatmul.mubr.f32.gmra.mrb[2].mxu1 %v43_v52 }
 0x11d   :  { %v142_v53 = vpop.f32.mrb[0].mxu0  ;;  %v154_v54 = vpop.f32.mrb[0].mxu1 }
 0x11e   :  { %165 = vst [vmem:[#allocation7] sm:$0xff] %v142_v53  ;;  %169 = vst [vmem:[#allocation7 + $0x20] sm:$0xff] %v154_v54  ;;  %v144_v55 = vpop.f32.mrb[1].mxu0  ;;  %v156_v56 = vpop.f32.mrb[1].mxu1 }
 0x11f   :  { %166 = vst [vmem:[#allocation7 + $0x8] sm:$0xff] %v144_v55  ;;  %170 = vst [vmem:[#allocation7 + $0x28] sm:$0xff] %v156_v56 }
 0x121   :  { %v148_v57 = vpop.f32.mrb[2].mxu0  ;;  %v160_v58 = vpop.f32.mrb[2].mxu1 }
 0x122   :  { %167 = vst [vmem:[#allocation7 + $0x10] sm:$0xff] %v148_v57  ;;  %171 = vst [vmem:[#allocation7 + $0x30] sm:$0xff] %v160_v58  ;;  %v150_v59 = vpop.f32.mrb[3].mxu0  ;;  %v162_v60 = vpop.f32.mrb[3].mxu1 }
 0x123   :  { %168 = vst [vmem:[#allocation7 + $0x18] sm:$0xff] %v150_v59  ;;  %172 = vst [vmem:[#allocation7 + $0x38] sm:$0xff] %v162_v60 }
 0x124   :  { %302 = shalt.err (!%p299_p6)
}
 0x125   :  { %s303_s12 = scalar_lea.hbm %s390_s2, 1024 }
 0x126   :  { %p304_p7 = scmp.ne.s32.totalorder %s390_s2, %s303_s12  ;;  %p307_p8 = scmp.lt.u32.totalorder %s303_s12, %s390_s2 }
 0x128   :  { %p309_p9 = pnand %p307_p8, %p304_p7 }
 0x12a   :  { %312 = shalt.err (!%p309_p9)
}
 0x12b   :  { %184 = dma.vmem_to_hbm [thread:$0]  %s179_s8, 1024, %s390_s2, [#allocation4], %s323_s0, %s323_s0, %s324_s5  }
 0x12c   :  { %317 = dma.done.wait [#allocation4], 1024  }
 0x12d   :  { %318 = vsyncadd [#allocation4], 4294966272 }
 0x12e   :  { %188 = vsyncpa [#allocation3], 1 }
 0x12f   :  { %189 = vsyncpa [#allocation6], 1 }
 0x130   :  { %190 = vsyncpa [#allocation4], 1 }

// kernel: feature_conditioned_block.8
= control target key start
LH: loop header
LB: loop body
LE: loop exit
PB: predicated region body
PF: predicated region fallthrough
CT: control target
= control target key end

     0   :  { %8 = vsyncpa [#allocation3], 0  ;;  %s471_s0 = inlined_call_operand.hbm [shape: f32[16,128], index: 0, kind: input, shape index: {}]   ;;  %s472_s1 = inlined_call_operand.hbm [shape: f32[1,128], index: 1, kind: input, shape index: {}]   ;;  %s473_s2 = inlined_call_operand.hbm [shape: f32[128,128], index: 2, kind: input, shape index: {}]   ;;  %s474_s3 = inlined_call_operand.hbm [shape: f32[16,128], index: 3, kind: output, shape index: {}]  }
   0x1   :  { %9 = vsyncpa [#allocation6], 0 }
   0x2   :  { %10 = vsyncpa [#allocation4], 0  ;;  %s381_s12 = smov [#allocation5]   ;;  %s382_s14 = smov [#allocation2]  }
   0x3   :  { %s29_s13 = sshll.u32 %s381_s12, 4  ;;  %s16_s15 = sshll.u32 %s382_s14, 4  ;;  %s30_s13 = int_to_ptr.vmem [resolvable:$true] %s29_s13  ;;  %s407_s15 = int_to_ptr.vmem [resolvable:$true] %s16_s15 }
   0x4   :  { %s287_s18 = scalar_lea.hbm %s472_s1, 16 }
   0x5   :  { %p288_p0 = scmp.ne.s32.totalorder %s472_s1, %s287_s18  ;;  %p291_p1 = scmp.lt.u32.totalorder %s287_s18, %s472_s1 }
   0x7   :  { %p293_p2 = pnand %p291_p1, %p288_p0 }
   0x9   :  { %296 = shalt.err (!%p293_p2)
}
   0xa   :  { %s297_s23 = scalar_lea.vmem %s30_s13, 16  ;;  %s301_s24 = scalar_lea.vmem %s30_s13, 32 }
   0xb   :  { %p298_p3 = scmp.ne.s32.totalorder %s30_s13, %s297_s23  ;;  %p302_p4 = scmp.lt.s32.totalorder %s30_s13, %s30_s13 }
   0xc   :  { %p303_p5 = scmp.lt.s32.totalorder %s301_s24, %s297_s23 }
   0xe   :  { %p304_p6 = por %p303_p5, %p302_p4 }
  0x10   :  { %p305_p7 = pnand %p304_p6, %p298_p3 }
  0x12   :  { %308 = shalt.err (!%p305_p7)
}
  0x13   :  { %32 = dma.hbm_to_vmem [thread:$0]  %s472_s1, 16, %s30_s13, [#allocation6]  }
  0x14   :  { %s309_s29 = scalar_lea.hbm %s471_s0, 256 }
  0x15   :  { %p310_p8 = scmp.ne.s32.totalorder %s471_s0, %s309_s29  ;;  %p313_p9 = scmp.lt.u32.totalorder %s309_s29, %s471_s0 }
  0x17   :  { %p315_p10 = pnand %p313_p9, %p310_p8 }
  0x19   :  { %318 = shalt.err (!%p315_p10)
}
  0x1a   :  { %s319_s7 = scalar_lea.vmem %s407_s15, 256  ;;  %p324_p12 = scmp.lt.s32.totalorder %s407_s15, %s407_s15 }
  0x1b   :  { %p320_p11 = scmp.ne.s32.totalorder %s407_s15, %s319_s7  ;;  %p325_p13 = scmp.lt.s32.totalorder %s319_s7, %s319_s7 }
  0x1d   :  { %p326_p0 = por %p325_p13, %p324_p12 }
  0x1f   :  { %p327_p1 = pnand %p326_p0, %p320_p11 }
  0x21   :  { %330 = shalt.err (!%p327_p1)
}
  0x22   :  { %s383_s1 = smov 128   ;;  %s384_s8 = smov 8  }
  0x23   :  { %22 = dma.hbm_to_vmem [thread:$0]  %s471_s0, 256, %s407_s15, [#allocation3], %s383_s1, %s383_s1, %s384_s8  }
  0x24   :  { %s385_s11 = smov [#allocation7]   ;;  %s331_s16 = scalar_lea.hbm %s473_s2, 2048 }
  0x25   :  { %s38_s12 = sshll.u32 %s385_s11, 4  ;;  %p332_p2 = scmp.ne.s32.totalorder %s473_s2, %s331_s16  ;;  %s39_s12 = int_to_ptr.vmem [resolvable:$true] %s38_s12 }
  0x26   :  { %p335_p3 = scmp.lt.u32.totalorder %s331_s16, %s473_s2 }
  0x28   :  { %p337_p4 = pnand %p335_p3, %p332_p2 }
  0x2a   :  { %340 = shalt.err (!%p337_p4)
}
  0x2b   :  { %s341_s21 = scalar_lea.vmem %s39_s12, 2048  ;;  %p346_p6 = scmp.lt.s32.totalorder %s39_s12, %s39_s12 }
  0x2c   :  { %p342_p5 = scmp.ne.s32.totalorder %s39_s12, %s341_s21  ;;  %p347_p7 = scmp.lt.s32.totalorder %s341_s21, %s341_s21 }
  0x2e   :  { %p348_p8 = por %p347_p7, %p346_p6 }
  0x30   :  { %p349_p9 = pnand %p348_p8, %p342_p5 }
  0x32   :  { %352 = shalt.err (!%p349_p9)
}
  0x33   :  { %44 = dma.hbm_to_vmem [thread:$0]  %s473_s2, 2048, %s39_s12, [#allocation6], %s383_s1, %s383_s1, %s384_s8  }
  0x34   :  { %375 = dma.done.wait [#allocation3], 256  }
  0x35   :  { %376 = vsyncadd [#allocation3], 4294967040 }
  0x36   :  { %377 = dma.done.wait [#allocation6], 2064  }
  0x37   :  { %378 = vsyncadd [#allocation6], 4294965232  ;;  %v54_v0 = vld [vmem:[#allocation2] sm:$0xff]  ;;  %v55_v1 = vld [vmem:[#allocation2 + $0x8] sm:$0xff]  ;;  %s386_s2 = smov [#allocation8]  }
  0x38   :  { %v80_v2 = vld [vmem:[#allocation7] sm:$0xff]  ;;  %v56_v3 = vmul.f32 %v54_v0, %v54_v0  ;;  %v81_v4 = vld [vmem:[#allocation7 + $0x8] sm:$0xff]  ;;  %v82_v5 = vld [vmem:[#allocation7 + $0x10] sm:$0xff]  ;;  %v57_v9 = vmul.f32 %v55_v1, %v55_v1  ;;  %s178_s22 = sshll.u32 %s386_s2, 4  ;;  %s179_s22 = int_to_ptr.vmem [resolvable:$true] %s178_s22 }
  0x39   :  { %v83_v6 = vld [vmem:[#allocation7 + $0x18] sm:$0xff]  ;;  %v245_v7 = vpack.c.bf16 %v81_v4, %v80_v2  ;;  %v84_v10 = vld [vmem:[#allocation7 + $0x20] sm:$0xff]  ;;  %v85_v11 = vld [vmem:[#allocation7 + $0x28] sm:$0xff]  ;;  %s353_s23 = scalar_lea.vmem %s179_s22, 256  ;;  %p358_p11 = scmp.lt.s32.totalorder %s179_s22, %s179_s22 }
  0x3a   :  { %v249_v8 = vpack.c.bf16 %v83_v6, %v82_v5  ;;  %58 = vadd.xlane.f32.xlu0 %v56_v3  ;;  %v253_v12 = vpack.c.bf16 %v85_v11, %v84_v10  ;;  %v86_v13 = vld [vmem:[#allocation7 + $0x30] sm:$0xff]  ;;  %v87_v14 = vld [vmem:[#allocation7 + $0x38] sm:$0xff]  ;;  %v88_v16 = vld [vmem:[#allocation7 + $0x40] sm:$0xff]  ;;  %p354_p10 = scmp.ne.s32.totalorder %s179_s22, %s353_s23  ;;  %p359_p12 = scmp.lt.s32.totalorder %s353_s23, %s353_s23 }
  0x3b   :  { %246 = vmatprep.subr.bf16.mxu0 %v245_v7  ;;  %v257_v15 = vpack.c.bf16 %v87_v14, %v86_v13  ;;  %v89_v17 = vld [vmem:[#allocation7 + $0x48] sm:$0xff]  ;;  %v90_v19 = vld [vmem:[#allocation7 + $0x50] sm:$0xff]  ;;  %v91_v20 = vld [vmem:[#allocation7 + $0x58] sm:$0xff] }
  0x3c   :  { %248 = vmatpush3.bf16.msra.mxu0 %v245_v7  ;;  %v261_v18 = vpack.c.bf16 %v89_v17, %v88_v16  ;;  %v92_v21 = vld [vmem:[#allocation7 + $0x60] sm:$0xff]  ;;  %v265_v22 = vpack.c.bf16 %v91_v20, %v90_v19  ;;  %v93_v23 = vld [vmem:[#allocation7 + $0x68] sm:$0xff]  ;;  %v94_v25 = vld [vmem:[#allocation7 + $0x70] sm:$0xff]  ;;  %p360_p13 = por %p359_p12, %p358_p11 }
  0x3d   :  { %250 = vmatprep.subr.bf16.mxu0 %v249_v8  ;;  %v269_v24 = vpack.c.bf16 %v93_v23, %v92_v21  ;;  %v95_v26 = vld [vmem:[#allocation7 + $0x78] sm:$0xff] }
  0x3e   :  { %60 = vadd.xlane.f32.xlu0 %v57_v9  ;;  %v273_v27 = vpack.c.bf16 %v95_v26, %v94_v25  ;;  %v191_v35 = vld [vmem:[#allocation5] ss:$0 sm:$0xff]  ;;  %p361_p0 = pnand %p360_p13, %p354_p10 }
  0x40   :  { %252 = vmatpush3.bf16.msra.mxu0 %v249_v8 }
  0x41   :  { %254 = vmatprep.subr.bf16.mxu0 %v253_v12 }
  0x44   :  { %256 = vmatpush3.bf16.msra.mxu0 %v253_v12 }
  0x45   :  { %258 = vmatprep.subr.bf16.mxu0 %v257_v15 }
  0x48   :  { %260 = vmatpush3.bf16.msra.mxu0 %v257_v15 }
  0x49   :  { %262 = vmatprep.subr.bf16.mxu0 %v261_v18 }
  0x4c   :  { %264 = vmatpush3.bf16.msra.mxu0 %v261_v18 }
  0x4d   :  { %266 = vmatprep.subr.bf16.mxu0 %v265_v22 }
  0x50   :  { %268 = vmatpush3.bf16.msra.mxu0 %v265_v22 }
  0x51   :  { %270 = vmatprep.subr.bf16.mxu0 %v269_v24 }
  0x54   :  { %272 = vmatpush3.bf16.msra.mxu0 %v269_v24 }
  0x55   :  { %274 = vmatprep.subr.bf16.mxu0 %v273_v27 }
  0x58   :  { %276 = vmatpush3.bf16.msra.mxu0 %v273_v27 }
  0xc7   :  { %v59_v28 = vpop.xlane.xlu0 %58 }
  0xc8   :  { %v63_v29 = vmul.f32 0.0078125, %v59_v28 }
  0xca   :  { %v65_v30 = vadd.f32 1e-05, %v63_v29 }
  0xcb   :  { %v61_v31 = vpop.xlane.xlu0 %60 }
  0xcc   :  { %283 = vrsqrt.f32 %v65_v30  ;;  %v64_v32 = vmul.f32 0.0078125, %v61_v31 }
  0xce   :  { %v66_v33 = vadd.f32 1e-05, %v64_v32 }
  0xd0   :  { %285 = vrsqrt.f32 %v66_v33 }
  0xd6   :  { %v284_v34 = vpop.eup %283 }
  0xd7   :  { %v69_v36 = vmul.f32 %v284_v34, %v54_v0 }
  0xd9   :  { %v78_v37 = vmul.f32 %v191_v35, %v69_v36 }
  0xda   :  { %v286_v38 = vpop.eup %285 }
  0xdb   :  { %v70_v39 = vmul.f32 %v286_v38, %v55_v1  ;;  %242 = vmatprep.mubr.f32.mxu0 %v78_v37 }
  0xdd   :  { %v79_v40 = vmul.f32 %v191_v35, %v70_v39 }
  0xdf   :  { %243 = vmatmul.mubr.f32.vlgmr.msra.gmra.mrb[0].mxu0 %v79_v40 }
 0x1b2   :  { %v244_v41 = vpop.f32.mrb[0].mxu0 }
 0x1b3   :  { %172 = vst [vmem:[#allocation8 + $0x8] sm:$0xff] %v244_v41  ;;  %v162_v42 = vpop.f32.mrb[1].mxu0 }
 0x1b4   :  { %171 = vst [vmem:[#allocation8] sm:$0xff] %v162_v42 }
 0x1b5   :  { %364 = shalt.err (!%p361_p0)
}
 0x1b6   :  { %s365_s26 = scalar_lea.hbm %s474_s3, 256 }
 0x1b7   :  { %p366_p1 = scmp.ne.s32.totalorder %s474_s3, %s365_s26  ;;  %p369_p2 = scmp.lt.u32.totalorder %s365_s26, %s474_s3 }
 0x1b9   :  { %p371_p3 = pnand %p369_p2, %p366_p1 }
 0x1bb   :  { %374 = shalt.err (!%p371_p3)
}
 0x1bc   :  { %184 = dma.vmem_to_hbm [thread:$0]  %s179_s22, 256, %s474_s3, [#allocation4], %s383_s1, %s383_s1, %s384_s8  }
 0x1bd   :  { %379 = dma.done.wait [#allocation4], 256  }
 0x1be   :  { %380 = vsyncadd [#allocation4], 4294967040 }
 0x1bf   :  { %188 = vsyncpa [#allocation3], 1 }
 0x1c0   :  { %189 = vsyncpa [#allocation6], 1 }
 0x1c1   :  { %190 = vsyncpa [#allocation4], 1 }

// kernel: feature_conditioned_block.7
= control target key start
LH: loop header
LB: loop body
LE: loop exit
PB: predicated region body
PF: predicated region fallthrough
CT: control target
= control target key end

     0   :  { %s2684_s0 = inlined_call_operand.hbm [shape: f32[2,8,384], index: 0, kind: input, shape index: {}, may-alias: {0,1,2}]   ;;  %s2685_s1 = inlined_call_operand.hbm [shape: f32[2,8,384], index: 1, kind: input, shape index: {}, may-alias: {0,1,2}]   ;;  %s2686_s2 = inlined_call_operand.hbm [shape: f32[2,8,384], index: 2, kind: input, shape index: {}, may-alias: {0,1,2}]   ;;  %s2687_s3 = inlined_call_operand.hbm [shape: f32[8,32], index: 3, kind: input, shape index: {}]   ;;  %s2688_s4 = inlined_call_operand.hbm [shape: f32[8,32], index: 4, kind: input, shape index: {}]   ;;  %s2689_s5 = inlined_call_operand.hbm [shape: f32[128,128], index: 5, kind: input, shape index: {}]   ;;  %s2690_s6 = inlined_call_operand.hbm [shape: f32[2,8,128], index: 6, kind: input, shape index: {}]   ;;  %s2691_s7 = inlined_call_operand.hbm [shape: f32[2,8,128], index: 7, kind: output, shape index: {}]  }
   0x1   :  { %2711 = sst [smem:[#allocation26_spill]] %s2684_s0 }
   0x2   :  { %2712 = sst [smem:[#allocation27_spill]] %s2685_s1 }
   0x3   :  { %2713 = sst [smem:[#allocation28_spill]] %s2687_s3 }
   0x4   :  { %2714 = sst [smem:[#allocation29_spill]] %s2688_s4 }
   0x5   :  { %2715 = sst [smem:[#allocation30_spill]] %s2691_s7 }
   0x6   :  { %12 = vsyncpa [#allocation3], 0 }
   0x7   :  { %14 = vsyncpa [#allocation3 + $0x1], 0 }
   0x8   :  { %15 = vsyncpa [#allocation6], 0 }
   0x9   :  { %17 = vsyncpa [#allocation6 + $0x1], 0 }
   0xa   :  { %18 = vsyncpa [#allocation9], 0 }
   0xb   :  { %19 = vsyncpa [#allocation12], 0 }
   0xc   :  { %20 = vsyncpa [#allocation4], 0 }
   0xd   :  { %22 = vsyncpa [#allocation4 + $0x1], 0  ;;  %s2173_s24 = smov 0   ;;  %s2175_s25 = smov 0  }
   0xe   :  { %s2177_s26 = smov 0   ;;  %s2179_s27 = smov 0  }
   0xf LB: > { %2716 = sst [smem:[#allocation21_spill]] %s2098_s24  ;;  %s2194_s28 = sadd.s32 4294967295, %s2110_s27   ;;  %s2110_s27 = sphi %s2179_s27, %s2757_s27   ;;  %s2106_s26 = sphi %s2177_s26, %s2759_s26   ;;  %s2102_s25 = sphi %s2175_s25, %s2761_s25   ;;  %s2098_s24 = sphi %s2173_s24, %s2760_s24  }
  0x10   : > { %2717 = sst [smem:[#allocation22_spill]] %s2106_s26  ;;  %s1529_s29 = sadd.s32 4294967294, %s2110_s27  }
  0x11   : > { %p48_p0 = scmp.ne.s32.totalorder %s2102_s25, %s2098_s24  ;;  %p2692_p1 = scmp.eq.s32.totalorder %s2194_s28, 0 }
  0x12   : > { %p219_p3 = scmp.eq.s32.totalorder %s1529_s29, 1  ;;  %p1530_p5 = scmp.ge.s32.totalorder %s2110_s27, 1 }
  0x13   : > { %p2203_p4 = por %p2692_p1, %p48_p0  ;;  %p226_p7 = scmp.lt.s32.totalorder %s2110_s27, 3 }
  0x14   : > { %p2208_p6 = por %p219_p3, %p48_p0  ;;  %s2112_s10 = smov [#allocation8]  }
  0x15   : > { %s2718_s30 = scalar_select %p2203_p4, 1, 0 }
  0x16   : > { %s2719_s8 = scalar_select %p2208_p6, 1, 0 }
  0x17   : > { %p2213_p8 = pnand %p1530_p5, %p226_p7  ;;  %s239_s11 = sshll.u32 %s2112_s10, 4  ;;  %s240_s11 = int_to_ptr.vmem [resolvable:$true] %s239_s11 }
  0x18   : > { %2720 = sst [smem:[#allocation23_spill]] %s2719_s8  ;;  %s2221_s12 = sadd.s32 1, %s2110_s27  }
  0x19   : > { %s2721_s9 = scalar_select %p2213_p8, 1, 0 }
  0x1a   : > { %p1723_p10 = pneg %p2213_p8  ;;  %2722 = sst [smem:[#allocation24_spill]] %s2221_s12 }
  0x1b   : > { %s32_s14 = ssub.s32 %s2110_s27, %s2221_s12  ;;  %s35_s16 = sadd.s32 1, %s2106_s26 }
  0x1c   : > { %p2225_p11 = pnand %p1723_p10, %p2692_p1  ;;  %p2231_p12 = scmp.eq.s32.totalorder %s32_s14, 0 }
  0x1d   : > { %s2725_s3 = sld [smem:[#allocation28_spill]] }
  0x1e   : > { %s2723_s13 = scalar_select %p2225_p11, 1, 0 }
  0x1f   : > { %s2724_s15 = scalar_select %p2231_p12, 1, 0 }
  0x20   : > { %p2246_p3 = pneg %p2225_p11 }
  0x22   : > { %s2726_s22 = scalar_select %p2246_p3, 1, 0 }
  0x23   : > { %s1822_s19 = scalar_lea.hbm %s2725_s3, 128 }
  0x24   : > { %p1823_p0 = scmp.ne.s32.totalorder %s2725_s3, %s1822_s19  ;;  %p1829_p10 = scmp.lt.u32.totalorder %s1822_s19, %s2725_s3 }
  0x26   : > { %p1825_p5 = pnand %p2246_p3, %p1823_p0 }
  0x28   : > { %p1826_p7 = pneg %p1825_p5 }
  0x2a   : > { %p1831_p9 = pnand %p1829_p10, %p1826_p7 }
  0x2c   : > { %1834 = shalt.err (!%p1831_p9)
}
  0x2d   : > { %s1835_s10 = scalar_lea.vmem %s240_s11, 128  ;;  %p1843_p6 = scmp.lt.s32.totalorder %s240_s11, %s240_s11 }
  0x2e   : > { %p1836_p1 = scmp.ne.s32.totalorder %s240_s11, %s1835_s10  ;;  %p1844_p4 = scmp.lt.s32.totalorder %s1835_s10, %s1835_s10 }
  0x30   : > { %p1838_p2 = pnand %p1836_p1, %p2246_p3  ;;  %p1845_p8 = por %p1844_p4, %p1843_p6 }
  0x32   : > { %p1839_p13 = pneg %p1838_p2 }
  0x34   : > { %p1846_p12 = pnand %p1845_p8, %p1839_p13 }
  0x36   : > { %1849 = shalt.err (!%p1846_p12)
}
  0x37   : > { %1726 = dma.hbm_to_vmem [thread:$0]  (!%p2225_p11), %s2725_s3, 128, %s240_s11, [#allocation9]  }
  0x38   : > { %p2727_p1 = scmp.ne.s32.totalorder %s2724_s15, 0  ;;  %p43_p2 = scmp.eq.s32.totalorder %s2110_s27, 0 }
  0x39   : > { %p2729_p4 = scmp.ne.s32.totalorder %s2106_s26, %s2102_s25  ;;  %p2730_p6 = scmp.eq.s32.totalorder %s2194_s28, 1 }
  0x3a   : > { %s2265_s18 = scalar_select %p2727_p1, %s2106_s26, %s35_s16  }
  0x3b   : > { %p2273_p8 = por %p2730_p6, %p2729_p4  ;;  %p1753_p9 = scmp.lt.s32.totalorder %s2110_s27, 2 }
  0x3c   : > { %2728 = sst [smem:[#allocation25_spill]] %s2265_s18  ;;  %s2698_s20 = sand.u32 1, %s2110_s27  }
  0x3d   : > { %s2731_s19 = scalar_select %p2273_p8, 1, 0 }
  0x3e   : > { %p2732_p12 = pmov %p2729_p4  ;;  %s276_s21 = sand.u32 1, %s2106_s26  }
  0x3f   : > { %s2284_s23 = smul.u32 384, %s2110_s27  ;;  %s2286_s29 = sshll.u32 %s276_s21, 3 }
  0x40   : > { %p44_p13 = por %p43_p2, %p2732_p12  ;;  %s2734_s0 = sld [smem:[#allocation26_spill]] }
  0x41   : > { %s278_s14 = scalar_lea.vmem [#allocation2], %s2286_s29  ;;  %s2303_s21 = scalar_lea.sflag [#allocation3], %s2698_s20 }
  0x42   : > { %p2288_p0 = pnand %p1753_p9, %p44_p13  ;;  %s286_s17 = sshll.u32 %s278_s14, 4  ;;  %s2299_s17 = int_to_ptr.vmem [resolvable:$true] %s286_s17 }
  0x44   : > { %s2733_s11 = scalar_select %p2288_p0, 1, 0 }
  0x45   : > { %p2309_p7 = pneg %p2288_p0 }
  0x46   : > { %s2296_s10 = scalar_lea.hbm %s2734_s0, %s2284_s23  ;;  %s1855_s14 = scalar_lea.hbm %s2734_s0, 768 }
  0x47   : > { %s1850_s3 = scalar_lea.hbm %s2296_s10, 128  ;;  %p1856_p2 = scmp.lt.u32.totalorder %s2296_s10, %s2734_s0 }
  0x48   : > { %p1851_p5 = scmp.ne.s32.totalorder %s2296_s10, %s1850_s3  ;;  %p1857_p4 = scmp.lt.u32.totalorder %s1855_s14, %s1850_s3 }
  0x49   : > { %s2735_s18 = scalar_select %p2309_p7, 1, 0 }
  0x4a   : > { %p1853_p10 = pnand %p2309_p7, %p1851_p5  ;;  %p1858_p6 = por %p1857_p4, %p1856_p2 }
  0x4b   : > { %p1859_p9 = scmp.lt.u32.totalorder %s1850_s3, %s2296_s10 }
  0x4c   : > { %p1854_p1 = pneg %p1853_p10 }
  0x4d   : > { %p1860_p12 = por %p1859_p9, %p1858_p6 }
  0x4f   : > { %p1861_p13 = pnand %p1860_p12, %p1854_p1 }
  0x51   : > { %1864 = shalt.err (!%p1861_p13)
}
  0x52   : > { %s1865_s20 = scalar_lea.vmem %s2299_s17, 128  ;;  %s2113_s15 = smov [#allocation2]  }
  0x53   : > { %p1866_p5 = scmp.ne.s32.totalorder %s2299_s17, %s1865_s20  ;;  %s1870_s16 = sshll.u32 %s2113_s15, 4  ;;  %s1871_s16 = int_to_ptr.vmem [resolvable:$false] %s1870_s16 }
  0x54   : > { %s1872_s26 = scalar_lea.vmem %s1871_s16, 256  ;;  %p1873_p11 = scmp.lt.s32.totalorder %s2299_s17, %s1871_s16 }
  0x55   : > { %p1868_p10 = pnand %p1866_p5, %p2309_p7  ;;  %p1874_p3 = scmp.lt.s32.totalorder %s1872_s26, %s1865_s20 }
  0x57   : > { %p1869_p8 = pneg %p1868_p10  ;;  %p1875_p2 = por %p1874_p3, %p1873_p11 }
  0x59   : > { %p1876_p4 = pnand %p1875_p2, %p1869_p8 }
  0x5b   : > { %1879 = shalt.err (!%p1876_p4)
}
  0x5c   : > { %1736 = dma.hbm_to_vmem [thread:$0]  (!%p2288_p0), %s2296_s10, 128, %s2299_s17, %s2303_s21  }
  0x5d   : > { %s2736_s1 = sld [smem:[#allocation27_spill]]  ;;  %s297_s20 = scalar_lea.vmem [#allocation5], %s2286_s29 }
  0x5e   : > { %s306_s16 = sshll.u32 %s297_s20, 4  ;;  %s2737_s26 = sand.u32 1, %s2110_s27   ;;  %s307_s16 = int_to_ptr.vmem [resolvable:$true] %s306_s16 }
  0x5f   : > { %s2342_s0 = scalar_lea.sflag [#allocation6], %s2737_s26 }
  0x63   : > { %s1402_s14 = scalar_lea.hbm %s2736_s1, %s2284_s23  ;;  %s1885_s3 = scalar_lea.hbm %s2736_s1, 768 }
  0x64   : > { %s2337_s15 = scalar_lea.hbm %s1402_s14, 128  ;;  %s1910_s8 = scalar_lea.hbm %s1402_s14, 256 }
  0x65   : > { %p1881_p11 = scmp.ne.s32.totalorder %s2337_s15, %s1910_s8  ;;  %p1886_p1 = scmp.lt.u32.totalorder %s2337_s15, %s2736_s1 }
  0x66   : > { %p1887_p6 = scmp.lt.u32.totalorder %s1885_s3, %s1910_s8  ;;  %p1889_p12 = scmp.lt.u32.totalorder %s1910_s8, %s2337_s15 }
  0x67   : > { %p1883_p3 = pnand %p1881_p11, %p2309_p7 }
  0x68   : > { %p1888_p9 = por %p1887_p6, %p1886_p1 }
  0x69   : > { %p1884_p8 = pneg %p1883_p3 }
  0x6a   : > { %p1890_p13 = por %p1889_p12, %p1888_p9 }
  0x6c   : > { %p1891_p5 = pnand %p1890_p13, %p1884_p8 }
  0x6e   : > { %1894 = shalt.err (!%p1891_p5)
}
  0x6f   : > { %s1895_s20 = scalar_lea.vmem %s307_s16, 128  ;;  %s2114_s14 = smov [#allocation5]  }
  0x70   : > { %p1896_p10 = scmp.ne.s32.totalorder %s307_s16, %s1895_s20  ;;  %s1900_s26 = sshll.u32 %s2114_s14, 4  ;;  %s1901_s26 = int_to_ptr.vmem [resolvable:$false] %s1900_s26 }
  0x71   : > { %s1902_s10 = scalar_lea.vmem %s1901_s26, 256  ;;  %p1903_p11 = scmp.lt.s32.totalorder %s307_s16, %s1901_s26 }
  0x72   : > { %p1898_p2 = pnand %p1896_p10, %p2309_p7  ;;  %p1904_p3 = scmp.lt.s32.totalorder %s1902_s10, %s1895_s20 }
  0x74   : > { %p1899_p4 = pneg %p1898_p2  ;;  %p1905_p0 = por %p1904_p3, %p1903_p11 }
  0x76   : > { %p1906_p1 = pnand %p1905_p0, %p1899_p4 }
  0x78   : > { %1909 = shalt.err (!%p1906_p1)
}
  0x79   : > { %p2738_p6 = scmp.ne.s32.totalorder %s2733_s11, 0  ;;  %s2115_s24 = smov [#allocation10]  }
  0x7a   : > { %s250_s8 = sshll.u32 %s2115_s24, 4  ;;  %s2116_s17 = smov [#allocation11]   ;;  %s251_s8 = int_to_ptr.vmem [resolvable:$true] %s250_s8 }
  0x7b   : > { %1739 = dma.hbm_to_vmem [thread:$0]  (!%p2738_p6), %s2337_s15, 128, %s307_s16, %s2342_s0  }
  0x7c   : > { %s260_s3 = sshll.u32 %s2116_s17, 4  ;;  %s2739_s4 = sld [smem:[#allocation29_spill]]  ;;  %s261_s3 = int_to_ptr.vmem [resolvable:$true] %s260_s3 }
  0x7d   : > { %p2740_p8 = scmp.ne.s32.totalorder %s2726_s22, 0 }
  0x82   : > { %s1911_s1 = scalar_lea.hbm %s2739_s4, 128 }
  0x83   : > { %p1912_p0 = scmp.ne.s32.totalorder %s2739_s4, %s1911_s1  ;;  %p1918_p13 = scmp.lt.u32.totalorder %s1911_s1, %s2739_s4 }
  0x85   : > { %p1914_p9 = pnand %p1912_p0, %p2740_p8 }
  0x87   : > { %p1915_p12 = pneg %p1914_p9 }
  0x89   : > { %p1920_p5 = pnand %p1918_p13, %p1915_p12 }
  0x8b   : > { %1923 = shalt.err (!%p1920_p5)
}
  0x8c   : > { %s1924_s15 = scalar_lea.vmem %s251_s8, 128  ;;  %p1932_p11 = scmp.lt.s32.totalorder %s251_s8, %s251_s8 }
  0x8d   : > { %p1925_p10 = scmp.ne.s32.totalorder %s251_s8, %s1924_s15  ;;  %p1933_p3 = scmp.lt.s32.totalorder %s1924_s15, %s1924_s15 }
  0x8f   : > { %p1927_p2 = pnand %p1925_p10, %p2740_p8  ;;  %p1934_p1 = por %p1933_p3, %p1932_p11 }
  0x91   : > { %p1928_p4 = pneg %p1927_p2 }
  0x93   : > { %p1935_p6 = pnand %p1934_p1, %p1928_p4 }
  0x95   : > { %1938 = shalt.err (!%p1935_p6)
}
  0x96   : > { %p2741_p0 = scmp.ne.s32.totalorder %s2723_s13, 0  ;;  %s1939_s17 = scalar_lea.hbm %s2689_s5, 2048 }
  0x97   : > { %p1940_p9 = scmp.ne.s32.totalorder %s2689_s5, %s1939_s17  ;;  %p1946_p6 = scmp.lt.u32.totalorder %s1939_s17, %s2689_s5 }
  0x98   : > { %1729 = dma.hbm_to_vmem [thread:$0]  (!%p2741_p0), %s2739_s4, 128, %s251_s8, [#allocation9]  }
  0x99   : > { %p1942_p12 = pnand %p1940_p9, %p2740_p8 }
  0x9b   : > { %p1943_p13 = pneg %p1942_p12 }
  0x9d   : > { %p1948_p5 = pnand %p1946_p6, %p1943_p13 }
  0x9f   : > { %1951 = shalt.err (!%p1948_p5)
}
  0xa0   : > { %s1952_s10 = scalar_lea.vmem %s261_s3, 2048  ;;  %p1960_p11 = scmp.lt.s32.totalorder %s261_s3, %s261_s3 }
  0xa1   : > { %p1953_p10 = scmp.ne.s32.totalorder %s261_s3, %s1952_s10  ;;  %p1961_p3 = scmp.lt.s32.totalorder %s1952_s10, %s1952_s10 }
  0xa3   : > { %p1955_p2 = pnand %p1953_p10, %p2740_p8  ;;  %p1962_p1 = por %p1961_p3, %p1960_p11 }
  0xa5   : > { %p1956_p4 = pneg %p1955_p2 }
  0xa7   : > { %p1963_p7 = pnand %p1962_p1, %p1956_p4 }
  0xa9   : > { %1966 = shalt.err (!%p1963_p7)
}
  0xaa   : > { %s2117_s8 = smov 128   ;;  %s2118_s15 = smov 8  }
  0xab   : > { %1732 = dma.hbm_to_vmem [thread:$0]  (!%p2741_p0), %s2689_s5, 2048, %s261_s3, [#allocation12], %s2117_s8, %s2117_s8, %s2118_s15  }
  0xac   : > { %s1409_s7 = scalar_lea.hbm %s2686_s2, %s2284_s23  ;;  %s317_s17 = scalar_lea.vmem [#allocation7], %s2286_s29 }
  0xad   : > { %s326_s12 = sshll.u32 %s317_s17, 4  ;;  %s1410_s14 = scalar_lea.hbm %s1409_s7, 256  ;;  %s327_s12 = int_to_ptr.vmem [resolvable:$true] %s326_s12 }
  0xae   : > { %s1997_s26 = scalar_lea.hbm %s1409_s7, 384  ;;  %p2742_p8 = scmp.ne.s32.totalorder %s2735_s18, 0 }
  0xaf   : > { %p1968_p7 = scmp.ne.s32.totalorder %s1410_s14, %s1997_s26  ;;  %s1972_s13 = scalar_lea.hbm %s2686_s2, 768 }
  0xb0   : > { %p1973_p0 = scmp.lt.u32.totalorder %s1410_s14, %s2686_s2  ;;  %p1974_p13 = scmp.lt.u32.totalorder %s1972_s13, %s1997_s26 }
  0xb1   : > { %p1970_p9 = pnand %p1968_p7, %p2742_p8  ;;  %p1976_p5 = scmp.lt.u32.totalorder %s1997_s26, %s1410_s14 }
  0xb2   : > { %p1975_p6 = por %p1974_p13, %p1973_p0 }
  0xb3   : > { %p1971_p12 = pneg %p1970_p9 }
  0xb4   : > { %p1977_p10 = por %p1976_p5, %p1975_p6 }
  0xb6   : > { %p1978_p2 = pnand %p1977_p10, %p1971_p12 }
  0xb8   : > { %1981 = shalt.err (!%p1978_p2)
}
  0xb9   : > { %s1982_s23 = scalar_lea.vmem %s327_s12, 128  ;;  %s2119_s3 = smov [#allocation7]  }
  0xba   : > { %p1983_p4 = scmp.ne.s32.totalorder %s327_s12, %s1982_s23  ;;  %s1987_s8 = sshll.u32 %s2119_s3, 4  ;;  %s1988_s8 = int_to_ptr.vmem [resolvable:$false] %s1987_s8 }
  0xbb   : > { %s1989_s15 = scalar_lea.vmem %s1988_s8, 256  ;;  %p1990_p1 = scmp.lt.s32.totalorder %s327_s12, %s1988_s8 }
  0xbc   : > { %p1985_p11 = pnand %p1983_p4, %p2742_p8  ;;  %p1991_p7 = scmp.lt.s32.totalorder %s1989_s15, %s1982_s23 }
  0xbe   : > { %p1986_p3 = pneg %p1985_p11  ;;  %p1992_p9 = por %p1991_p7, %p1990_p1 }
  0xc0   : > { %p1993_p0 = pnand %p1992_p9, %p1986_p3 }
  0xc2   : > { %1996 = shalt.err (!%p1993_p0)
}
  0xc3   : > { %p2743_p13 = scmp.ne.s32.totalorder %s2733_s11, 0  ;;  %s1542_s4 = sshll.u32 %s2110_s27, 7 }
  0xc4   : > { %s2419_s22 = scalar_lea.hbm %s2690_s6, %s1542_s4  ;;  %s337_s7 = scalar_lea.vmem [#allocation13], %s2286_s29 }
  0xc5   : > { %1742 = dma.hbm_to_vmem [thread:$0]  (!%p2743_p13), %s1410_s14, 128, %s327_s12, %s2342_s0  }
  0xc6   : > { %s344_s17 = sshll.u32 %s337_s7, 4  ;;  %s1998_s26 = scalar_lea.hbm %s2419_s22, 128  ;;  %s345_s17 = int_to_ptr.vmem [resolvable:$true] %s344_s17 }
  0xc7   : > { %p1999_p12 = scmp.ne.s32.totalorder %s2419_s22, %s1998_s26  ;;  %s2003_s12 = scalar_lea.hbm %s2690_s6, 256 }
  0xc8   : > { %p2004_p10 = scmp.lt.u32.totalorder %s2419_s22, %s2690_s6  ;;  %p2005_p2 = scmp.lt.u32.totalorder %s2003_s12, %s1998_s26 }
  0xc9   : > { %p2001_p6 = pnand %p1999_p12, %p2742_p8  ;;  %p2007_p11 = scmp.lt.u32.totalorder %s1998_s26, %s2419_s22 }
  0xca   : > { %p2006_p4 = por %p2005_p2, %p2004_p10 }
  0xcb   : > { %p2002_p5 = pneg %p2001_p6 }
  0xcc   : > { %p2008_p3 = por %p2007_p11, %p2006_p4 }
  0xce   : > { %p2009_p1 = pnand %p2008_p3, %p2002_p5 }
  0xd0   : > { %2012 = shalt.err (!%p2009_p1)
}
  0xd1   : > { %s2013_s29 = scalar_lea.vmem %s345_s17, 128  ;;  %s2120_s13 = smov [#allocation13]  }
  0xd2   : > { %p2014_p7 = scmp.ne.s32.totalorder %s345_s17, %s2013_s29  ;;  %s2018_s16 = sshll.u32 %s2120_s13, 4  ;;  %s2019_s16 = int_to_ptr.vmem [resolvable:$false] %s2018_s16 }
  0xd3   : > { %s2020_s23 = scalar_lea.vmem %s2019_s16, 256  ;;  %p2021_p12 = scmp.lt.s32.totalorder %s345_s17, %s2019_s16 }
  0xd4   : > { %p2016_p9 = pnand %p2014_p7, %p2742_p8  ;;  %p2022_p6 = scmp.lt.s32.totalorder %s2020_s23, %s2013_s29 }
  0xd6   : > { %p2017_p0 = pneg %p2016_p9  ;;  %p2023_p13 = por %p2022_p6, %p2021_p12 }
  0xd8   : > { %p2024_p2 = pnand %p2023_p13, %p2017_p0 }
  0xda   : > { %2027 = shalt.err (!%p2024_p2)
}
  0xdb   : > { %p2744_p10 = scmp.ne.s32.totalorder %s2733_s11, 0  ;;  %p2745_p5 = scmp.ne.s32.totalorder %s2721_s9, 0 }
  0xdc   : > { %s355_s18 = sand.u32 (!%p2745_p5), 1, %s2194_s28   ;;  %s357_s3 = sand.u32 (!%p2745_p5), 1, %s2102_s25  }
  0xdd   : > { %1745 = dma.hbm_to_vmem [thread:$0]  (!%p2744_p10), %s2419_s22, 128, %s345_s17, %s2303_s21  }
  0xde   : > { %353 = sbr.rel (%p2745_p5) target bundleno = 2429 (0x97d), region = 48  ;;  %s2446_s8 = sshll.u32 (!%p2745_p5), %s357_s3, 3 }
  0xdf   : > { %s356_s15 = scalar_lea.sflag (!%p2745_p5), [#allocation3], %s355_s18  ;;  %s359_s4 = scalar_lea.vmem (!%p2745_p5), [#allocation2], %s2446_s8 }
  0xe0   : > { %p2746_p8 = scmp.ne.s32.totalorder (!%p2745_p5), %s2718_s30, 0 }
  0xe5   : > { %2073 = dma.done.wait (%p2746_p8), %s356_s15, 128  }
  0xe6   : > { %2075 = vsyncadd (%p2746_p8), %s356_s15, 4294967168  ;;  %s365_s9 = scalar_lea.sflag [#allocation6], %s355_s18  ;;  %s368_s11 = scalar_lea.vmem [#allocation5], %s2446_s8 }
  0xe7   : > { %2077 = dma.done.wait (%p2746_p8), %s365_s9, 256  }
  0xe8   : > { %2079 = vsyncadd (%p2746_p8), %s365_s9, 4294967040  ;;  %s377_s21 = scalar_lea.vmem [#allocation7], %s2446_s8  ;;  %p2747_p13 = scmp.eq.s32.totalorder %s2194_s28, 0 }
  0xea   : > { %2081 = dma.done.wait (%p2747_p13), [#allocation9], 256   ;;  %p2748_p4 = pmov %p2747_p13 }
  0xec   : > { %2083 = vsyncadd (%p2748_p4), [#allocation9], 4294967040  ;;  %p2749_p11 = pmov %p2748_p4 }
  0xed   : > { %p2750_p3 = pmov %p2748_p4 }
  0xee   : > { %2085 = dma.done.wait (%p2749_p11), [#allocation12], 2048  }
  0xef   : > { %2087 = vsyncadd (%p2750_p3), [#allocation12], 4294965248  ;;  %s398_s24 = scalar_lea.vmem [#allocation13], %s2446_s8 }
  0xf0   : > { %2089 = dma.done.wait (%p2746_p8), %s356_s15, 128  }
  0xf1   : > { %2091 = vsyncadd (%p2746_p8), %s356_s15, 4294967168  ;;  %v2121_v0 = vmov 0.0   ;;  %v2473_v1 = vld [vmem:[%s368_s11] sm:$0xff]  ;;  %v2475_v2 = vld [vmem:[%s359_s4] sm:$0xff]  ;;  %vm2122_vm0 = vmmov 0   ;;  %s2123_s30 = smov 112   ;;  %v449_v36 = vlaneseq }
  0xf2   : > { %1601 = vmatprep.subr.mxu0 %v2121_v0  ;;  %1603 = vmatprep.mubr.msk.f32.mxu0 %vm2122_vm0, %v2121_v0  ;;  %v2482_v3 = vsub.f32 0.0, %v2473_v1  ;;  %v2485_v4 = vsub.f32 0.0, %v2475_v2  ;;  %s2124_s1 = smov 16   ;;  %s2125_s22 = smov 80   ;;  %v2499_v5 = vld [vmem:[#allocation8] sm:$0xff]  ;;  %vm464_vm1 = vcmask 130048  }
  0xf3   : > { %1673 = vmatprep.mubr.msk.f32.mxu1 %vm2122_vm0, %v2121_v0  ;;  %s2126_s7 = smov 32   ;;  %v2503_v8 = vld [vmem:[#allocation10] sm:$0xff]  ;;  %v466_v10 = vmul.f32 %v2499_v5, %v2475_v2  ;;  %v479_v12 = vmul.f32 %v2499_v5, %v2473_v1  ;;  %vm483_vm2 = vcmask 261120   ;;  %s2127_s17 = smov 96   ;;  %v450_v37 = vshrl.u32 %v449_v36, 7  ;;  %v2534_v45 = vld [vmem:[%s377_s21] sm:$0xff] }
  0xf4   : > { %471 = vrot.lane.b32.xlu0 %v2482_v3, %s2123_s30  ;;  %457 = vrot.lane.b32.xlu1 %v2485_v4, %s2123_s30  ;;  %v452_v38 = vand.u32 127, %v449_v36  ;;  %v2128_v39 = vmov -1e+30   ;;  %vm560_vm4 = vcmask 64512   ;;  %s2129_s26 = smov 48   ;;  %s2130_s20 = smov 64  }
  0xf5   : > { %vm1257_vm5 = vcmask 523264   ;;  %vm1259_vm6 = vcmask 785408   ;;  %s1565_s0 = sshll.u32 %s2194_s28, 7  ;;  %s443_s12 = scalar_lea.vmem [#allocation14], %s2446_s8 }
  0xf6   : > { %vm453_vm3 = vcmp.ge.s32.totalorder %v450_v37, %v452_v38  ;;  %s1363_s14 = sshll.u32 %s443_s12, 4  ;;  %s2751_s13 = sld [smem:[#allocation30_spill]]  ;;  %s2641_s14 = int_to_ptr.vmem [resolvable:$true] %s1363_s14 }
  0xf7   : > { %v2528_v40 = vsel %vm453_vm3, 0.0, %v2128_v39  ;;  %s1350_s23 = scalar_lea.sflag [#allocation4], %s357_s3  ;;  %s2028_s18 = scalar_lea.vmem %s2641_s14, 128 }
  0xf8   : > { %475 = vrot.lane.b32.xlu0 %v2473_v1, %s2124_s1  ;;  %461 = vrot.lane.b32.xlu1 %v2475_v2, %s2124_s1  ;;  %p2029_p1 = scmp.ne.s32.totalorder %s2641_s14, %s2028_s18  ;;  %p2752_p7 = scmp.ne.s32.totalorder %s2731_s19, 0 }
  0xf9   : > { %s2132_s28 = smov [#allocation14]  }
  0xfa   : > { %p2030_p9 = pnand %p2029_p1, %p2752_p7  ;;  %s2032_s8 = sshll.u32 %s2132_s28, 4  ;;  %s2033_s8 = int_to_ptr.vmem [resolvable:$false] %s2032_s8 }
  0xfb   : > { %s2034_s15 = scalar_lea.vmem %s2033_s8, 256  ;;  %p2035_p12 = scmp.lt.s32.totalorder %s2641_s14, %s2033_s8 }
  0xfc   : > { %663 = vrot.lane.b32.xlu0 %v2482_v3, %s2125_s22  ;;  %666 = vrot.lane.b32.xlu1 %v2473_v1, %s2123_s30  ;;  %s2639_s16 = scalar_lea.hbm %s2751_s13, %s1565_s0  ;;  %p2031_p0 = pneg %p2030_p9 }
  0xfd   : > { %p2036_p6 = scmp.lt.s32.totalorder %s2034_s15, %s2028_s18 }
  0xff   : > { %p2037_p2 = por %p2036_p6, %p2035_p12 }
 0x100   : > { %645 = vrot.lane.b32.xlu0 %v2485_v4, %s2125_s22  ;;  %648 = vrot.lane.b32.xlu1 %v2475_v2, %s2123_s30 }
 0x101   : > { %p2038_p10 = pnand %p2037_p2, %p2031_p0 }
 0x104   : > { %653 = vrot.lane.b32.xlu0 %v2499_v5, %s2126_s7 }
 0x166   : > { %v472_v6 = vpop.permute.xlu0 %471  ;;  %v458_v7 = vpop.permute.xlu1 %457 }
 0x16a   : > { %v476_v9 = vpop.permute.xlu0 %475  ;;  %v462_v11 = vpop.permute.xlu1 %461 }
 0x16b   : > { %v478_v13 = vsel %vm464_vm1, %v472_v6, %v476_v9  ;;  %v465_v14 = vsel %vm464_vm1, %v458_v7, %v462_v11 }
 0x16c   : > { %v480_v15 = vmul.f32 %v478_v13, %v2503_v8  ;;  %v467_v16 = vmul.f32 %v465_v14, %v2503_v8 }
 0x16e   : > { %v468_v17 = vadd.f32 %v467_v16, %v466_v10  ;;  %v481_v18 = vadd.f32 %v480_v15, %v479_v12  ;;  %v664_v19 = vpop.permute.xlu0 %663  ;;  %v667_v20 = vpop.permute.xlu1 %666 }
 0x16f   : > { %v669_v21 = vsel %vm464_vm1, %v664_v19, %v667_v20 }
 0x170   : > { %v482_v22 = vmul.f32 0.17677669, %v468_v17  ;;  %1602 = vmatpush3.xpose.msk.msra.mxu0 %vm483_vm2, %v481_v18  ;;  %v671_v23 = vmul.f32 %v669_v21, %v2503_v8 }
 0x171   : > { %1606 = vmatprep.subr.mxu0 %v2121_v0 }
 0x172   : > { %v646_v24 = vpop.permute.xlu0 %645  ;;  %v649_v25 = vpop.permute.xlu1 %648  ;;  %673 = vrot.lane.b32.xlu1 %v671_v23, %s2126_s7 }
 0x173   : > { %1604 = vmatmul.mubr.msk.f32.vlgmr.msra.gmra.mrb[0].mxu0 %vm483_vm2, %v482_v22  ;;  %v651_v26 = vsel %vm464_vm1, %v646_v24, %v649_v25 }
 0x174   : > { %v657_v27 = vmul.f32 %v651_v26, %v2503_v8  ;;  %1608 = vmatprep.mubr.msk.f32.mxu0 %vm2122_vm0, %v2121_v0  ;;  %1607 = vmatpush3.msra.mxu0 %v2534_v45 }
 0x175   : > { %1611 = vmatprep.subr.mxu0 %v2121_v0 }
 0x176   : > { %659 = vrot.lane.b32.xlu0 %v657_v27, %s2126_s7  ;;  %v654_v28 = vpop.permute.xlu0 %653 }
 0x177   : > { %v670_v29 = vmul.f32 %v654_v28, %v2473_v1  ;;  %v656_v31 = vmul.f32 %v654_v28, %v2475_v2 }
 0x1e4   : > { %v674_v30 = vpop.permute.xlu1 %673 }
 0x1e5   : > { %v676_v32 = vadd.f32 %v674_v30, %v670_v29 }
 0x1e7   : > { %682 = vrot.lane.b32.xlu0 %v676_v32, %s2127_s17 }
 0x1e8   : > { %v660_v33 = vpop.permute.xlu0 %659 }
 0x1e9   : > { %v662_v34 = vadd.f32 %v660_v33, %v656_v31 }
 0x1eb   : > { %v677_v35 = vmul.f32 0.17677669, %v662_v34 }
 0x1ed   : > { %679 = vrot.lane.b32.xlu0 %v677_v35, %s2127_s17 }
 0x1f1   : > { %863 = vrot.lane.b32.xlu0 %v2482_v3, %s2129_s26 }
 0x1f5   : > { %866 = vrot.lane.b32.xlu0 %v2473_v1, %s2125_s22 }
 0x1f9   : > { %846 = vrot.lane.b32.xlu0 %v2485_v4, %s2129_s26 }
 0x1fd   : > { %849 = vrot.lane.b32.xlu0 %v2475_v2, %s2125_s22 }
 0x201   : > { %853 = vrot.lane.b32.xlu0 %v2499_v5, %s2130_s20 }
 0x246   : > { %v556_v41 = vpop.f32.mrb[0].mxu0 }
 0x247   : > { %v557_v42 = vadd.f32 %v556_v41, %v2528_v40  ;;  %v1605_v43 = vpop.f32.mrb[1].mxu0 }
 0x249   : > { %v561_v44 = vsel %vm560_vm4, %v557_v42, -inf }
 0x24a   : > { %562 = vmax.xlane.f32.xlu1 %v561_v44 }
 0x259   : > { %v683_v46 = vpop.permute.xlu0 %682 }
 0x25f   : > { %v680_v50 = vpop.permute.xlu0 %679 }
 0x263   : > { %v864_v51 = vpop.permute.xlu0 %863 }
 0x267   : > { %v867_v52 = vpop.permute.xlu0 %866 }
 0x268   : > { %v869_v53 = vsel %vm464_vm1, %v864_v51, %v867_v52 }
 0x269   : > { %v871_v54 = vmul.f32 %v869_v53, %v2503_v8 }
 0x26b   : > { %v847_v56 = vpop.permute.xlu0 %846  ;;  %873 = vrot.lane.b32.xlu0 %v871_v54, %s2130_s20 }
 0x26f   : > { %v850_v57 = vpop.permute.xlu0 %849 }
 0x270   : > { %v852_v58 = vsel %vm464_vm1, %v847_v56, %v850_v57 }
 0x271   : > { %v857_v59 = vmul.f32 %v852_v58, %v2503_v8 }
 0x273   : > { %859 = vrot.lane.b32.xlu0 %v857_v59, %s2130_s20  ;;  %v854_v60 = vpop.permute.xlu0 %853 }
 0x274   : > { %v870_v61 = vmul.f32 %v854_v60, %v2473_v1  ;;  %v856_v6 = vmul.f32 %v854_v60, %v2475_v2 }
 0x277   : > { %768 = vrot.lane.b32.xlu0 %v2534_v45, %s2127_s17 }
 0x2d7   : > { %v563_v47 = vpop.xlane.xlu1 %562 }
 0x2d8   : > { %v564_v48 = vsub.f32 %v557_v42, %v563_v47 }
 0x2da   : > { %v565_v49 = vmul.f32 1.442695, %v564_v48 }
 0x2dc   : > { %1806 = vpow2.f32 %v565_v49 }
 0x2dd   : > { %v874_v62 = vpop.permute.xlu0 %873 }
 0x2de   : > { %v876_v63 = vadd.f32 %v874_v62, %v870_v61 }
 0x2e5   : > { %v860_v7 = vpop.permute.xlu0 %859 }
 0x2e6   : > { %v2550_v55 = vpop.eup %1806  ;;  %v862_v9 = vadd.f32 %v860_v7, %v856_v6 }
 0x2e7   : > { %1609 = vmatmul.mubr.msk.f32.vlgmr.msra.gmra.mrb[2].mxu0 %vm560_vm4, %v2550_v55  ;;  %v567_v57 = vsel %vm560_vm4, %v2550_v55, 0.0 }
 0x2e8   : > { %1612 = vmatpush3.xpose.msk.msra.mxu0 %vm483_vm2, %v683_v46  ;;  %1613 = vmatprep.mubr.msk.f32.mxu0 %vm2122_vm0, %v2121_v0  ;;  %v877_v10 = vmul.f32 0.17677669, %v862_v9 }
 0x2e9   : > { %1616 = vmatprep.subr.mxu0 %v2121_v0 }
 0x2ea   : > { %879 = vrot.lane.b32.xlu0 %v877_v10, %s2130_s20  ;;  %v1261_v10 = vld [vmem:[#allocation11] sm:$0xff] }
 0x2eb   : > { %1614 = vmatmul.mubr.msk.f32.vlgmr.msra.gmra.mrb[4].mxu0 %vm483_vm2, %v680_v50 }
 0x2ec   : > { %1618 = vmatprep.mubr.msk.f32.mxu0 %vm2122_vm0, %v2121_v0 }
 0x2ee   : > { %1062 = vrot.lane.b32.xlu0 %v2482_v3, %s2124_s1  ;;  %v769_v3 = vpop.permute.xlu0 %768 }
 0x2ef   : > { %1617 = vmatpush3.msra.mxu0 %v769_v3 }
 0x2f0   : > { %1621 = vmatprep.subr.mxu0 %v2121_v0 }
 0x2f2   : > { %1065 = vrot.lane.b32.xlu0 %v2473_v1, %s2129_s26 }
 0x2f6   : > { %1045 = vrot.lane.b32.xlu0 %v2485_v4, %s2124_s1 }
 0x2fa   : > { %1052 = vrot.lane.b32.xlu0 %v2499_v5, %s2127_s17 }
 0x35c   : > { %v880_v4 = vpop.permute.xlu0 %879 }
 0x360   : > { %v1063_v5 = vpop.permute.xlu0 %1062 }
 0x364   : > { %v1066_v17 = vpop.permute.xlu0 %1065 }
 0x365   : > { %v1068_v18 = vsel %vm464_vm1, %v1063_v5, %v1066_v17  ;;  %v1266_v5 = vld [vmem:[#allocation11 + $0x28] sm:$0xff] }
 0x366   : > { %v1070_v19 = vmul.f32 %v1068_v18, %v2503_v8  ;;  %v1267_v18 = vld [vmem:[#allocation11 + $0x30] sm:$0xff] }
 0x368   : > { %v1046_v24 = vpop.permute.xlu0 %1045 }
 0x3ba   : > { %v2578_v11 = vpop.f32.mrb[2].mxu0 }
 0x3bb   : > { %v1610_v12 = vpop.f32.mrb[3].mxu0 }
 0x3bc   : > { %v1262_v12 = vld [vmem:[#allocation11 + $0x8] sm:$0xff] }
 0x3be   : > { %v754_v13 = vpop.f32.mrb[4].mxu0 }
 0x3bf   : > { %v755_v14 = vadd.f32 %v754_v13, %v2528_v40  ;;  %v1615_v15 = vpop.f32.mrb[5].mxu0  ;;  %v1263_v13 = vld [vmem:[#allocation11 + $0x10] sm:$0xff] }
 0x3c0   : > { %v1677_v15 = vpack.c.bf16 %v1262_v12, %v1261_v10 }
 0x3c1   : > { %v758_v16 = vsel %vm560_vm4, %v755_v14, -inf }
 0x3c2   : > { %759 = vmax.xlane.f32.xlu1 %v758_v16  ;;  %v1264_v16 = vld [vmem:[#allocation11 + $0x18] sm:$0xff] }
 0x3c3   : > { %v1680_v3 = vpack.c.bf16 %v1264_v16, %v1263_v13 }
 0x3d3   : > { %882 = vrot.lane.b32.xlu1 %v876_v63, %s2130_s20 }
 0x3d7   : > { %1048 = vrot.lane.b32.xlu1 %v2475_v2, %s2129_s26 }
 0x3db   : > { %1072 = vrot.lane.b32.xlu1 %v1070_v19, %s2127_s17  ;;  %v1268_v19 = vld [vmem:[#allocation11 + $0x38] sm:$0xff] }
 0x44f   : > { %v760_v20 = vpop.xlane.xlu1 %759 }
 0x450   : > { %v761_v21 = vsub.f32 %v755_v14, %v760_v20  ;;  %v2131_v14 = vmov 0.0|0.0   ;;  %v1686_v20 = vpack.c.bf16 %v1268_v19, %v1267_v18 }
 0x451   : > { %1676 = vmatprep.subr.bf16.mxu1 %v2131_v14 }
 0x452   : > { %v762_v22 = vmul.f32 1.442695, %v761_v21  ;;  %1678 = vmatpush3.bf16.msra.mxu1 %v1677_v15  ;;  %v1269_v21 = vld [vmem:[#allocation11 + $0x40] sm:$0xff] }
 0x453   : > { %v883_v23 = vpop.permute.xlu1 %882  ;;  %1679 = vmatprep.subr.bf16.mxu1 %v2131_v14 }
 0x454   : > { %1808 = vpow2.f32 %v762_v22  ;;  %v1270_v22 = vld [vmem:[#allocation11 + $0x48] sm:$0xff] }
 0x456   : > { %1681 = vmatpush3.bf16.msra.mxu1 %v1680_v3 }
 0x457   : > { %v1049_v25 = vpop.permute.xlu1 %1048  ;;  %1682 = vmatprep.subr.bf16.mxu1 %v2131_v14 }
 0x458   : > { %v1051_v26 = vsel %vm464_vm1, %v1046_v24, %v1049_v25  ;;  %v1271_v24 = vld [vmem:[#allocation11 + $0x50] sm:$0xff]  ;;  %v1272_v25 = vld [vmem:[#allocation11 + $0x58] sm:$0xff] }
 0x459   : > { %v1056_v27 = vmul.f32 %v1051_v26, %v2503_v8  ;;  %v1053_v8 = vpop.permute.xlu0 %1052  ;;  %v1692_v26 = vpack.c.bf16 %v1272_v25, %v1271_v24 }
 0x45a   : > { %v1069_v30 = vmul.f32 %v1053_v8, %v2473_v1  ;;  %v1055_v32 = vmul.f32 %v1053_v8, %v2475_v2 }
 0x45b   : > { %1058 = vrot.lane.b32.xlu0 %v1056_v27, %s2127_s17  ;;  %v1073_v29 = vpop.permute.xlu1 %1072  ;;  %v1273_v27 = vld [vmem:[#allocation11 + $0x60] sm:$0xff] }
 0x45c   : > { %v1075_v31 = vadd.f32 %v1073_v29, %v1069_v30  ;;  %v1275_v29 = vld [vmem:[#allocation11 + $0x70] sm:$0xff]  ;;  %v1276_v30 = vld [vmem:[#allocation11 + $0x78] sm:$0xff] }
 0x45e   : > { %v1809_v28 = vpop.eup %1808 }
 0x45f   : > { %1619 = vmatmul.mubr.msk.f32.vlgmr.msra.gmra.mrb[6].mxu0 %vm560_vm4, %v1809_v28  ;;  %967 = vrot.lane.b32.xlu0 %v2534_v45, %s2130_s20  ;;  %v764_v54 = vsel %vm560_vm4, %v1809_v28, 0.0  ;;  %v1274_v28 = vld [vmem:[#allocation11 + $0x68] sm:$0xff] }
 0x460   : > { %1622 = vmatpush3.xpose.msk.msra.mxu0 %vm483_vm2, %v883_v23  ;;  %1623 = vmatprep.mubr.msk.f32.mxu0 %vm2122_vm0, %v2121_v0  ;;  %v1689_v23 = vpack.c.bf16 %v1270_v22, %v1269_v21  ;;  %v1695_v8 = vpack.c.bf16 %v1274_v28, %v1273_v27 }
 0x461   : > { %1626 = vmatprep.subr.mxu0 %v2121_v0 }
 0x463   : > { %1624 = vmatmul.mubr.msk.f32.vlgmr.msra.gmra.mrb[8].mxu0 %vm483_vm2, %v880_v4  ;;  %1081 = vrot.lane.b32.xlu0 %v1075_v31, %s2126_s7  ;;  %v1265_v4 = vld [vmem:[#allocation11 + $0x20] sm:$0xff]  ;;  %v1698_v31 = vpack.c.bf16 %v1276_v30, %v1275_v29 }
 0x464   : > { %1628 = vmatprep.mubr.msk.f32.mxu0 %vm2122_vm0, %v2121_v0  ;;  %v1683_v17 = vpack.c.bf16 %v1266_v5, %v1265_v4 }
 0x466   : > { %1684 = vmatpush3.bf16.msra.mxu1 %v1683_v17 }
 0x467   : > { %1685 = vmatprep.subr.bf16.mxu1 %v2131_v14 }
 0x46a   : > { %1687 = vmatpush3.bf16.msra.mxu1 %v1686_v20 }
 0x46b   : > { %1688 = vmatprep.subr.bf16.mxu1 %v2131_v14 }
 0x46e   : > { %1690 = vmatpush3.bf16.msra.mxu1 %v1689_v23 }
 0x46f   : > { %1691 = vmatprep.subr.bf16.mxu1 %v2131_v14 }
 0x472   : > { %1693 = vmatpush3.bf16.msra.mxu1 %v1692_v26 }
 0x473   : > { %1694 = vmatprep.subr.bf16.mxu1 %v2131_v14 }
 0x476   : > { %1696 = vmatpush3.bf16.msra.mxu1 %v1695_v8 }
 0x477   : > { %1697 = vmatprep.subr.bf16.mxu1 %v2131_v14 }
 0x47a   : > { %1699 = vmatpush3.bf16.msra.mxu1 %v1698_v31 }
 0x4cd   : > { %v1059_v33 = vpop.permute.xlu0 %1058 }
 0x4ce   : > { %v1061_v34 = vadd.f32 %v1059_v33, %v1055_v32 }
 0x4d0   : > { %v1076_v35 = vmul.f32 0.17677669, %v1061_v34 }
 0x4d1   : > { %v968_v1 = vpop.permute.xlu0 %967 }
 0x4d2   : > { %1078 = vrot.lane.b32.xlu0 %v1076_v35, %s2126_s7  ;;  %1627 = vmatpush3.msra.mxu0 %v968_v1 }
 0x4d3   : > { %1631 = vmatprep.subr.mxu0 %v2121_v0 }
 0x4d5   : > { %v1082_v47 = vpop.permute.xlu0 %1081 }
 0x532   : > { %v840_v36 = vpop.f32.mrb[6].mxu0 }
 0x533   : > { %v1620_v37 = vpop.f32.mrb[7].mxu0 }
 0x536   : > { %v954_v38 = vpop.f32.mrb[8].mxu0 }
 0x537   : > { %v955_v39 = vadd.f32 %v954_v38, %v2528_v40  ;;  %v1625_v41 = vpop.f32.mrb[9].mxu0 }
 0x539   : > { %v958_v42 = vsel %vm560_vm4, %v955_v39, -inf }
 0x53a   : > { %959 = vmax.xlane.f32.xlu1 %v958_v42 }
 0x54b   : > { %1166 = vrot.lane.b32.xlu1 %v2534_v45, %s2126_s7  ;;  %v1079_v45 = vpop.permute.xlu0 %1078 }
 0x5c7   : > { %v960_v2 = vpop.xlane.xlu1 %959 }
 0x5c8   : > { %v961_v43 = vsub.f32 %v955_v39, %v960_v2 }
 0x5ca   : > { %v962_v44 = vmul.f32 1.442695, %v961_v43 }
 0x5cc   : > { %1810 = vpow2.f32 %v962_v44 }
 0x5d6   : > { %v1811_v46 = vpop.eup %1810 }
 0x5d7   : > { %1629 = vmatmul.mubr.msk.f32.vlgmr.msra.gmra.mrb[10].mxu0 %vm560_vm4, %v1811_v46  ;;  %v964_v56 = vsel %vm560_vm4, %v1811_v46, 0.0  ;;  %v1277_v46 = vld [vmem:[%s398_s24] sm:$0xff] }
 0x5d8   : > { %1632 = vmatpush3.xpose.msk.msra.mxu0 %vm483_vm2, %v1082_v47  ;;  %1633 = vmatprep.mubr.msk.f32.mxu0 %vm2122_vm0, %v2121_v0 }
 0x5d9   : > { %1636 = vmatprep.subr.mxu0 %v2121_v0 }
 0x5db   : > { %1634 = vmatmul.mubr.msk.f32.vlgmr.msra.gmra.mrb[12].mxu0 %vm483_vm2, %v1079_v45 }
 0x5dc   : > { %1638 = vmatprep.mubr.msk.f32.mxu0 %vm2122_vm0, %v2121_v0  ;;  %v1167_v0 = vpop.permute.xlu1 %1166 }
 0x5dd   : > { %1637 = vmatpush3.msra.mxu0 %v1167_v0 }
 0x6aa   : > { %v1039_v48 = vpop.f32.mrb[10].mxu0 }
 0x6ab   : > { %v1630_v49 = vpop.f32.mrb[11].mxu0 }
 0x6ae   : > { %v1153_v50 = vpop.f32.mrb[12].mxu0 }
 0x6af   : > { %v1154_v51 = vadd.f32 %v1153_v50, %v2528_v40  ;;  %v1635_v52 = vpop.f32.mrb[13].mxu0 }
 0x6b1   : > { %v1157_v53 = vsel %vm560_vm4, %v1154_v51, -inf }
 0x6b2   : > { %1158 = vmax.xlane.f32.xlu0 %v1157_v53 }
 0x6b6   : > { %765 = vadd.xlane.f32.xlu0 %v764_v54 }
 0x6ba   : > { %965 = vadd.xlane.f32.xlu0 %v964_v56 }
 0x6be   : > { %568 = vadd.xlane.f32.xlu0 %v567_v57 }
 0x73f   : > { %v1159_v58 = vpop.xlane.xlu0 %1158 }
 0x740   : > { %v1160_v59 = vsub.f32 %v1154_v51, %v1159_v58 }
 0x742   : > { %v1161_v60 = vmul.f32 1.442695, %v1160_v59 }
 0x743   : > { %v766_v40 = vpop.xlane.xlu0 %765 }
 0x744   : > { %1812 = vpow2.f32 %v1161_v60 }
 0x745   : > { %1814 = vrcp.f32 %v766_v40 }
 0x747   : > { %v966_v61 = vpop.xlane.xlu0 %965 }
 0x748   : > { %1816 = vrcp.f32 %v966_v61 }
 0x74b   : > { %v569_v37 = vpop.xlane.xlu0 %568 }
 0x74e   : > { %v1813_v62 = vpop.eup %1812 }
 0x74f   : > { %v1815_v63 = vpop.eup %1814  ;;  %1639 = vmatmul.mubr.msk.f32.vlgmr.msra.gmra.mrb[14].mxu0 %vm560_vm4, %v1813_v62  ;;  %v1163_v6 = vsel %vm560_vm4, %v1813_v62, 0.0 }
 0x750   : > { %1164 = vadd.xlane.f32.xlu1 %v1163_v6  ;;  %v845_v7 = vmul.f32 %v1815_v63, %v840_v36 }
 0x752   : > { %v1817_v55 = vpop.eup %1816  ;;  %1245 = vrot.lane.b32.xlu0 %v845_v7, %s2126_s7 }
 0x753   : > { %v1044_v9 = vmul.f32 %v1817_v55, %v1039_v48 }
 0x756   : > { %1249 = vrot.lane.b32.xlu0 %v1044_v9, %s2130_s20 }
 0x7c4   : > { %v1246_v38 = vpop.permute.xlu0 %1245 }
 0x7c8   : > { %v1250_v41 = vpop.permute.xlu0 %1249 }
 0x7dd   : > { %v1165_v32 = vpop.xlane.xlu1 %1164 }
 0x7de   : > { %1818 = vrcp.f32 %v1165_v32 }
 0x7df   : > { %1820 = vrcp.f32 %v569_v37 }
 0x7e8   : > { %v1819_v33 = vpop.eup %1818 }
 0x7e9   : > { %v1821_v39 = vpop.eup %1820 }
 0x7ea   : > { %v644_v42 = vmul.f32 %v1821_v39, %v2578_v11 }
 0x7ec   : > { %v1256_v1 = vsel %vm483_vm2, %v644_v42, %v1246_v38 }
 0x7ed   : > { %v1258_v2 = vsel %vm1257_vm5, %v1256_v1, %v1250_v41 }
 0x822   : > { %v1238_v34 = vpop.f32.mrb[14].mxu0 }
 0x823   : > { %v1243_v35 = vmul.f32 %v1819_v33, %v1238_v34  ;;  %v1640_v36 = vpop.f32.mrb[15].mxu0 }
 0x825   : > { %1253 = vrot.lane.b32.xlu0 %v1243_v35, %s2127_s17 }
 0x897   : > { %v1254_v43 = vpop.permute.xlu0 %1253 }
 0x898   : > { %v1260_v44 = vsel %vm1259_vm6, %v1258_v2, %v1254_v43 }
 0x899   : > { %1674 = vmatmul.mubr.f32.vlgmr.msra.gmra.mrb[0].mxu1 %v1260_v44 }
 0x96c   : > { %v1344_v47 = vpop.f32.mrb[0].mxu1 }
 0x96d   : > { %v1345_v45 = vadd.f32 %v1344_v47, %v1277_v46  ;;  %v1675_v48 = vpop.f32.mrb[1].mxu1 }
 0x96f   : > { %1348 = vst [vmem:[%s443_s12] sm:$0xff] %v1345_v45 }
 0x970   : > { %2041 = shalt.err (!%p2038_p10)
}
 0x971   : > { %s2042_s3 = scalar_lea.hbm %s2639_s16, 128  ;;  %s2046_s11 = scalar_lea.hbm %s2751_s13, 256 }
 0x972   : > { %p2043_p5 = scmp.ne.s32.totalorder %s2639_s16, %s2042_s3  ;;  %p2047_p4 = scmp.lt.u32.totalorder %s2639_s16, %s2751_s13 }
 0x973   : > { %p2048_p11 = scmp.lt.u32.totalorder %s2046_s11, %s2042_s3  ;;  %p2050_p1 = scmp.lt.u32.totalorder %s2042_s3, %s2639_s16 }
 0x974   : > { %p2044_p8 = pnand %p2043_p5, %p2752_p7 }
 0x975   : > { %p2049_p3 = por %p2048_p11, %p2047_p4 }
 0x976   : > { %p2045_p13 = pneg %p2044_p8 }
 0x977   : > { %p2051_p9 = por %p2050_p1, %p2049_p3 }
 0x979   : > { %p2052_p0 = pnand %p2051_p9, %p2045_p13 }
 0x97b   : > { %2055 = shalt.err (!%p2052_p0)
}
 0x97c   : > { %1721 = dma.vmem_to_hbm [thread:$0]  (%p2752_p7), %s2641_s14, 128, %s2639_s16, %s1350_s23  }
 0x97d PF: > { %s2753_s30 = sld [smem:[#allocation21_spill]]  ;;  %s2754_s1 = sld [smem:[#allocation23_spill]] }
 0x97e   : > { %p2756_p6 = scmp.ge.s32.totalorder %s2110_s27, 2 }
 0x983   : > { %s1375_s22 = sand.u32 1, %s2753_s30   ;;  %p2755_p12 = scmp.ne.s32.totalorder %s2754_s1, 0 }
 0x984   : > { %s1376_s7 = scalar_lea.sflag [#allocation4], %s1375_s22 }
 0x985   : > { %p1747_p2 = pnand %p2756_p6, %p2755_p12 }
 0x987   : > { %2093 = dma.done.wait (!%p1747_p2), %s1376_s7, 128  }
 0x988   : > { %2095 = vsyncadd (!%p1747_p2), %s1376_s7, 4294967168  ;;  %s2757_s27 = sld [smem:[#allocation24_spill]]  ;;  %s2758_s17 = sld [smem:[#allocation22_spill]] }
 0x989   : > { %s2759_s26 = sld [smem:[#allocation25_spill]]  ;;  %s2760_s24 = smov %s2102_s25 }
 0x98e   : > { %p25_p10 = scmp.ge.s32.totalorder %s2757_s27, 4   ;;  %s2761_s25 = smov %s2758_s17 }
 0x990   :  { %27 = sbr.rel (!%p25_p10) target bundleno = 15 (0xf), region = 140 }
 0x997   :  { %1381 = vsyncpa [#allocation3], 1 }
 0x998   :  { %1383 = vsyncpa [#allocation3 + $0x1], 1 }
 0x999   :  { %1384 = vsyncpa [#allocation6], 1 }
 0x99a   :  { %1386 = vsyncpa [#allocation6 + $0x1], 1 }
 0x99b   :  { %1387 = vsyncpa [#allocation9], 1 }
 0x99c   :  { %1388 = vsyncpa [#allocation12], 1 }
 0x99d   :  { %1389 = vsyncpa [#allocation4], 1 }
 0x99e   :  { %1391 = vsyncpa [#allocation4 + $0x1], 1 }

// kernel: feature_conditioned_block.11
= control target key start
LH: loop header
LB: loop body
LE: loop exit
PB: predicated region body
PF: predicated region fallthrough
CT: control target
= control target key end

     0   :  { %s1903_s0 = inlined_call_operand.hbm [shape: f32[16,128], index: 0, kind: input, shape index: {}]   ;;  %s1904_s1 = inlined_call_operand.hbm [shape: f32[1,128], index: 1, kind: input, shape index: {}]   ;;  %s1905_s2 = inlined_call_operand.hbm [shape: f32[128,512], index: 2, kind: input, shape index: {}]   ;;  %s1906_s3 = inlined_call_operand.hbm [shape: f32[128,512], index: 3, kind: input, shape index: {}]   ;;  %s1907_s4 = inlined_call_operand.hbm [shape: f32[512,128], index: 4, kind: input, shape index: {}]   ;;  %s1908_s5 = inlined_call_operand.hbm [shape: f32[16,128], index: 5, kind: output, shape index: {}]  }
   0x1   :  { %1922 = sst [smem:[#allocation18_spill]] %s1903_s0 }
   0x2   :  { %1923 = sst [smem:[#allocation19_spill]] %s1905_s2 }
   0x3   :  { %10 = vsyncpa [#allocation4], 0 }
   0x4   :  { %11 = vsyncpa [#allocation7], 0 }
   0x5   :  { %12 = vsyncpa [#allocation5], 0  ;;  %s1482_s18 = smov 0   ;;  %s1484_s19 = smov 0  }
   0x6   :  { %s1486_s20 = smov 0   ;;  %s1488_s21 = smov 0  }
   0x7   :  { %s1490_s22 = smov 0   ;;  %s1492_s23 = smov 0  }
   0x8 LB: > { %s1511_s24 = sadd.s32 4294967295, %s1436_s23   ;;  %s84_s25 = sadd.s32 1, %s1424_s20  ;;  %s1436_s23 = sphi %s1492_s23, %s18_s23   ;;  %s1432_s22 = sphi %s1490_s22, %s1953_s22   ;;  %s1428_s21 = sphi %s1488_s21, %s1952_s21   ;;  %s1424_s20 = sphi %s1486_s20, %s1951_s20   ;;  %s1420_s19 = sphi %s1484_s19, %s1950_s19   ;;  %s1416_s18 = sphi %s1482_s18, %s1949_s18  }
   0x9   : > { %p91_p0 = scmp.ne.s32.totalorder %s1424_s20, %s1420_s19  ;;  %p92_p1 = scmp.eq.s32.totalorder %s1436_s23, 0 }
   0xa   : > { %p97_p2 = scmp.ne.s32.totalorder %s1420_s19, %s1416_s18  ;;  %p1909_p3 = scmp.eq.s32.totalorder %s1511_s24, 0 }
   0xb   : > { %p93_p4 = por %p92_p1, %p91_p0  ;;  %p898_p5 = scmp.ge.s32.totalorder %s1436_s23, 1 }
   0xc   : > { %p1522_p6 = por %p1909_p3, %p97_p2  ;;  %p186_p7 = scmp.lt.s32.totalorder %s1436_s23, 3 }
   0xd   : > { %s1438_s28 = smov [#allocation3]   ;;  %p1118_p10 = scmp.lt.s32.totalorder %s1436_s23, 2 }
   0xe   : > { %s1924_s26 = scalar_select %p1522_p6, 1, 0 }
   0xf   : > { %p1527_p8 = pnand %p898_p5, %p186_p7  ;;  %s201_s29 = sshll.u32 %s1438_s28, 4  ;;  %s202_s29 = int_to_ptr.vmem [resolvable:$true] %s201_s29 }
  0x10   : > { %p1540_p12 = pnand %p1118_p10, %p93_p4  ;;  %s27_s7 = sadd.s32 1, %s1432_s22 }
  0x11   : > { %s1925_s27 = scalar_select %p1527_p8, 1, 0 }
  0x12   : > { %p1099_p9 = pneg %p1527_p8  ;;  %s1928_s0 = sld [smem:[#allocation18_spill]] }
  0x13   : > { %s1927_s6 = scalar_select %p1540_p12, 1, 0 }
  0x14   : > { %p1536_p11 = pnand %p1099_p9, %p1909_p3 }
  0x16   : > { %s1926_s30 = scalar_select %p1536_p11, 1, 0 }
  0x17   : > { %p1915_p0 = pneg %p1536_p11 }
  0x18   : > { %s1202_s10 = scalar_lea.hbm %s1928_s0, 256 }
  0x19   : > { %p1203_p13 = scmp.ne.s32.totalorder %s1928_s0, %s1202_s10  ;;  %p1209_p4 = scmp.lt.u32.totalorder %s1202_s10, %s1928_s0 }
  0x1b   : > { %p1205_p1 = pnand %p1915_p0, %p1203_p13 }
  0x1d   : > { %p1206_p2 = pneg %p1205_p1 }
  0x1f   : > { %p1211_p5 = pnand %p1209_p4, %p1206_p2 }
  0x21   : > { %1214 = shalt.err (!%p1211_p5)
}
  0x22   : > { %s1215_s15 = scalar_lea.vmem %s202_s29, 256  ;;  %p1223_p3 = scmp.lt.s32.totalorder %s202_s29, %s202_s29 }
  0x23   : > { %p1216_p7 = scmp.ne.s32.totalorder %s202_s29, %s1215_s15  ;;  %p1224_p6 = scmp.lt.s32.totalorder %s1215_s15, %s1215_s15 }
  0x25   : > { %p1218_p9 = pnand %p1216_p7, %p1915_p0  ;;  %p1225_p8 = por %p1224_p6, %p1223_p3 }
  0x27   : > { %p1219_p10 = pneg %p1218_p9 }
  0x29   : > { %p1226_p12 = pnand %p1225_p8, %p1219_p10 }
  0x2b   : > { %1229 = shalt.err (!%p1226_p12)
}
  0x2c   : > { %s1913_s16 = smov 128   ;;  %s1914_s17 = smov 8  }
  0x2d   : > { %1102 = dma.hbm_to_vmem [thread:$0]  (!%p1536_p11), %s1928_s0, 256, %s202_s29, [#allocation4], %s1913_s16, %s1913_s16, %s1914_s17  }
  0x2e   : > { %p28_p3 = scmp.ge.s32.totalorder %s27_s7, 2  ;;  %s226_s8 = sand.u32 1, %s1436_s23  }
  0x2f   : > { %s228_s9 = sand.u32 1, %s1424_s20   ;;  %s928_s12 = sshll.u32 %s1432_s22, 8 }
  0x30   : > { %s1955_s7 = smov (%p28_p3, %s27_s7), 0  ;;  %s1574_s10 = sshll.u32 %s228_s9, 8 }
  0x31   : > { %1929 = sst [smem:[#allocation16_spill]] %s1955_s7  ;;  %s81_s11 = ssub.s32 %s1432_s22, %s1955_s7 }
  0x32   : > { %p82_p6 = scmp.eq.s32.totalorder %s81_s11, 0  ;;  %s1930_s2 = sld [smem:[#allocation19_spill]] }
  0x33   : > { %s230_s29 = scalar_lea.vmem [#allocation8], %s1574_s10  ;;  %s1594_s9 = scalar_lea.sflag [#allocation4], %s226_s8 }
  0x34   : > { %s237_s18 = sshll.u32 %s230_s29, 4  ;;  %p1932_p12 = scmp.ne.s32.totalorder %s1927_s6, 0  ;;  %s1592_s18 = int_to_ptr.vmem [resolvable:$true] %s237_s18 }
  0x35   : > { %s1590_s28 = scalar_select %p82_p6, %s1424_s20, %s84_s25  }
  0x36   : > { %p1600_p13 = pneg %p1932_p12 }
  0x37   : > { %1931 = sst [smem:[#allocation17_spill]] %s1590_s28 }
  0x38   : > { %s1584_s15 = scalar_lea.hbm %s1930_s2, %s928_s12  ;;  %s1235_s25 = scalar_lea.hbm %s1930_s2, 8192 }
  0x39   : > { %s1230_s11 = scalar_lea.hbm %s1584_s15, 4096  ;;  %p1236_p4 = scmp.lt.u32.totalorder %s1584_s15, %s1930_s2 }
  0x3a   : > { %p1231_p8 = scmp.ne.s32.totalorder %s1584_s15, %s1230_s11  ;;  %p1237_p5 = scmp.lt.u32.totalorder %s1235_s25, %s1230_s11 }
  0x3b   : > { %s1933_s13 = scalar_select %p1600_p13, 1, 0 }
  0x3c   : > { %p1233_p1 = pnand %p1600_p13, %p1231_p8  ;;  %p1238_p7 = por %p1237_p5, %p1236_p4 }
  0x3d   : > { %p1239_p9 = scmp.lt.u32.totalorder %s1230_s11, %s1584_s15 }
  0x3e   : > { %p1234_p2 = pneg %p1233_p1 }
  0x3f   : > { %p1240_p10 = por %p1239_p9, %p1238_p7 }
  0x41   : > { %p1241_p3 = pnand %p1240_p10, %p1234_p2 }
  0x43   : > { %1244 = shalt.err (!%p1241_p3)
}
  0x44   : > { %s1245_s8 = scalar_lea.vmem %s1592_s18, 4096  ;;  %s1441_s14 = smov [#allocation8]  }
  0x45   : > { %p1246_p6 = scmp.ne.s32.totalorder %s1592_s18, %s1245_s8  ;;  %s1250_s29 = sshll.u32 %s1441_s14, 4  ;;  %s1251_s29 = int_to_ptr.vmem [resolvable:$false] %s1250_s29 }
  0x46   : > { %s1252_s16 = scalar_lea.vmem %s1251_s29, 8192  ;;  %p1253_p0 = scmp.lt.s32.totalorder %s1592_s18, %s1251_s29 }
  0x47   : > { %p1248_p8 = pnand %p1246_p6, %p1600_p13  ;;  %p1254_p11 = scmp.lt.s32.totalorder %s1252_s16, %s1245_s8 }
  0x49   : > { %p1249_p1 = pneg %p1248_p8  ;;  %p1255_p4 = por %p1254_p11, %p1253_p0 }
  0x4b   : > { %p1256_p5 = pnand %p1255_p4, %p1249_p1 }
  0x4d   : > { %1259 = shalt.err (!%p1256_p5)
}
  0x4e   : > { %s1442_s17 = smov 512   ;;  %s1443_s11 = smov 256  }
  0x4f   : > { %s1444_s25 = smov 16   ;;  %s1632_s29 = scalar_lea.hbm %s1906_s3, %s928_s12 }
  0x50   : > { %1109 = dma.hbm_to_vmem [thread:$0]  (!%p1932_p12), %s1584_s15, 4096, %s1592_s18, %s1594_s9, %s1442_s17, %s1443_s11, %s1444_s25  }
  0x51   : > { %s251_s16 = scalar_lea.vmem [#allocation9], %s1574_s10  ;;  %s1445_s2 = smov [#allocation6]  }
  0x52   : > { %s258_s0 = sshll.u32 %s251_s16, 4  ;;  %s1637_s7 = sshll.u32 %s1445_s2, 4  ;;  %s1635_s0 = int_to_ptr.vmem [resolvable:$true] %s258_s0  ;;  %s216_s7 = int_to_ptr.vmem [resolvable:$true] %s1637_s7 }
  0x53   : > { %s1260_s28 = scalar_lea.hbm %s1632_s29, 4096  ;;  %s1265_s12 = scalar_lea.hbm %s1906_s3, 8192 }
  0x54   : > { %p1261_p11 = scmp.ne.s32.totalorder %s1632_s29, %s1260_s28  ;;  %p1266_p7 = scmp.lt.u32.totalorder %s1632_s29, %s1906_s3 }
  0x55   : > { %p1267_p9 = scmp.lt.u32.totalorder %s1265_s12, %s1260_s28  ;;  %p1269_p3 = scmp.lt.u32.totalorder %s1260_s28, %s1632_s29 }
  0x56   : > { %p1263_p0 = pnand %p1261_p11, %p1600_p13 }
  0x57   : > { %p1268_p10 = por %p1267_p9, %p1266_p7 }
  0x58   : > { %p1264_p2 = pneg %p1263_p0 }
  0x59   : > { %p1270_p6 = por %p1269_p3, %p1268_p10 }
  0x5b   : > { %p1271_p8 = pnand %p1270_p6, %p1264_p2 }
  0x5d   : > { %1274 = shalt.err (!%p1271_p8)
}
  0x5e   : > { %s1275_s2 = scalar_lea.vmem %s1635_s0, 4096  ;;  %s1446_s16 = smov [#allocation9]  }
  0x5f   : > { %p1276_p1 = scmp.ne.s32.totalorder %s1635_s0, %s1275_s2  ;;  %s1280_s15 = sshll.u32 %s1446_s16, 4  ;;  %s1281_s15 = int_to_ptr.vmem [resolvable:$false] %s1280_s15 }
  0x60   : > { %s1282_s18 = scalar_lea.vmem %s1281_s15, 8192  ;;  %p1283_p11 = scmp.lt.s32.totalorder %s1635_s0, %s1281_s15 }
  0x61   : > { %p1278_p4 = pnand %p1276_p1, %p1600_p13  ;;  %p1284_p0 = scmp.lt.s32.totalorder %s1282_s18, %s1275_s2 }
  0x63   : > { %p1279_p5 = pneg %p1278_p4  ;;  %p1285_p7 = por %p1284_p0, %p1283_p11 }
  0x65   : > { %p1286_p9 = pnand %p1285_p7, %p1279_p5 }
  0x67   : > { %1289 = shalt.err (!%p1286_p9)
}
  0x68   : > { %1112 = dma.hbm_to_vmem [thread:$0]  (!%p1932_p12), %s1632_s29, 4096, %s1635_s0, %s1594_s9, %s1442_s17, %s1443_s11, %s1444_s25  }
  0x69   : > { %s1290_s8 = scalar_lea.hbm %s1904_s1, 16  ;;  %p1934_p10 = scmp.ne.s32.totalorder %s1926_s30, 0 }
  0x6a   : > { %p1291_p2 = scmp.ne.s32.totalorder %s1904_s1, %s1290_s8  ;;  %p1297_p1 = scmp.lt.u32.totalorder %s1290_s8, %s1904_s1 }
  0x6b   : > { %p1935_p3 = pneg %p1934_p10 }
  0x6d   : > { %p1293_p6 = pnand %p1291_p2, %p1935_p3 }
  0x6f   : > { %p1294_p8 = pneg %p1293_p6 }
  0x71   : > { %p1299_p4 = pnand %p1297_p1, %p1294_p8 }
  0x73   : > { %1302 = shalt.err (!%p1299_p4)
}
  0x74   : > { %s1303_s0 = scalar_lea.vmem %s216_s7, 16  ;;  %p1936_p11 = pmov %p1935_p3 }
  0x75   : > { %p1304_p5 = scmp.ne.s32.totalorder %s216_s7, %s1303_s0  ;;  %s1310_s17 = scalar_lea.vmem %s216_s7, 32 }
  0x76   : > { %p1311_p9 = scmp.lt.s32.totalorder %s216_s7, %s216_s7  ;;  %p1312_p12 = scmp.lt.s32.totalorder %s1310_s17, %s1303_s0 }
  0x77   : > { %p1306_p0 = pnand %p1304_p5, %p1936_p11 }
  0x78   : > { %p1313_p13 = por %p1312_p12, %p1311_p9 }
  0x79   : > { %p1307_p7 = pneg %p1306_p0 }
  0x7b   : > { %p1314_p2 = pnand %p1313_p13, %p1307_p7 }
  0x7d   : > { %1317 = shalt.err (!%p1314_p2)
}
  0x7e   : > { %1105 = dma.hbm_to_vmem [thread:$0]  (!%p1934_p10), %s1904_s1, 16, %s216_s7, [#allocation7]  }
  0x7f   : > { %s930_s29 = sshll.u32 %s1432_s22, 12  ;;  %s272_s18 = scalar_lea.vmem [#allocation10], %s1574_s10 }
  0x80   : > { %s279_s28 = sshll.u32 %s272_s18, 4  ;;  %s1690_s14 = scalar_lea.hbm %s1907_s4, %s930_s29  ;;  %s1692_s28 = int_to_ptr.vmem [resolvable:$true] %s279_s28 }
  0x81   : > { %s1318_s30 = scalar_lea.hbm %s1690_s14, 4096  ;;  %p1937_p13 = scmp.ne.s32.totalorder %s1933_s13, 0 }
  0x82   : > { %p1319_p12 = scmp.ne.s32.totalorder %s1690_s14, %s1318_s30  ;;  %s1323_s10 = scalar_lea.hbm %s1907_s4, 8192 }
  0x83   : > { %p1324_p10 = scmp.lt.u32.totalorder %s1690_s14, %s1907_s4  ;;  %p1325_p8 = scmp.lt.u32.totalorder %s1323_s10, %s1318_s30 }
  0x84   : > { %p1321_p3 = pnand %p1319_p12, %p1937_p13  ;;  %p1327_p4 = scmp.lt.u32.totalorder %s1318_s30, %s1690_s14 }
  0x85   : > { %p1326_p1 = por %p1325_p8, %p1324_p10 }
  0x86   : > { %p1322_p6 = pneg %p1321_p3 }
  0x87   : > { %p1328_p5 = por %p1327_p4, %p1326_p1 }
  0x89   : > { %p1329_p11 = pnand %p1328_p5, %p1322_p6 }
  0x8b   : > { %1332 = shalt.err (!%p1329_p11)
}
  0x8c   : > { %s1333_s0 = scalar_lea.vmem %s1692_s28, 4096  ;;  %s1447_s17 = smov [#allocation10]  }
  0x8d   : > { %p1334_p0 = scmp.ne.s32.totalorder %s1692_s28, %s1333_s0  ;;  %s1338_s11 = sshll.u32 %s1447_s17, 4  ;;  %s1339_s11 = int_to_ptr.vmem [resolvable:$false] %s1338_s11 }
  0x8e   : > { %s1340_s25 = scalar_lea.vmem %s1339_s11, 8192  ;;  %p1341_p2 = scmp.lt.s32.totalorder %s1692_s28, %s1339_s11 }
  0x8f   : > { %p1336_p7 = pnand %p1334_p0, %p1937_p13  ;;  %p1342_p12 = scmp.lt.s32.totalorder %s1340_s25, %s1333_s0 }
  0x91   : > { %p1337_p9 = pneg %p1336_p7  ;;  %p1343_p3 = por %p1342_p12, %p1341_p2 }
  0x93   : > { %p1344_p10 = pnand %p1343_p3, %p1337_p9 }
  0x95   : > { %1347 = shalt.err (!%p1344_p10)
}
  0x96   : > { %p1938_p6 = scmp.ne.s32.totalorder %s1927_s6, 0  ;;  %s1939_s29 = smov 8  }
  0x97   : > { %s1940_s18 = smov 128   ;;  %p1941_p13 = scmp.ne.s32.totalorder %s1925_s27, 0 }
  0x98   : > { %1115 = dma.hbm_to_vmem [thread:$0]  (!%p1938_p6), %s1690_s14, 4096, %s1692_s28, %s1594_s9, %s1940_s18, %s1940_s18, %s1939_s29  }
  0x99   : > { %291 = sbr.rel (%p1941_p13) target bundleno = 867 (0x363), region = 40  ;;  %p1942_p8 = scmp.eq.s32.totalorder (!%p1941_p13), %s1511_s24, 0 }
  0xa0   : > { %1399 = dma.done.wait (%p1942_p8), [#allocation4], 256   ;;  %p1943_p1 = pmov %p1942_p8 }
  0xa2   : > { %1401 = vsyncadd (%p1943_p1), [#allocation4], 4294967040  ;;  %p1944_p4 = pmov %p1943_p1 }
  0xa3   : > { %p1945_p5 = pmov %p1943_p1 }
  0xa4   : > { %1403 = dma.done.wait (%p1944_p4), [#allocation7], 16  }
  0xa5   : > { %1405 = vsyncadd (%p1945_p5), [#allocation7], 4294967280  ;;  %s301_s6 = sand.u32 1, %s1511_s24   ;;  %s303_s9 = sand.u32 1, %s1420_s19  }
  0xa6   : > { %s1731_s13 = sshll.u32 %s303_s9, 8  ;;  %s302_s27 = scalar_lea.sflag [#allocation4], %s301_s6 }
  0xa7   : > { %s1734_s28 = scalar_lea.vmem [#allocation8], %s1731_s13  ;;  %p1946_p11 = scmp.ne.s32.totalorder %s1924_s26, 0 }
  0xa9   : > { %1407 = dma.done.wait (%p1946_p11), %s302_s27, 12288  }
  0xaa   : > { %1409 = vsyncadd (%p1946_p11), %s302_s27, 4294955008  ;;  %v1740_v0 = vld [vmem:[#allocation3] sm:$0xff]  ;;  %v1742_v1 = vld [vmem:[#allocation3 + $0x8] sm:$0xff]  ;;  %s1749_s12 = scalar_lea.vmem [#allocation9], %s1731_s13  ;;  %s1822_s26 = scalar_lea.vmem [#allocation10], %s1731_s13 }
  0xab   : > { %v387_v2 = vld [vmem:[%s1734_s28 + $0x8] sm:$0xff]  ;;  %v362_v3 = vmul.f32 %v1740_v0, %v1740_v0  ;;  %v389_v4 = vld [vmem:[%s1734_s28 + $0x18] sm:$0xff]  ;;  %v386_v9 = vld [vmem:[%s1734_s28] sm:$0xff]  ;;  %v363_v12 = vmul.f32 %v1742_v1, %v1742_v1  ;;  %p922_p0 = scmp.ne.s32.totalorder %s1428_s21, 0 }
  0xac   : > { %v496_v5 = vld [vmem:[%s1749_s12 + $0x8] sm:$0xff]  ;;  %v498_v6 = vld [vmem:[%s1749_s12 + $0x18] sm:$0xff]  ;;  %v969_v7 = vpack.c.bf16 %v389_v4, %v387_v2  ;;  %v388_v10 = vld [vmem:[%s1734_s28 + $0x10] sm:$0xff]  ;;  %640 = vst [vmem:[#allocation2] sm:$0xff] (!%p922_p0), %v1740_v0 }
  0xad   : > { %v1001_v8 = vpack.c.bf16 %v498_v6, %v496_v5  ;;  %v495_v11 = vld [vmem:[%s1749_s12] sm:$0xff]  ;;  %364 = vadd.xlane.f32.xlu0 %v362_v3  ;;  %v971_v13 = vpack.c.bf16 %v388_v10, %v386_v9  ;;  %v497_v14 = vld [vmem:[%s1749_s12 + $0x10] sm:$0xff]  ;;  %v391_v15 = vld [vmem:[%s1734_s28 + $0x28] sm:$0xff]  ;;  %641 = vst [vmem:[#allocation2 + $0x8] sm:$0xff] (!%p922_p0), %v1742_v1 }
  0xae   : > { %v393_v16 = vld [vmem:[%s1734_s28 + $0x38] sm:$0xff]  ;;  %970 = vmatprep.subr.bf16.mxu0 %v969_v7  ;;  %v1003_v17 = vpack.c.bf16 %v497_v14, %v495_v11  ;;  %v500_v19 = vld [vmem:[%s1749_s12 + $0x28] sm:$0xff]  ;;  %v390_v21 = vld [vmem:[%s1734_s28 + $0x20] sm:$0xff] }
  0xaf   : > { %1002 = vmatprep.subr.bf16.mxu1 %v1001_v8  ;;  %v973_v18 = vpack.c.bf16 %v393_v16, %v391_v15  ;;  %v502_v20 = vld [vmem:[%s1749_s12 + $0x38] sm:$0xff]  ;;  %972 = vmatpush1.bf16.msra.mxu0 %v971_v13  ;;  %v392_v23 = vld [vmem:[%s1734_s28 + $0x30] sm:$0xff]  ;;  %v499_v24 = vld [vmem:[%s1749_s12 + $0x20] sm:$0xff] }
  0xb0   : > { %v1005_v22 = vpack.c.bf16 %v502_v20, %v500_v19  ;;  %v501_v25 = vld [vmem:[%s1749_s12 + $0x30] sm:$0xff]  ;;  %1004 = vmatpush1.bf16.msra.mxu1 %v1003_v17  ;;  %v975_v26 = vpack.c.bf16 %v392_v23, %v390_v21  ;;  %v395_v28 = vld [vmem:[%s1734_s28 + $0x48] sm:$0xff]  ;;  %v397_v29 = vld [vmem:[%s1734_s28 + $0x58] sm:$0xff]  ;;  %v1448_v21 = vmov 0.0  }
  0xb1   : > { %974 = vmatprep.subr.bf16.mxu0 %v973_v18  ;;  %v1007_v27 = vpack.c.bf16 %v501_v25, %v499_v24  ;;  %v504_v30 = vld [vmem:[%s1749_s12 + $0x48] sm:$0xff]  ;;  %366 = vadd.xlane.f32.xlu0 %v363_v12  ;;  %v977_v31 = vpack.c.bf16 %v397_v29, %v395_v28  ;;  %v506_v32 = vld [vmem:[%s1749_s12 + $0x58] sm:$0xff]  ;;  %v394_v33 = vld [vmem:[%s1734_s28 + $0x40] sm:$0xff] }
  0xb2   : > { %1006 = vmatprep.subr.bf16.mxu1 %v1005_v22  ;;  %v396_v34 = vld [vmem:[%s1734_s28 + $0x50] sm:$0xff]  ;;  %v1009_v35 = vpack.c.bf16 %v506_v32, %v504_v30  ;;  %v503_v36 = vld [vmem:[%s1749_s12 + $0x40] sm:$0xff]  ;;  %v399_v38 = vld [vmem:[%s1734_s28 + $0x68] sm:$0xff]  ;;  %482 = vmatprep.mubr.f32.mxu0 %v1448_v21 }
  0xb3   : > { %v505_v37 = vld [vmem:[%s1749_s12 + $0x50] sm:$0xff]  ;;  %976 = vmatpush1.bf16.msra.mxu0 %v975_v26  ;;  %v979_v39 = vpack.c.bf16 %v396_v34, %v394_v33  ;;  %v401_v40 = vld [vmem:[%s1734_s28 + $0x78] sm:$0xff]  ;;  %v508_v41 = vld [vmem:[%s1749_s12 + $0x68] sm:$0xff]  ;;  %591 = vmatprep.mubr.f32.mxu1 %v1448_v21 }
  0xb4   : > { %v510_v42 = vld [vmem:[%s1749_s12 + $0x78] sm:$0xff]  ;;  %1008 = vmatpush1.bf16.msra.mxu1 %v1007_v27  ;;  %978 = vmatprep.subr.bf16.mxu0 %v977_v31  ;;  %v1011_v43 = vpack.c.bf16 %v505_v37, %v503_v36  ;;  %v981_v44 = vpack.c.bf16 %v401_v40, %v399_v38  ;;  %v398_v46 = vld [vmem:[%s1734_s28 + $0x60] sm:$0xff]  ;;  %v400_v47 = vld [vmem:[%s1734_s28 + $0x70] sm:$0xff] }
  0xb5   : > { %1010 = vmatprep.subr.bf16.mxu1 %v1009_v35  ;;  %v1013_v45 = vpack.c.bf16 %v510_v42, %v508_v41  ;;  %v507_v48 = vld [vmem:[%s1749_s12 + $0x60] sm:$0xff]  ;;  %v983_v49 = vpack.c.bf16 %v400_v47, %v398_v46  ;;  %v509_v50 = vld [vmem:[%s1749_s12 + $0x70] sm:$0xff]  ;;  %v403_v52 = vld [vmem:[%s1734_s28 + $0x88] sm:$0xff] }
  0xb6   : > { %v1015_v51 = vpack.c.bf16 %v509_v50, %v507_v48  ;;  %v405_v53 = vld [vmem:[%s1734_s28 + $0x98] sm:$0xff]  ;;  %v512_v54 = vld [vmem:[%s1749_s12 + $0x88] sm:$0xff]  ;;  %v402_v57 = vld [vmem:[%s1734_s28 + $0x80] sm:$0xff] }
  0xb7   : > { %980 = vmatpush1.bf16.msra.mxu0 %v979_v39  ;;  %v985_v55 = vpack.c.bf16 %v405_v53, %v403_v52  ;;  %v514_v56 = vld [vmem:[%s1749_s12 + $0x98] sm:$0xff]  ;;  %v404_v58 = vld [vmem:[%s1734_s28 + $0x90] sm:$0xff]  ;;  %v511_v61 = vld [vmem:[%s1749_s12 + $0x80] sm:$0xff] }
  0xb8   : > { %1012 = vmatpush1.bf16.msra.mxu1 %v1011_v43  ;;  %982 = vmatprep.subr.bf16.mxu0 %v981_v44  ;;  %v1017_v59 = vpack.c.bf16 %v514_v56, %v512_v54  ;;  %v987_v60 = vpack.c.bf16 %v404_v58, %v402_v57  ;;  %v513_v62 = vld [vmem:[%s1749_s12 + $0x90] sm:$0xff]  ;;  %v407_v2 = vld [vmem:[%s1734_s28 + $0xa8] sm:$0xff]  ;;  %v409_v3 = vld [vmem:[%s1734_s28 + $0xb8] sm:$0xff] }
  0xb9   : > { %1014 = vmatprep.subr.bf16.mxu1 %v1013_v45  ;;  %v1019_v63 = vpack.c.bf16 %v513_v62, %v511_v61  ;;  %v516_v4 = vld [vmem:[%s1749_s12 + $0xa8] sm:$0xff]  ;;  %v989_v5 = vpack.c.bf16 %v409_v3, %v407_v2  ;;  %v518_v6 = vld [vmem:[%s1749_s12 + $0xb8] sm:$0xff]  ;;  %v406_v7 = vld [vmem:[%s1734_s28 + $0xa0] sm:$0xff] }
  0xba   : > { %v408_v8 = vld [vmem:[%s1734_s28 + $0xb0] sm:$0xff]  ;;  %v1021_v9 = vpack.c.bf16 %v518_v6, %v516_v4  ;;  %v515_v11 = vld [vmem:[%s1749_s12 + $0xa0] sm:$0xff]  ;;  %v411_v14 = vld [vmem:[%s1734_s28 + $0xc8] sm:$0xff] }
  0xbb   : > { %984 = vmatpush1.bf16.msra.mxu0 %v983_v49  ;;  %v991_v10 = vpack.c.bf16 %v408_v8, %v406_v7  ;;  %v517_v12 = vld [vmem:[%s1749_s12 + $0xb0] sm:$0xff]  ;;  %v413_v15 = vld [vmem:[%s1734_s28 + $0xd8] sm:$0xff]  ;;  %v520_v16 = vld [vmem:[%s1749_s12 + $0xc8] sm:$0xff] }
  0xbc   : > { %1016 = vmatpush1.bf16.msra.mxu1 %v1015_v51  ;;  %986 = vmatprep.subr.bf16.mxu0 %v985_v55  ;;  %v1023_v13 = vpack.c.bf16 %v517_v12, %v515_v11  ;;  %v993_v17 = vpack.c.bf16 %v413_v15, %v411_v14  ;;  %v522_v18 = vld [vmem:[%s1749_s12 + $0xd8] sm:$0xff]  ;;  %v410_v19 = vld [vmem:[%s1734_s28 + $0xc0] sm:$0xff]  ;;  %v412_v20 = vld [vmem:[%s1734_s28 + $0xd0] sm:$0xff] }
  0xbd   : > { %1018 = vmatprep.subr.bf16.mxu1 %v1017_v59  ;;  %v1025_v22 = vpack.c.bf16 %v522_v18, %v520_v16  ;;  %v995_v23 = vpack.c.bf16 %v412_v20, %v410_v19  ;;  %v519_v24 = vld [vmem:[%s1749_s12 + $0xc0] sm:$0xff]  ;;  %v521_v25 = vld [vmem:[%s1749_s12 + $0xd0] sm:$0xff]  ;;  %v415_v26 = vld [vmem:[%s1734_s28 + $0xe8] sm:$0xff] }
  0xbe   : > { %v1027_v27 = vpack.c.bf16 %v521_v25, %v519_v24  ;;  %v417_v28 = vld [vmem:[%s1734_s28 + $0xf8] sm:$0xff]  ;;  %v524_v29 = vld [vmem:[%s1749_s12 + $0xe8] sm:$0xff]  ;;  %v414_v33 = vld [vmem:[%s1734_s28 + $0xe0] sm:$0xff] }
  0xbf   : > { %988 = vmatpush1.bf16.msra.mxu0 %v987_v60  ;;  %v526_v30 = vld [vmem:[%s1749_s12 + $0xf8] sm:$0xff]  ;;  %v997_v31 = vpack.c.bf16 %v417_v28, %v415_v26  ;;  %v416_v34 = vld [vmem:[%s1734_s28 + $0xf0] sm:$0xff]  ;;  %v523_v35 = vld [vmem:[%s1749_s12 + $0xe0] sm:$0xff] }
  0xc0   : > { %1020 = vmatpush1.bf16.msra.mxu1 %v1019_v63  ;;  %990 = vmatprep.subr.bf16.mxu0 %v989_v5  ;;  %v1029_v32 = vpack.c.bf16 %v526_v30, %v524_v29  ;;  %v999_v36 = vpack.c.bf16 %v416_v34, %v414_v33  ;;  %v525_v37 = vld [vmem:[%s1749_s12 + $0xf0] sm:$0xff]  ;;  %v917_v46 = vld [vmem:[#allocation6] ss:$0 sm:$0xff] }
  0xc1   : > { %1022 = vmatprep.subr.bf16.mxu1 %v1021_v9  ;;  %v1031_v38 = vpack.c.bf16 %v525_v37, %v523_v35 }
  0xc3   : > { %992 = vmatpush1.bf16.msra.mxu0 %v991_v10 }
  0xc4   : > { %1024 = vmatpush1.bf16.msra.mxu1 %v1023_v13  ;;  %994 = vmatprep.subr.bf16.mxu0 %v993_v17 }
  0xc5   : > { %1026 = vmatprep.subr.bf16.mxu1 %v1025_v22 }
  0xc7   : > { %996 = vmatpush1.bf16.msra.mxu0 %v995_v23 }
  0xc8   : > { %1028 = vmatpush1.bf16.msra.mxu1 %v1027_v27  ;;  %998 = vmatprep.subr.bf16.mxu0 %v997_v31 }
  0xc9   : > { %1030 = vmatprep.subr.bf16.mxu1 %v1029_v32 }
  0xcb   : > { %1000 = vmatpush1.bf16.msra.mxu0 %v999_v36 }
  0xcc   : > { %1032 = vmatpush1.bf16.msra.mxu1 %v1031_v38 }
 0x13a   : > { %v365_v39 = vpop.xlane.xlu0 %364 }
 0x13b   : > { %v369_v40 = vmul.f32 0.0078125, %v365_v39 }
 0x13d   : > { %v371_v41 = vadd.f32 1e-05, %v369_v40 }
 0x13e   : > { %v367_v42 = vpop.xlane.xlu0 %366 }
 0x13f   : > { %1182 = vrsqrt.f32 %v371_v41  ;;  %v370_v43 = vmul.f32 0.0078125, %v367_v42 }
 0x141   : > { %v372_v44 = vadd.f32 1e-05, %v370_v43 }
 0x143   : > { %1184 = vrsqrt.f32 %v372_v44 }
 0x149   : > { %v1183_v45 = vpop.eup %1182 }
 0x14a   : > { %v375_v47 = vmul.f32 %v1183_v45, %v1740_v0 }
 0x14c   : > { %v384_v48 = vmul.f32 %v917_v46, %v375_v47 }
 0x14d   : > { %v1185_v49 = vpop.eup %1184 }
 0x14e   : > { %483 = vmatmul.mubr.f32.vlgmr.msra.gmra.mrb[0].mxu0 %v384_v48  ;;  %592 = vmatmul.mubr.f32.vlgmr.msra.gmra.mrb[0].mxu1 %v384_v48  ;;  %v376_v50 = vmul.f32 %v1185_v49, %v1742_v1 }
 0x14f   : > { %488 = vmatprep.mubr.f32.mxu0 %v1448_v21  ;;  %597 = vmatprep.mubr.f32.mxu1 %v1448_v21 }
 0x150   : > { %v385_v51 = vmul.f32 %v917_v46, %v376_v50 }
 0x152   : > { %489 = vmatmul.mubr.f32.gmra.mrb[2].mxu0 %v385_v51  ;;  %598 = vmatmul.mubr.f32.gmra.mrb[2].mxu1 %v385_v51 }
 0x221   : > { %v484_v52 = vpop.f32.mrb[0].mxu0  ;;  %v593_v53 = vpop.f32.mrb[0].mxu1 }
 0x222   : > { %v918_v54 = vmul.f32 -1.442695, %v484_v52  ;;  %v486_v55 = vpop.f32.mrb[1].mxu0  ;;  %v595_v56 = vpop.f32.mrb[1].mxu1 }
 0x223   : > { %v919_v57 = vmul.f32 -1.442695, %v486_v55 }
 0x224   : > { %1186 = vpow2.f32 %v918_v54 }
 0x225   : > { %1188 = vpow2.f32 %v919_v57  ;;  %v490_v58 = vpop.f32.mrb[2].mxu0  ;;  %v599_v59 = vpop.f32.mrb[2].mxu1 }
 0x226   : > { %v920_v60 = vmul.f32 -1.442695, %v490_v58  ;;  %v492_v61 = vpop.f32.mrb[3].mxu0  ;;  %v601_v62 = vpop.f32.mrb[3].mxu1 }
 0x227   : > { %v921_v63 = vmul.f32 -1.442695, %v492_v61 }
 0x228   : > { %1190 = vpow2.f32 %v920_v60 }
 0x229   : > { %1192 = vpow2.f32 %v921_v63 }
 0x22e   : > { %v1187_v2 = vpop.eup %1186 }
 0x22f   : > { %v1189_v3 = vpop.eup %1188  ;;  %v616_v4 = vadd.f32 1.0, %v1187_v2 }
 0x230   : > { %v617_v5 = vadd.f32 1.0, %v1189_v3 }
 0x231   : > { %1194 = vrcp.f32 %v616_v4 }
 0x232   : > { %v1191_v6 = vpop.eup %1190  ;;  %1196 = vrcp.f32 %v617_v5 }
 0x233   : > { %v1193_v7 = vpop.eup %1192  ;;  %v618_v8 = vadd.f32 1.0, %v1191_v6 }
 0x234   : > { %v619_v9 = vadd.f32 1.0, %v1193_v7 }
 0x235   : > { %1198 = vrcp.f32 %v618_v8 }
 0x236   : > { %1200 = vrcp.f32 %v619_v9 }
 0x23b   : > { %v1195_v10 = vpop.eup %1194 }
 0x23c   : > { %v1197_v11 = vpop.eup %1196  ;;  %v628_v12 = vmul.f32 %v1195_v10, %v484_v52 }
 0x23d   : > { %v629_v13 = vmul.f32 %v1197_v11, %v486_v55  ;;  %639 = sbr.rel (%p922_p0) target bundleno = 580 (0x244), region = 64 }
 0x23e   : > { %v1817_v14 = vmul.f32 %v628_v12, %v593_v53 }
 0x23f   : > { %v1199_v15 = vpop.eup %1198  ;;  %v633_v16 = vmul.f32 %v629_v13, %v595_v56 }
 0x240   : > { %v1201_v17 = vpop.eup %1200  ;;  %v630_v18 = vmul.f32 %v1199_v15, %v490_v58 }
 0x241   : > { %v631_v19 = vmul.f32 %v1201_v17, %v492_v61 }
 0x242   : > { %v1819_v20 = vmul.f32 %v630_v18, %v599_v59 }
 0x243   : > { %v635_v21 = vmul.f32 %v631_v19, %v601_v62 }
 0x244 PF: > { %v660_v22 = vld [vmem:[%s1822_s26 + $0x80] sm:$0xff]  ;;  %v661_v23 = vld [vmem:[%s1822_s26 + $0x88] sm:$0xff]  ;;  %740 = vmatprep.mubr.f32.mxu0 %v633_v16  ;;  %v662_v26 = vld [vmem:[%s1822_s26 + $0x90] sm:$0xff]  ;;  %p923_p7 = scmp.ne.s32.totalorder %s1428_s21, 1 }
 0x245   : > { %v644_v24 = vld [vmem:[%s1822_s26] sm:$0xff]  ;;  %745 = vmatprep.mubr.f32.mxu1 %v635_v21  ;;  %v1033_v25 = vpack.c.bf16 %v661_v23, %v660_v22  ;;  %v645_v0 = vld [vmem:[%s1822_s26 + $0x8] sm:$0xff]  ;;  %v663_v1 = vld [vmem:[%s1822_s26 + $0x98] sm:$0xff] }
 0x246   : > { %v1035_v27 = vpack.c.bf16 %v645_v0, %v644_v24  ;;  %v1037_v28 = vpack.c.bf16 %v663_v1, %v662_v26  ;;  %v646_v29 = vld [vmem:[%s1822_s26 + $0x10] sm:$0xff]  ;;  %v647_v30 = vld [vmem:[%s1822_s26 + $0x18] sm:$0xff]  ;;  %v664_v31 = vld [vmem:[%s1822_s26 + $0xa0] sm:$0xff] }
 0x247   : > { %1034 = vmatprep.subr.bf16.mxu0 %v1033_v25  ;;  %1065 = vmatprep.subr.bf16.mxu1 %v1033_v25  ;;  %v665_v32 = vld [vmem:[%s1822_s26 + $0xa8] sm:$0xff]  ;;  %v1039_v33 = vpack.c.bf16 %v647_v30, %v646_v29  ;;  %v648_v35 = vld [vmem:[%s1822_s26 + $0x20] sm:$0xff]  ;;  %v666_v37 = vld [vmem:[%s1822_s26 + $0xb0] sm:$0xff] }
 0x248   : > { %1036 = vmatpush3.bf16.msra.mxu0 %v1035_v27  ;;  %1073 = vmatpush3.bf16.msra.mxu1 %v1035_v27  ;;  %v1041_v34 = vpack.c.bf16 %v665_v32, %v664_v31  ;;  %v649_v36 = vld [vmem:[%s1822_s26 + $0x28] sm:$0xff]  ;;  %v667_v38 = vld [vmem:[%s1822_s26 + $0xb8] sm:$0xff]  ;;  %v650_v41 = vld [vmem:[%s1822_s26 + $0x30] sm:$0xff] }
 0x249   : > { %1038 = vmatprep.subr.bf16.mxu0 %v1037_v28  ;;  %1066 = vmatprep.subr.bf16.mxu1 %v1037_v28  ;;  %v1043_v39 = vpack.c.bf16 %v649_v36, %v648_v35  ;;  %v1045_v40 = vpack.c.bf16 %v667_v38, %v666_v37  ;;  %v651_v42 = vld [vmem:[%s1822_s26 + $0x38] sm:$0xff]  ;;  %v668_v43 = vld [vmem:[%s1822_s26 + $0xc0] sm:$0xff]  ;;  %v669_v44 = vld [vmem:[%s1822_s26 + $0xc8] sm:$0xff] }
 0x24a   : > { %v1047_v45 = vpack.c.bf16 %v651_v42, %v650_v41  ;;  %v1049_v46 = vpack.c.bf16 %v669_v44, %v668_v43  ;;  %v652_v47 = vld [vmem:[%s1822_s26 + $0x40] sm:$0xff]  ;;  %v653_v48 = vld [vmem:[%s1822_s26 + $0x48] sm:$0xff]  ;;  %v670_v49 = vld [vmem:[%s1822_s26 + $0xd0] sm:$0xff] }
 0x24b   : > { %v671_v50 = vld [vmem:[%s1822_s26 + $0xd8] sm:$0xff]  ;;  %v1051_v51 = vpack.c.bf16 %v653_v48, %v652_v47  ;;  %v654_v53 = vld [vmem:[%s1822_s26 + $0x50] sm:$0xff]  ;;  %v672_v55 = vld [vmem:[%s1822_s26 + $0xe0] sm:$0xff] }
 0x24c   : > { %1040 = vmatpush3.bf16.msra.mxu0 %v1039_v33  ;;  %1074 = vmatpush3.bf16.msra.mxu1 %v1039_v33  ;;  %v1053_v52 = vpack.c.bf16 %v671_v50, %v670_v49  ;;  %v655_v54 = vld [vmem:[%s1822_s26 + $0x58] sm:$0xff]  ;;  %v673_v56 = vld [vmem:[%s1822_s26 + $0xe8] sm:$0xff]  ;;  %v656_v59 = vld [vmem:[%s1822_s26 + $0x60] sm:$0xff] }
 0x24d   : > { %1042 = vmatprep.subr.bf16.mxu0 %v1041_v34  ;;  %1067 = vmatprep.subr.bf16.mxu1 %v1041_v34  ;;  %v1055_v57 = vpack.c.bf16 %v655_v54, %v654_v53  ;;  %v1057_v58 = vpack.c.bf16 %v673_v56, %v672_v55  ;;  %v657_v60 = vld [vmem:[%s1822_s26 + $0x68] sm:$0xff]  ;;  %v674_v61 = vld [vmem:[%s1822_s26 + $0xf0] sm:$0xff]  ;;  %v675_v62 = vld [vmem:[%s1822_s26 + $0xf8] sm:$0xff] }
 0x24e   : > { %v1059_v63 = vpack.c.bf16 %v657_v60, %v656_v59  ;;  %v1061_v2 = vpack.c.bf16 %v675_v62, %v674_v61  ;;  %v658_v3 = vld [vmem:[%s1822_s26 + $0x70] sm:$0xff]  ;;  %v659_v4 = vld [vmem:[%s1822_s26 + $0x78] sm:$0xff]  ;;  %v643_v10 = vld [vmem:[#allocation2 + $0x8] sm:$0xff] }
 0x24f   : > { %v1063_v5 = vpack.c.bf16 %v659_v4, %v658_v3  ;;  %v642_v8 = vld [vmem:[#allocation2] sm:$0xff] }
 0x250   : > { %1044 = vmatpush3.bf16.msra.mxu0 %v1043_v39  ;;  %1075 = vmatpush3.bf16.msra.mxu1 %v1043_v39 }
 0x251   : > { %1046 = vmatprep.subr.bf16.mxu0 %v1045_v40  ;;  %1068 = vmatprep.subr.bf16.mxu1 %v1045_v40 }
 0x254   : > { %1048 = vmatpush3.bf16.msra.mxu0 %v1047_v45  ;;  %1076 = vmatpush3.bf16.msra.mxu1 %v1047_v45 }
 0x255   : > { %1050 = vmatprep.subr.bf16.mxu0 %v1049_v46  ;;  %1069 = vmatprep.subr.bf16.mxu1 %v1049_v46 }
 0x258   : > { %1052 = vmatpush3.bf16.msra.mxu0 %v1051_v51  ;;  %1077 = vmatpush3.bf16.msra.mxu1 %v1051_v51 }
 0x259   : > { %1054 = vmatprep.subr.bf16.mxu0 %v1053_v52  ;;  %1070 = vmatprep.subr.bf16.mxu1 %v1053_v52 }
 0x25c   : > { %1056 = vmatpush3.bf16.msra.mxu0 %v1055_v57  ;;  %1078 = vmatpush3.bf16.msra.mxu1 %v1055_v57 }
 0x25d   : > { %1058 = vmatprep.subr.bf16.mxu0 %v1057_v58  ;;  %1071 = vmatprep.subr.bf16.mxu1 %v1057_v58 }
 0x260   : > { %1060 = vmatpush3.bf16.msra.mxu0 %v1059_v63  ;;  %1079 = vmatpush3.bf16.msra.mxu1 %v1059_v63 }
 0x261   : > { %1062 = vmatprep.subr.bf16.mxu0 %v1061_v2  ;;  %1072 = vmatprep.subr.bf16.mxu1 %v1061_v2 }
 0x264   : > { %1064 = vmatpush3.bf16.msra.mxu0 %v1063_v5  ;;  %1080 = vmatpush3.bf16.msra.mxu1 %v1063_v5 }
 0x267   : > { %741 = vmatmul.mubr.f32.vlgmr.msra.gmra.mrb[4].mxu0 %v1817_v14  ;;  %746 = vmatmul.mubr.f32.vlgmr.msra.gmra.mrb[4].mxu1 %v1819_v20 }
 0x33a   : > { %v963_v6 = vpop.f32.mrb[4].mxu0  ;;  %v966_v7 = vpop.f32.mrb[4].mxu1  ;;  %758 = sbr.rel (%p923_p7) target bundleno = 841 (0x349), region = 68 }
 0x33b   : > { %v964_v9 = vpop.f32.mrb[5].mxu0  ;;  %v967_v11 = vpop.f32.mrb[5].mxu1 }
 0x33c   : > { %v965_v12 = vadd.f32 %v964_v9, %v963_v6  ;;  %v968_v13 = vadd.f32 %v967_v11, %v966_v7 }
 0x33e   : > { %v751_v15 = vadd.f32 %v965_v12, %v642_v8  ;;  %v752_v16 = vadd.f32 %v968_v13, %v643_v10 }
 0x340   : > { %753 = vst [vmem:[#allocation2] sm:$0xff] %v751_v15  ;;  %754 = vst [vmem:[#allocation2 + $0x8] sm:$0xff] %v752_v16 }
 0x347   : > { %v759_v17 = vld [vmem:[#allocation2] sm:$0xff]  ;;  %v760_v18 = vld [vmem:[#allocation2 + $0x8] sm:$0xff] }
 0x348   : > { %761 = vst [vmem:[#allocation11] sm:$0xff] %v759_v17  ;;  %762 = vst [vmem:[#allocation11 + $0x8] sm:$0xff] %v760_v18 }
 0x349 PF: > { %p1121_p9 = scmp.eq.s32.totalorder %s1511_s24, 1  ;;  %s1449_s8 = smov [#allocation11]  }
 0x34a   : > { %s772_s14 = sshll.u32 %s1449_s8, 4  ;;  %s773_s14 = int_to_ptr.vmem [resolvable:$true] %s772_s14 }
 0x34b   : > { %s1348_s30 = scalar_lea.vmem %s773_s14, 256  ;;  %p1355_p10 = scmp.lt.s32.totalorder %s773_s14, %s773_s14 }
 0x34c   : > { %p1349_p2 = scmp.ne.s32.totalorder %s773_s14, %s1348_s30  ;;  %p1356_p6 = scmp.lt.s32.totalorder %s1348_s30, %s1348_s30 }
 0x34e   : > { %p1350_p12 = pnand %p1349_p2, %p1121_p9  ;;  %p1357_p13 = por %p1356_p6, %p1355_p10 }
 0x350   : > { %p1351_p3 = pneg %p1350_p12 }
 0x352   : > { %p1358_p8 = pnand %p1357_p13, %p1351_p3 }
 0x354   : > { %1361 = shalt.err (!%p1358_p8)
}
 0x355   : > { %s1362_s2 = scalar_lea.hbm %s1908_s5, 256 }
 0x356   : > { %p1363_p1 = scmp.ne.s32.totalorder %s1908_s5, %s1362_s2  ;;  %p1368_p11 = scmp.lt.u32.totalorder %s1362_s2, %s1908_s5 }
 0x358   : > { %p1364_p4 = pnand %p1363_p1, %p1121_p9 }
 0x35a   : > { %p1365_p5 = pneg %p1364_p4 }
 0x35c   : > { %p1370_p0 = pnand %p1368_p11, %p1365_p5 }
 0x35e   : > { %1373 = shalt.err (!%p1370_p0)
}
 0x35f   : > { %s1450_s17 = smov 128   ;;  %s1451_s11 = smov 8  }
 0x360   : > { %1096 = dma.vmem_to_hbm [thread:$0]  (%p1121_p9), %s773_s14, 256, %s1908_s5, [#allocation5], %s1450_s17, %s1450_s17, %s1451_s11  }
 0x361   : > { %1411 = dma.done.wait (%p1121_p9), [#allocation5], 256  }
 0x362   : > { %1413 = vsyncadd (%p1121_p9), [#allocation5], 4294967040 }
 0x363 PF: > { %s18_s23 = sadd.s32 1, %s1436_s23   ;;  %s1947_s6 = sld [smem:[#allocation17_spill]] }
 0x364   : > { %p15_p7 = scmp.ge.s32.totalorder %s18_s23, 4   ;;  %s1948_s9 = sld [smem:[#allocation16_spill]] }
 0x365   : > { %s1949_s18 = smov %s1420_s19  ;;  %s1950_s19 = smov %s1424_s20 }
 0x366   : > { %s1952_s21 = smov %s1432_s22  ;;  %17 = sbr.rel (!%p15_p7) target bundleno = 8 (0x8), region = 116 }
 0x369   : > { %s1951_s20 = smov %s1947_s6 }
 0x36a   : > { %s1953_s22 = smov %s1948_s9 }
 0x36d   :  { %788 = vsyncpa [#allocation4], 1 }
 0x36e   :  { %790 = vsyncpa [#allocation4 + $0x1], 1 }
 0x36f   :  { %791 = vsyncpa [#allocation7], 1 }
 0x370   :  { %792 = vsyncpa [#allocation5], 1 }
 0x371   :  { %794 = vsyncpa [#allocation5 + $0x1], 1 }

// kernel: feature_conditioned_block.10
= control target key start
LH: loop header
LB: loop body
LE: loop exit
PB: predicated region body
PF: predicated region fallthrough
CT: control target
= control target key end

     0   :  { %s2550_s0 = inlined_call_operand.hbm [shape: f32[2,8,128], index: 0, kind: input, shape index: {}]   ;;  %s2551_s1 = inlined_call_operand.hbm [shape: f32[2,16,256], index: 1, kind: input, shape index: {}, may-alias: {1,2}]   ;;  %s2552_s2 = inlined_call_operand.hbm [shape: f32[2,16,256], index: 2, kind: input, shape index: {}, may-alias: {1,2}]   ;;  %s2553_s3 = inlined_call_operand.hbm [shape: f32[2,1,16], index: 3, kind: input, shape index: {}]   ;;  %s2554_s4 = inlined_call_operand.hbm [shape: f32[128,128], index: 4, kind: input, shape index: {}]   ;;  %s2555_s5 = inlined_call_operand.hbm [shape: f32[2,8,128], index: 5, kind: input, shape index: {}]   ;;  %s2556_s6 = inlined_call_operand.hbm [shape: f32[2,8,128], index: 6, kind: output, shape index: {}]  }
   0x1   :  { %2579 = sst [smem:[#allocation25_spill]] %s2551_s1 }
   0x2   :  { %2580 = sst [smem:[#allocation26_spill]] %s2554_s4 }
   0x3   :  { %2581 = sst [smem:[#allocation27_spill]] %s2556_s6 }
   0x4   :  { %11 = vsyncpa [#allocation3], 0 }
   0x5   :  { %13 = vsyncpa [#allocation3 + $0x1], 0 }
   0x6   :  { %14 = vsyncpa [#allocation6], 0 }
   0x7   :  { %16 = vsyncpa [#allocation6 + $0x1], 0 }
   0x8   :  { %17 = vsyncpa [#allocation9], 0 }
   0x9   :  { %19 = vsyncpa [#allocation9 + $0x1], 0 }
   0xa   :  { %20 = vsyncpa [#allocation12], 0 }
   0xb   :  { %22 = vsyncpa [#allocation12 + $0x1], 0 }
   0xc   :  { %23 = vsyncpa [#allocation4], 0 }
   0xd   :  { %25 = vsyncpa [#allocation4 + $0x1], 0  ;;  %s2087_s21 = smov 0   ;;  %s2089_s22 = smov 0  }
   0xe   :  { %s2091_s23 = smov 0   ;;  %s2093_s24 = smov 0  }
   0xf LB: > { %2582 = sst [smem:[#allocation20_spill]] %s2022_s21  ;;  %s2108_s25 = sadd.s32 4294967295, %s2034_s24   ;;  %s2034_s24 = sphi %s2093_s24, %s2623_s24   ;;  %s2030_s23 = sphi %s2091_s23, %s2625_s23   ;;  %s2026_s22 = sphi %s2089_s22, %s2627_s22   ;;  %s2022_s21 = sphi %s2087_s21, %s2626_s21  }
  0x10   : > { %2583 = sst [smem:[#allocation21_spill]] %s2030_s23  ;;  %s1412_s26 = sadd.s32 4294967294, %s2034_s24  }
  0x11   : > { %s2112_s27 = sadd.s32 1, %s2034_s24   ;;  %s38_s28 = sadd.s32 1, %s2030_s23 }
  0x12   : > { %2584 = sst [smem:[#allocation22_spill]] %s2112_s27  ;;  %s35_s29 = ssub.s32 %s2034_s24, %s2112_s27 }
  0x13   : > { %p45_p0 = scmp.ne.s32.totalorder %s2030_s23, %s2026_s22  ;;  %p36_p1 = scmp.eq.s32.totalorder %s35_s29, 0 }
  0x14   : > { %p46_p2 = scmp.eq.s32.totalorder %s2034_s24, 0  ;;  %p51_p3 = scmp.ne.s32.totalorder %s2026_s22, %s2022_s21 }
  0x15   : > { %p2557_p4 = scmp.eq.s32.totalorder %s2108_s25, 0  ;;  %p200_p7 = scmp.eq.s32.totalorder %s2108_s25, 1 }
  0x16   : > { %s2124_s30 = scalar_select %p36_p1, %s2030_s23, %s38_s28  }
  0x17   : > { %p2126_p5 = por %p46_p2, %p45_p0  ;;  %p2132_p6 = por %p2557_p4, %p51_p3 }
  0x18   : > { %2585 = sst [smem:[#allocation23_spill]] %s2124_s30  ;;  %p206_p8 = scmp.eq.s32.totalorder %s1412_s26, 1 }
  0x19   : > { %s2586_s7 = scalar_select %p2126_p5, 1, 0 }
  0x1a   : > { %s2587_s8 = scalar_select %p2132_p6, 1, 0 }
  0x1b   : > { %p1413_p9 = scmp.ge.s32.totalorder %s2034_s24, 1  ;;  %p213_p10 = scmp.lt.s32.totalorder %s2034_s24, 3 }
  0x1c   : > { %p2139_p11 = por %p200_p7, %p45_p0  ;;  %p2143_p12 = por %p206_p8, %p51_p3 }
  0x1d   : > { %p2147_p13 = pnand %p1413_p9, %p213_p10  ;;  %s2036_s12 = smov [#allocation10]  }
  0x1e   : > { %s2588_s9 = scalar_select %p2139_p11, 1, 0 }
  0x1f   : > { %s2589_s10 = scalar_select %p2143_p12, 1, 0 }
  0x20   : > { %s2591_s11 = scalar_select %p2147_p13, 1, 0 }
  0x21   : > { %2590 = sst [smem:[#allocation24_spill]] %s2589_s10  ;;  %p1657_p1 = pneg %p2147_p13 }
  0x22   : > { %s225_s13 = sshll.u32 %s2036_s12, 4  ;;  %s2162_s15 = sand.u32 1, %s2030_s23   ;;  %s226_s13 = int_to_ptr.vmem [resolvable:$true] %s225_s13 }
  0x23   : > { %p2155_p2 = pnand %p1657_p1, %p2557_p4  ;;  %s2593_s4 = sld [smem:[#allocation26_spill]] }
  0x25   : > { %p1775_p8 = pneg %p2155_p2 }
  0x29   : > { %s1773_s19 = scalar_lea.hbm %s2593_s4, 2048 }
  0x2a   : > { %p1774_p7 = scmp.ne.s32.totalorder %s2593_s4, %s1773_s19  ;;  %p1780_p1 = scmp.lt.u32.totalorder %s1773_s19, %s2593_s4 }
  0x2c   : > { %p1776_p9 = pnand %p1775_p8, %p1774_p7 }
  0x2e   : > { %p1777_p10 = pneg %p1776_p9 }
  0x30   : > { %p1782_p0 = pnand %p1780_p1, %p1777_p10 }
  0x32   : > { %1785 = shalt.err (!%p1782_p0)
}
  0x33   : > { %s1786_s12 = scalar_lea.vmem %s226_s13, 2048  ;;  %p1794_p11 = scmp.lt.s32.totalorder %s226_s13, %s226_s13 }
  0x34   : > { %p1787_p4 = scmp.ne.s32.totalorder %s226_s13, %s1786_s12  ;;  %p1795_p6 = scmp.lt.s32.totalorder %s1786_s12, %s1786_s12 }
  0x36   : > { %p1789_p3 = pnand %p1787_p4, %p1775_p8  ;;  %p1796_p13 = por %p1795_p6, %p1794_p11 }
  0x38   : > { %p1790_p12 = pneg %p1789_p3 }
  0x3a   : > { %p1797_p5 = pnand %p1796_p13, %p1790_p12 }
  0x3c   : > { %1800 = shalt.err (!%p1797_p5)
}
  0x3d   : > { %s2561_s17 = smov 128   ;;  %s2563_s18 = smov 8  }
  0x3e   : > { %1660 = dma.hbm_to_vmem [thread:$0]  (!%p2155_p2), %s2593_s4, 2048, %s226_s13, [#allocation9], %s2561_s17, %s2561_s17, %s2563_s18  }
  0x3f   : > { %p2594_p4 = scmp.ne.s32.totalorder %s2586_s7, 0  ;;  %p2595_p5 = scmp.lt.s32.totalorder %s2034_s24, 2 }
  0x40   : > { %s2565_s28 = sshll.u32 %s2162_s15, 4  ;;  %s2566_s29 = sshll.u32 %s2034_s24, 9 }
  0x41   : > { %p2188_p6 = pnand %p2595_p5, %p2594_p4  ;;  %s2597_s1 = sld [smem:[#allocation25_spill]] }
  0x42   : > { %s261_s7 = scalar_lea.vmem [#allocation5], %s2565_s28  ;;  %s2598_s19 = sand.u32 1, %s2034_s24  }
  0x43   : > { %s2596_s26 = scalar_select %p2188_p6, 1, 0 }
  0x44   : > { %s268_s13 = sshll.u32 %s261_s7, 4  ;;  %s2207_s20 = scalar_lea.sflag [#allocation6], %s2598_s19  ;;  %s2203_s13 = int_to_ptr.vmem [resolvable:$true] %s268_s13 }
  0x45   : > { %p2213_p12 = pneg %p2188_p6 }
  0x47   : > { %s2199_s14 = scalar_lea.hbm %s2597_s1, %s2566_s29  ;;  %s1806_s7 = scalar_lea.hbm %s2597_s1, 1024 }
  0x48   : > { %s1801_s17 = scalar_lea.hbm %s2199_s14, 256  ;;  %p1807_p0 = scmp.lt.u32.totalorder %s2199_s14, %s2597_s1 }
  0x49   : > { %p1802_p11 = scmp.ne.s32.totalorder %s2199_s14, %s1801_s17  ;;  %p1808_p3 = scmp.lt.u32.totalorder %s1806_s7, %s1801_s17 }
  0x4a   : > { %p1810_p8 = scmp.lt.u32.totalorder %s1801_s17, %s2199_s14 }
  0x4b   : > { %p1804_p13 = pnand %p2213_p12, %p1802_p11  ;;  %p1809_p7 = por %p1808_p3, %p1807_p0 }
  0x4d   : > { %p1805_p2 = pneg %p1804_p13  ;;  %p1811_p9 = por %p1810_p8, %p1809_p7 }
  0x4f   : > { %p1812_p10 = pnand %p1811_p9, %p1805_p2 }
  0x51   : > { %1815 = shalt.err (!%p1812_p10)
}
  0x52   : > { %s1816_s19 = scalar_lea.vmem %s2203_s13, 256  ;;  %s2039_s16 = smov [#allocation5]  }
  0x53   : > { %p1817_p1 = scmp.ne.s32.totalorder %s2203_s13, %s1816_s19  ;;  %s1821_s12 = sshll.u32 %s2039_s16, 4  ;;  %s1822_s12 = int_to_ptr.vmem [resolvable:$false] %s1821_s12 }
  0x54   : > { %s1823_s28 = scalar_lea.vmem %s1822_s12, 512  ;;  %p1824_p11 = scmp.lt.s32.totalorder %s2203_s13, %s1822_s12 }
  0x55   : > { %p1819_p4 = pnand %p1817_p1, %p2213_p12  ;;  %p1825_p13 = scmp.lt.s32.totalorder %s1823_s28, %s1816_s19 }
  0x57   : > { %p1820_p5 = pneg %p1819_p4  ;;  %p1826_p0 = por %p1825_p13, %p1824_p11 }
  0x59   : > { %p1827_p3 = pnand %p1826_p0, %p1820_p5 }
  0x5b   : > { %1830 = shalt.err (!%p1827_p3)
}
  0x5c   : > { %s2575_s17 = smov 256   ;;  %s2600_s29 = smov 8  }
  0x5d   : > { %s2601_s7 = smov 128   ;;  %s2602_s19 = sshll.u32 %s2034_s24, 9 }
  0x5e   : > { %1667 = dma.hbm_to_vmem [thread:$0]  (!%p2188_p6), %s2199_s14, 256, %s2203_s13, %s2207_s20, %s2575_s17, %s2601_s7, %s2600_s29  }
  0x5f   : > { %s2245_s28 = scalar_lea.hbm %s2552_s2, %s2602_s19  ;;  %s2603_s4 = sshll.u32 %s2162_s15, 4 }
  0x60   : > { %s2248_s1 = scalar_lea.hbm %s2245_s28, 128  ;;  %s282_s30 = scalar_lea.vmem [#allocation7], %s2603_s4 }
  0x61   : > { %s290_s23 = sshll.u32 %s282_s30, 4  ;;  %s2574_s27 = sshll.u32 %s2162_s15, 3  ;;  %s2252_s23 = int_to_ptr.vmem [resolvable:$true] %s290_s23 }
  0x62   : > { %s2573_s10 = sshll.u32 %s2034_s24, 7  ;;  %s243_s13 = scalar_lea.vmem [#allocation2], %s2574_s27 }
  0x63   : > { %s2261_s14 = scalar_lea.hbm %s2550_s0, %s2573_s10  ;;  %s250_s19 = sshll.u32 %s243_s13, 4  ;;  %s251_s19 = int_to_ptr.vmem [resolvable:$true] %s250_s19 }
  0x64   : > { %s240_s4 = scalar_lea.sflag [#allocation3], %s2162_s15  ;;  %s1831_s30 = scalar_lea.hbm %s2261_s14, 128 }
  0x65   : > { %p1832_p2 = scmp.ne.s32.totalorder %s2261_s14, %s1831_s30  ;;  %s1836_s6 = scalar_lea.hbm %s2550_s0, 256 }
  0x66   : > { %p1837_p9 = scmp.lt.u32.totalorder %s2261_s14, %s2550_s0  ;;  %p1838_p10 = scmp.lt.u32.totalorder %s1836_s6, %s1831_s30 }
  0x67   : > { %p1834_p7 = pnand %p1832_p2, %p2213_p12  ;;  %p1840_p4 = scmp.lt.u32.totalorder %s1831_s30, %s2261_s14 }
  0x68   : > { %p1839_p1 = por %p1838_p10, %p1837_p9 }
  0x69   : > { %p1835_p8 = pneg %p1834_p7 }
  0x6a   : > { %p1841_p5 = por %p1840_p4, %p1839_p1 }
  0x6c   : > { %p1842_p11 = pnand %p1841_p5, %p1835_p8 }
  0x6e   : > { %1845 = shalt.err (!%p1842_p11)
}
  0x6f   : > { %s1846_s13 = scalar_lea.vmem %s251_s19, 128  ;;  %s2041_s27 = smov [#allocation2]  }
  0x70   : > { %p1847_p13 = scmp.ne.s32.totalorder %s251_s19, %s1846_s13  ;;  %s1851_s17 = sshll.u32 %s2041_s27, 4  ;;  %s1852_s17 = int_to_ptr.vmem [resolvable:$false] %s1851_s17 }
  0x71   : > { %s1853_s16 = scalar_lea.vmem %s1852_s17, 256  ;;  %p1854_p2 = scmp.lt.s32.totalorder %s251_s19, %s1852_s17 }
  0x72   : > { %p1849_p0 = pnand %p1847_p13, %p2213_p12  ;;  %p1855_p7 = scmp.lt.s32.totalorder %s1853_s16, %s1846_s13 }
  0x74   : > { %p1850_p3 = pneg %p1849_p0  ;;  %p1856_p6 = por %p1855_p7, %p1854_p2 }
  0x76   : > { %p1857_p9 = pnand %p1856_p6, %p1850_p3 }
  0x78   : > { %1860 = shalt.err (!%p1857_p9)
}
  0x79   : > { %p2604_p10 = scmp.ne.s32.totalorder %s2596_s26, 0  ;;  %s1891_s10 = scalar_lea.hbm %s2245_s28, 384 }
  0x7a   : > { %p1862_p8 = scmp.ne.s32.totalorder %s2248_s1, %s1891_s10  ;;  %s1866_s30 = scalar_lea.hbm %s2552_s2, 1024 }
  0x7b   : > { %1664 = dma.hbm_to_vmem [thread:$0]  (!%p2604_p10), %s2261_s14, 128, %s251_s19, %s240_s4  }
  0x7c   : > { %p1864_p1 = pnand %p1862_p8, %p2213_p12  ;;  %p1867_p6 = scmp.lt.u32.totalorder %s2248_s1, %s2552_s2 }
  0x7d   : > { %p1868_p5 = scmp.lt.u32.totalorder %s1866_s30, %s1891_s10  ;;  %p1870_p13 = scmp.lt.u32.totalorder %s1891_s10, %s2248_s1 }
  0x7e   : > { %p1865_p4 = pneg %p1864_p1 }
  0x7f   : > { %p1869_p11 = por %p1868_p5, %p1867_p6 }
  0x81   : > { %p1871_p0 = por %p1870_p13, %p1869_p11 }
  0x83   : > { %p1872_p3 = pnand %p1871_p0, %p1865_p4 }
  0x85   : > { %1875 = shalt.err (!%p1872_p3)
}
  0x86   : > { %s1876_s28 = scalar_lea.vmem %s2252_s23, 256  ;;  %s2042_s14 = smov [#allocation7]  }
  0x87   : > { %p1877_p2 = scmp.ne.s32.totalorder %s2252_s23, %s1876_s28  ;;  %s1881_s19 = sshll.u32 %s2042_s14, 4  ;;  %s1882_s19 = int_to_ptr.vmem [resolvable:$false] %s1881_s19 }
  0x88   : > { %s1883_s4 = scalar_lea.vmem %s1882_s19, 512  ;;  %p1884_p8 = scmp.lt.s32.totalorder %s2252_s23, %s1882_s19 }
  0x89   : > { %p1879_p7 = pnand %p1877_p2, %p2213_p12  ;;  %p1885_p1 = scmp.lt.s32.totalorder %s1883_s4, %s1876_s28 }
  0x8b   : > { %p1880_p9 = pneg %p1879_p7  ;;  %p1886_p6 = por %p1885_p1, %p1884_p8 }
  0x8d   : > { %p1887_p5 = pnand %p1886_p6, %p1880_p9 }
  0x8f   : > { %1890 = shalt.err (!%p1887_p5)
}
  0x90   : > { %s2605_s21 = smov 256   ;;  %s1424_s13 = sshll.u32 %s2034_s24, 4 }
  0x91   : > { %1670 = dma.hbm_to_vmem [thread:$0]  (!%p2604_p10), %s2248_s1, 256, %s2252_s23, %s2207_s20, %s2605_s21, %s2601_s7, %s2600_s29  }
  0x92   : > { %s303_s16 = scalar_lea.vmem [#allocation8], %s2162_s15  ;;  %s2313_s30 = scalar_lea.hbm %s2553_s3, %s1424_s13 }
  0x93   : > { %s310_s10 = sshll.u32 %s303_s16, 4  ;;  %s2606_s12 = sand.u32 1, %s2034_s24   ;;  %s311_s10 = int_to_ptr.vmem [resolvable:$true] %s310_s10 }
  0x94   : > { %s301_s6 = scalar_lea.sflag [#allocation9], %s2606_s12  ;;  %s1892_s28 = scalar_lea.hbm %s2313_s30, 16 }
  0x95   : > { %p1893_p4 = scmp.ne.s32.totalorder %s2313_s30, %s1892_s28  ;;  %s1897_s20 = scalar_lea.hbm %s2553_s3, 32 }
  0x96   : > { %p1898_p0 = scmp.lt.u32.totalorder %s2313_s30, %s2553_s3  ;;  %p1899_p3 = scmp.lt.u32.totalorder %s1897_s20, %s1892_s28 }
  0x97   : > { %p1895_p11 = pnand %p1893_p4, %p2213_p12  ;;  %p1901_p7 = scmp.lt.u32.totalorder %s1892_s28, %s2313_s30 }
  0x98   : > { %p1900_p2 = por %p1899_p3, %p1898_p0 }
  0x99   : > { %p1896_p13 = pneg %p1895_p11 }
  0x9a   : > { %p1902_p9 = por %p1901_p7, %p1900_p2 }
  0x9c   : > { %p1903_p8 = pnand %p1902_p9, %p1896_p13 }
  0x9e   : > { %1906 = shalt.err (!%p1903_p8)
}
  0x9f   : > { %s1907_s14 = scalar_lea.vmem %s311_s10, 16  ;;  %s2043_s19 = smov [#allocation8]  }
  0xa0   : > { %p1908_p1 = scmp.ne.s32.totalorder %s311_s10, %s1907_s14  ;;  %s1912_s4 = sshll.u32 %s2043_s19, 4  ;;  %s1913_s4 = int_to_ptr.vmem [resolvable:$false] %s1912_s4 }
  0xa1   : > { %s1914_s21 = scalar_lea.vmem %s1913_s4, 32  ;;  %p1915_p4 = scmp.lt.s32.totalorder %s311_s10, %s1913_s4 }
  0xa2   : > { %p1910_p6 = pnand %p1908_p1, %p2213_p12  ;;  %p1916_p11 = scmp.lt.s32.totalorder %s1914_s21, %s1907_s14 }
  0xa4   : > { %p1911_p5 = pneg %p1910_p6  ;;  %p1917_p10 = por %p1916_p11, %p1915_p4 }
  0xa6   : > { %p1918_p0 = pnand %p1917_p10, %p1911_p5 }
  0xa8   : > { %1921 = shalt.err (!%p1918_p0)
}
  0xa9   : > { %p2607_p3 = scmp.ne.s32.totalorder %s2596_s26, 0  ;;  %s2608_s13 = sshll.u32 %s2034_s24, 7 }
  0xaa   : > { %s2339_s17 = scalar_lea.hbm %s2555_s5, %s2608_s13  ;;  %s2609_s12 = sshll.u32 %s2162_s15, 3 }
  0xab   : > { %1673 = dma.hbm_to_vmem [thread:$0]  (!%p2607_p3), %s2313_s30, 16, %s311_s10, %s301_s6  }
  0xac   : > { %s321_s28 = scalar_lea.vmem [#allocation11], %s2609_s12  ;;  %s318_s23 = scalar_lea.sflag [#allocation12], %s2162_s15 }
  0xad   : > { %s328_s1 = sshll.u32 %s321_s28, 4  ;;  %s1922_s20 = scalar_lea.hbm %s2339_s17, 128  ;;  %s329_s1 = int_to_ptr.vmem [resolvable:$true] %s328_s1 }
  0xae   : > { %p1923_p10 = scmp.ne.s32.totalorder %s2339_s17, %s1922_s20  ;;  %s1927_s6 = scalar_lea.hbm %s2555_s5, 256 }
  0xaf   : > { %p1928_p7 = scmp.lt.u32.totalorder %s2339_s17, %s2555_s5  ;;  %p1929_p9 = scmp.lt.u32.totalorder %s1927_s6, %s1922_s20 }
  0xb0   : > { %p1925_p13 = pnand %p1923_p10, %p2213_p12  ;;  %p1931_p1 = scmp.lt.u32.totalorder %s1922_s20, %s2339_s17 }
  0xb1   : > { %p1930_p8 = por %p1929_p9, %p1928_p7 }
  0xb2   : > { %p1926_p2 = pneg %p1925_p13 }
  0xb3   : > { %p1932_p6 = por %p1931_p1, %p1930_p8 }
  0xb5   : > { %p1933_p5 = pnand %p1932_p6, %p1926_p2 }
  0xb7   : > { %1936 = shalt.err (!%p1933_p5)
}
  0xb8   : > { %s1937_s15 = scalar_lea.vmem %s329_s1, 128  ;;  %s2044_s14 = smov [#allocation11]  }
  0xb9   : > { %p1938_p4 = scmp.ne.s32.totalorder %s329_s1, %s1937_s15  ;;  %s1942_s19 = sshll.u32 %s2044_s14, 4  ;;  %s1943_s19 = int_to_ptr.vmem [resolvable:$false] %s1942_s19 }
  0xba   : > { %s1944_s4 = scalar_lea.vmem %s1943_s19, 256  ;;  %p1945_p10 = scmp.lt.s32.totalorder %s329_s1, %s1943_s19 }
  0xbb   : > { %p1940_p11 = pnand %p1938_p4, %p2213_p12  ;;  %p1946_p13 = scmp.lt.s32.totalorder %s1944_s4, %s1937_s15 }
  0xbd   : > { %p1941_p0 = pneg %p1940_p11  ;;  %p1947_p3 = por %p1946_p13, %p1945_p10 }
  0xbf   : > { %p1948_p7 = pnand %p1947_p3, %p1941_p0 }
  0xc1   : > { %1951 = shalt.err (!%p1948_p7)
}
  0xc2   : > { %p2610_p9 = scmp.ne.s32.totalorder %s2596_s26, 0  ;;  %p2611_p2 = scmp.ne.s32.totalorder %s2591_s11, 0 }
  0xc3   : > { %s2364_s18 = sand.u32 (!%p2611_p2), 1, %s2026_s22   ;;  %p2612_p12 = scmp.ne.s32.totalorder (!%p2611_p2), %s2587_s8, 0 }
  0xc4   : > { %1676 = dma.hbm_to_vmem [thread:$0]  (!%p2610_p9), %s2339_s17, 128, %s329_s1, %s318_s23  }
  0xc5   : > { %337 = sbr.rel (%p2611_p2) target bundleno = 1926 (0x786), region = 44  ;;  %s2367_s21 = sshll.u32 (!%p2611_p2), %s2364_s18, 3 }
  0xc6   : > { %s340_s13 = scalar_lea.sflag (!%p2611_p2), [#allocation3], %s2364_s18  ;;  %s343_s16 = scalar_lea.vmem (!%p2611_p2), [#allocation2], %s2367_s21 }
  0xcc   : > { %1997 = dma.done.wait (%p2612_p12), %s340_s13, 128  }
  0xcd   : > { %1999 = vsyncadd (%p2612_p12), %s340_s13, 4294967168  ;;  %s348_s11 = sand.u32 1, %s2108_s25   ;;  %s1429_s26 = sshll.u32 %s2364_s18, 4 }
  0xce   : > { %s349_s27 = scalar_lea.sflag [#allocation6], %s348_s11  ;;  %s352_s17 = scalar_lea.vmem [#allocation5], %s1429_s26 }
  0xcf   : > { %2001 = dma.done.wait (%p2612_p12), %s349_s27, 512  }
  0xd0   : > { %2003 = vsyncadd (%p2612_p12), %s349_s27, 4294966784  ;;  %s2381_s12 = scalar_lea.vmem [#allocation7], %s1429_s26  ;;  %s367_s28 = scalar_lea.sflag [#allocation9], %s348_s11 }
  0xd1   : > { %s369_s1 = scalar_lea.vmem [#allocation8], %s2364_s18 }
  0xd2   : > { %2005 = dma.done.wait (%p2612_p12), %s367_s28, 16  }
  0xd3   : > { %2007 = vsyncadd (%p2612_p12), %s367_s28, 4294967280  ;;  %p2613_p3 = scmp.eq.s32.totalorder %s2108_s25, 0 }
  0xd5   : > { %2009 = dma.done.wait (%p2613_p3), [#allocation9], 2048   ;;  %p2614_p8 = pmov %p2613_p3 }
  0xd6   : > { %s379_s23 = scalar_lea.sflag [#allocation12], %s2364_s18  ;;  %s382_s20 = scalar_lea.vmem [#allocation11], %s2367_s21 }
  0xd7   : > { %2011 = vsyncadd (%p2614_p8), [#allocation9], 4294965248 }
  0xd8   : > { %2013 = dma.done.wait (%p2612_p12), %s379_s23, 128  }
  0xd9   : > { %2015 = vsyncadd (%p2612_p12), %s379_s23, 4294967168  ;;  %v2045_v0 = vmov 0.0|0.0   ;;  %vm2046_vm0 = vmmov 0   ;;  %v2047_v1 = vmov 0.0   ;;  %vm443_vm1 = vcmask 261120   ;;  %v431_v2 = vld [vmem:[%s352_s17] sm:$0xff] }
  0xda   : > { %1589 = vmatprep.subr.bf16.mxu1 %v2045_v0  ;;  %1502 = vmatprep.mubr.msk.f32.mxu1 %vm2046_vm0, %v2047_v1  ;;  %v432_v3 = vld [vmem:[%s352_s17 + $0x8] sm:$0xff]  ;;  %vm2406_vm2 = vmpackc.low %vm443_vm1, %vm443_vm1  ;;  %s2048_s8 = smov 64   ;;  %s2049_s10 = smov 96   ;;  %v2423_v9 = vld [vmem:[%s369_s1] ss:$0 sm:$0xff]  ;;  %vm523_vm3 = vcmask 130048  }
  0xdb   : > { %1600 = vmatprep.subr.bf16.mxu0 %v2045_v0  ;;  %1523 = vmatprep.mubr.msk.f32.mxu0 %vm2046_vm0, %v2047_v1  ;;  %v1590_v5 = vpack.c.bf16 %v432_v3, %v431_v2  ;;  %v430_v6 = vld [vmem:[%s343_s16] sm:$0xff]  ;;  %v1732_v8 = vpack.i.bf16 %v432_v3, %v431_v2  ;;  %v433_v14 = vld [vmem:[%s2381_s12] sm:$0xff]  ;;  %s2050_s30 = smov 32   ;;  %vm1139_vm4 = vcmask 523264   ;;  %vm1141_vm5 = vcmask 785408   ;;  %s1452_s6 = sshll.u32 %s2108_s25, 7 }
  0xdc   : > { %v442_v7 = vmul.f32 0.17677669, %v430_v6  ;;  %v434_v15 = vld [vmem:[%s2381_s12 + $0x8] sm:$0xff]  ;;  %s429_s29 = scalar_lea.vmem [#allocation13], %s2367_s21  ;;  %s2617_s19 = sld [smem:[#allocation27_spill]] }
  0xdd   : > { %1592 = vmatpush3.bf16.xpose.msk.msra.mxu1 %vm2406_vm2, %v1590_v5  ;;  %1733 = vrot.lane.b32.xlu1 %v1732_v8, %s2048_s8  ;;  %v1594_v16 = vpack.c.bf16 %v434_v15, %v433_v14  ;;  %v2431_v17 = vpack.i.bf16 %v434_v15, %v433_v14  ;;  %s1245_s7 = sshll.u32 %s429_s29, 4  ;;  %s1232_s13 = scalar_lea.sflag [#allocation4], %s2364_s18  ;;  %s2508_s7 = int_to_ptr.vmem [resolvable:$true] %s1245_s7 }
  0xde   : > { %1593 = vmatprep.subr.bf16.mxu1 %v2045_v0  ;;  %s1952_s16 = scalar_lea.vmem %s2508_s7, 128  ;;  %p2618_p6 = scmp.ne.s32.totalorder %s2588_s9, 0 }
  0xdf   : > { %p1953_p1 = scmp.ne.s32.totalorder %s2508_s7, %s1952_s16  ;;  %s2051_s25 = smov [#allocation13]  }
  0xe0   : > { %s1956_s21 = sshll.u32 %s2051_s25, 4  ;;  %s1957_s21 = int_to_ptr.vmem [resolvable:$false] %s1956_s21 }
  0xe1   : > { %608 = vrot.lane.b32.xlu1 %v442_v7, %s2049_s10  ;;  %p1954_p5 = pnand %p1953_p1, %p2618_p6  ;;  %s1958_s11 = scalar_lea.vmem %s1957_s21, 256 }
  0xe2   : > { %s2506_s4 = scalar_lea.hbm %s2617_s19, %s1452_s6  ;;  %p1959_p11 = scmp.lt.s32.totalorder %s2508_s7, %s1957_s21 }
  0xe3   : > { %p1955_p4 = pneg %p1954_p5  ;;  %p1960_p0 = scmp.lt.s32.totalorder %s1958_s11, %s1952_s16 }
  0xe4   : > { %1503 = vmatmul.mubr.msk.f32.vlgmr.msra.gmra.mrb[0].mxu1 %vm443_vm1, %v442_v7 }
  0xe5   : > { %1509 = vmatprep.mubr.msk.f32.mxu1 %vm2046_vm0, %v2047_v1  ;;  %782 = vrot.lane.b32.xlu1 %v442_v7, %s2048_s8  ;;  %p1961_p10 = por %p1960_p0, %p1959_p11 }
  0xe6   : > { %1595 = vmatpush3.bf16.msra.mxu1 %v1594_v16 }
  0xe7   : > { %1596 = vmatprep.subr.bf16.mxu1 %v2045_v0  ;;  %p1962_p13 = pnand %p1961_p10, %p1955_p4 }
 0x14f   : > { %v1734_v25 = vpop.permute.xlu1 %1733 }
 0x150   : > { %v1736_v27 = vunpack.i.h.bf16 %v1734_v25  ;;  %v1735_v28 = vunpack.i.l.bf16 %v1734_v25 }
 0x152   : > { %v1604_v29 = vpack.c.bf16 %v1736_v27, %v1735_v28  ;;  %v1146_v27 = vld [vmem:[#allocation10 + $0x18] sm:$0xff] }
 0x153   : > { %v609_v30 = vpop.permute.xlu1 %608 }
 0x157   : > { %v783_v31 = vpop.permute.xlu1 %782 }
 0x1b7   : > { %v519_v10 = vpop.f32.mrb[0].mxu1 }
 0x1b8   : > { %v520_v11 = vadd.f32 %v2423_v9, %v519_v10  ;;  %v1504_v12 = vpop.f32.mrb[1].mxu1 }
 0x1ba   : > { %v524_v13 = vsel %vm523_vm3, %v520_v11, -inf }
 0x1bb   : > { %525 = vmax.xlane.f32.xlu0 %v524_v13 }
 0x1d1   : > { %1728 = vrot.lane.b32.xlu0 %v1732_v8, %s2049_s10 }
 0x1d5   : > { %1738 = vrot.lane.b32.xlu0 %v2431_v17, %s2048_s8 }
 0x1d9   : > { %1743 = vrot.lane.b32.xlu0 %v1732_v8, %s2050_s30 }
 0x1dd   : > { %954 = vrot.lane.b32.xlu0 %v442_v7, %s2050_s30 }
 0x248   : > { %v526_v18 = vpop.xlane.xlu0 %525 }
 0x249   : > { %v527_v19 = vsub.f32 %v520_v11, %v526_v18 }
 0x24b   : > { %v528_v20 = vmul.f32 1.442695, %v527_v19 }
 0x24c   : > { %v1729_v21 = vpop.permute.xlu0 %1728 }
 0x24d   : > { %1757 = vpow2.f32 %v528_v20  ;;  %v1731_v22 = vunpack.i.h.bf16 %v1729_v21  ;;  %v1730_v23 = vunpack.i.l.bf16 %v1729_v21 }
 0x24f   : > { %v1597_v24 = vpack.c.bf16 %v1731_v22, %v1730_v23  ;;  %v1143_v22 = vld [vmem:[#allocation10] sm:$0xff]  ;;  %v1144_v23 = vld [vmem:[#allocation10 + $0x8] sm:$0xff] }
 0x250   : > { %v1739_v32 = vpop.permute.xlu0 %1738  ;;  %v1618_v25 = vpack.c.bf16 %v1144_v23, %v1143_v22 }
 0x251   : > { %v1741_v33 = vunpack.i.h.bf16 %v1739_v32  ;;  %v1740_v34 = vunpack.i.l.bf16 %v1739_v32  ;;  %v1150_v32 = vld [vmem:[#allocation10 + $0x38] sm:$0xff] }
 0x253   : > { %v1608_v35 = vpack.c.bf16 %v1741_v33, %v1740_v34  ;;  %v1151_v33 = vld [vmem:[#allocation10 + $0x40] sm:$0xff]  ;;  %v1152_v34 = vld [vmem:[#allocation10 + $0x48] sm:$0xff] }
 0x254   : > { %v1744_v49 = vpop.permute.xlu0 %1743 }
 0x255   : > { %v1746_v50 = vunpack.i.h.bf16 %v1744_v49  ;;  %v1745_v51 = vunpack.i.l.bf16 %v1744_v49 }
 0x257   : > { %v2437_v26 = vpop.eup %1757  ;;  %v1611_v52 = vpack.c.bf16 %v1746_v50, %v1745_v51 }
 0x258   : > { %1510 = vmatmul.mubr.msk.f32.vlgmr.msra.gmra.mrb[2].mxu1 %vm523_vm3, %v2437_v26  ;;  %v955_v55 = vpop.permute.xlu0 %954  ;;  %v530_v21 = vsel %vm523_vm3, %v2437_v26, 0.0 }
 0x259   : > { %1599 = vmatpush3.bf16.xpose.msk.msra.mxu1 %vm2406_vm2, %v1597_v24  ;;  %1516 = vmatprep.mubr.msk.f32.mxu1 %vm2046_vm0, %v2047_v1  ;;  %v1145_v24 = vld [vmem:[#allocation10 + $0x10] sm:$0xff] }
 0x25a   : > { %1603 = vmatprep.subr.bf16.mxu1 %v2045_v0  ;;  %v1621_v28 = vpack.c.bf16 %v1146_v27, %v1145_v24 }
 0x260   : > { %1517 = vmatmul.mubr.msk.f32.vlgmr.msra.gmra.mrb[4].mxu1 %vm443_vm1, %v609_v30  ;;  %v1148_v30 = vld [vmem:[#allocation10 + $0x28] sm:$0xff] }
 0x261   : > { %1606 = vmatpush3.bf16.xpose.msk.msra.mxu1 %vm2406_vm2, %v1604_v29  ;;  %1530 = vmatprep.mubr.msk.f32.mxu1 %vm2046_vm0, %v2047_v1  ;;  %v1147_v29 = vld [vmem:[#allocation10 + $0x20] sm:$0xff] }
 0x262   : > { %1607 = vmatprep.subr.bf16.mxu1 %v2045_v0 }
 0x268   : > { %1531 = vmatmul.mubr.msk.f32.vlgmr.msra.gmra.mrb[6].mxu1 %vm443_vm1, %v783_v31  ;;  %v1624_v31 = vpack.c.bf16 %v1148_v30, %v1147_v29 }
 0x269   : > { %1537 = vmatprep.mubr.msk.f32.mxu1 %vm2046_vm0, %v2047_v1  ;;  %1609 = vmatpush3.bf16.msra.mxu1 %v1608_v35  ;;  %v1630_v35 = vpack.c.bf16 %v1152_v34, %v1151_v33 }
 0x26a   : > { %1610 = vmatprep.subr.bf16.mxu1 %v2045_v0 }
 0x32b   : > { %v2456_v36 = vpop.f32.mrb[2].mxu1 }
 0x32c   : > { %v1511_v37 = vpop.f32.mrb[3].mxu1 }
 0x32d   : > { %v1153_v37 = vld [vmem:[#allocation10 + $0x50] sm:$0xff] }
 0x333   : > { %v686_v38 = vpop.f32.mrb[4].mxu1 }
 0x334   : > { %v687_v39 = vadd.f32 %v2423_v9, %v686_v38  ;;  %v1518_v40 = vpop.f32.mrb[5].mxu1  ;;  %v1154_v38 = vld [vmem:[#allocation10 + $0x58] sm:$0xff] }
 0x335   : > { %v1155_v40 = vld [vmem:[#allocation10 + $0x60] sm:$0xff] }
 0x336   : > { %v690_v41 = vsel %vm523_vm3, %v687_v39, -inf }
 0x337   : > { %691 = vmax.xlane.f32.xlu0 %v690_v41  ;;  %v1156_v41 = vld [vmem:[#allocation10 + $0x68] sm:$0xff] }
 0x33b   : > { %v860_v42 = vpop.f32.mrb[6].mxu1 }
 0x33c   : > { %v861_v43 = vadd.f32 %v2423_v9, %v860_v42  ;;  %v1532_v44 = vpop.f32.mrb[7].mxu1  ;;  %v1636_v42 = vpack.c.bf16 %v1156_v41, %v1155_v40 }
 0x33d   : > { %v1157_v44 = vld [vmem:[#allocation10 + $0x70] sm:$0xff] }
 0x33e   : > { %v864_v45 = vsel %vm523_vm3, %v861_v43, -inf }
 0x33f   : > { %865 = vmax.xlane.f32.xlu1 %v864_v45  ;;  %v1158_v45 = vld [vmem:[#allocation10 + $0x78] sm:$0xff] }
 0x34d   : > { %1753 = vrot.lane.b32.xlu0 %v2431_v17, %s2050_s30 }
 0x3c4   : > { %v692_v56 = vpop.xlane.xlu0 %691 }
 0x3c5   : > { %v693_v5 = vsub.f32 %v687_v39, %v692_v56  ;;  %v1633_v39 = vpack.c.bf16 %v1154_v38, %v1153_v37 }
 0x3c7   : > { %v694_v6 = vmul.f32 1.442695, %v693_v5 }
 0x3c8   : > { %v1754_v57 = vpop.permute.xlu0 %1753 }
 0x3c9   : > { %v1756_v13 = vunpack.i.h.bf16 %v1754_v57 }
 0x3cc   : > { %v866_v46 = vpop.xlane.xlu1 %865 }
 0x3cd   : > { %v867_v47 = vsub.f32 %v861_v43, %v866_v46  ;;  %v1639_v46 = vpack.c.bf16 %v1158_v45, %v1157_v44 }
 0x3cf   : > { %v868_v48 = vmul.f32 1.442695, %v867_v47 }
 0x3d1   : > { %1759 = vpow2.f32 %v868_v48 }
 0x3db   : > { %v1760_v53 = vpop.eup %1759 }
 0x3dc   : > { %1538 = vmatmul.mubr.msk.f32.vlgmr.msra.gmra.mrb[8].mxu1 %vm523_vm3, %v1760_v53  ;;  %v870_v54 = vsel %vm523_vm3, %v1760_v53, 0.0 }
 0x3dd   : > { %1613 = vmatpush3.bf16.xpose.msk.msra.mxu1 %vm2406_vm2, %v1611_v52  ;;  %871 = vadd.xlane.f32.xlu0 %v870_v54 }
 0x3de   : > { %1544 = vmatprep.mubr.msk.f32.mxu1 %vm2046_vm0, %v2047_v1 }
 0x3e4   : > { %1545 = vmatmul.mubr.msk.f32.vlgmr.msra.gmra.mrb[10].mxu1 %vm443_vm1, %v955_v55 }
 0x46a   : > { %v872_v58 = vpop.xlane.xlu0 %871 }
 0x46b   : > { %1761 = vrcp.f32 %v872_v58 }
 0x46c   : > { %1763 = vpow2.f32 %v694_v6 }
 0x475   : > { %v1762_v59 = vpop.eup %1761 }
 0x476   : > { %v1764_v7 = vpop.eup %1763 }
 0x477   : > { %v696_v8 = vsel %vm523_vm3, %v1764_v7, 0.0 }
 0x4af   : > { %v948_v60 = vpop.f32.mrb[8].mxu1 }
 0x4b0   : > { %v953_v61 = vmul.f32 %v1762_v59, %v948_v60  ;;  %v1539_v62 = vpop.f32.mrb[9].mxu1 }
 0x4b2   : > { %1131 = vrot.lane.b32.xlu0 %v953_v61, %s2048_s8 }
 0x4b7   : > { %v1032_v63 = vpop.f32.mrb[10].mxu1 }
 0x4b8   : > { %v1033_v2 = vadd.f32 %v2423_v9, %v1032_v63  ;;  %v1546_v3 = vpop.f32.mrb[11].mxu1  ;;  %v1755_v9 = vunpack.i.l.bf16 %v1754_v57 }
 0x4ba   : > { %v1036_v4 = vsel %vm523_vm3, %v1033_v2, -inf  ;;  %v1615_v19 = vpack.c.bf16 %v1756_v13, %v1755_v9 }
 0x4bb   : > { %1037 = vmax.xlane.f32.xlu1 %v1036_v4 }
 0x4cc   : > { %1748 = vrot.lane.b32.xlu1 %v2431_v17, %s2049_s10 }
 0x4f0   : > { %697 = vadd.xlane.f32.xlu1 %v696_v8 }
 0x524   : > { %v1132_v60 = vpop.permute.xlu0 %1131 }
 0x548   : > { %v1038_v10 = vpop.xlane.xlu1 %1037 }
 0x549   : > { %v1039_v11 = vsub.f32 %v1033_v2, %v1038_v10  ;;  %v1159_v2 = vld [vmem:[%s382_s20] sm:$0xff] }
 0x54b   : > { %v1040_v12 = vmul.f32 1.442695, %v1039_v11 }
 0x54c   : > { %v1749_v14 = vpop.permute.xlu1 %1748 }
 0x54d   : > { %1765 = vpow2.f32 %v1040_v12  ;;  %v1751_v15 = vunpack.i.h.bf16 %v1749_v14  ;;  %v1750_v16 = vunpack.i.l.bf16 %v1749_v14 }
 0x54f   : > { %v1601_v18 = vpack.c.bf16 %v1751_v15, %v1750_v16 }
 0x551   : > { %1602 = vmatpush3.bf16.msra.mxu0 %v1601_v18 }
 0x552   : > { %1614 = vmatprep.subr.bf16.mxu0 %v2045_v0 }
 0x554   : > { %1524 = vmatmul.mubr.msk.f32.vlgmr.msra.gmra.mrb[0].mxu0 %vm523_vm3, %v1764_v7 }
 0x555   : > { %1616 = vmatpush3.bf16.msra.mxu0 %v1615_v19  ;;  %1551 = vmatprep.mubr.msk.f32.mxu0 %vm2046_vm0, %v2047_v1 }
 0x556   : > { %1617 = vmatprep.subr.bf16.mxu0 %v2045_v0 }
 0x557   : > { %v1766_v17 = vpop.eup %1765 }
 0x558   : > { %1552 = vmatmul.mubr.msk.f32.vlgmr.msra.gmra.mrb[2].mxu0 %vm523_vm3, %v1766_v17  ;;  %v1042_v20 = vsel %vm523_vm3, %v1766_v17, 0.0 }
 0x559   : > { %1043 = vadd.xlane.f32.xlu1 %v1042_v20  ;;  %1586 = vmatprep.mubr.msk.f32.mxu0 %vm2046_vm0, %v2047_v1  ;;  %v1149_v1 = vld [vmem:[#allocation10 + $0x30] sm:$0xff] }
 0x55a   : > { %1619 = vmatpush3.bf16.msra.mxu0 %v1618_v25  ;;  %v1627_v26 = vpack.c.bf16 %v1150_v32, %v1149_v1 }
 0x55b   : > { %1620 = vmatprep.subr.bf16.mxu0 %v2045_v0 }
 0x55d   : > { %531 = vadd.xlane.f32.xlu1 %v530_v21 }
 0x55e   : > { %1622 = vmatpush3.bf16.msra.mxu0 %v1621_v28 }
 0x55f   : > { %1623 = vmatprep.subr.bf16.mxu0 %v2045_v0 }
 0x562   : > { %1625 = vmatpush3.bf16.msra.mxu0 %v1624_v31 }
 0x563   : > { %1626 = vmatprep.subr.bf16.mxu0 %v2045_v0 }
 0x566   : > { %1628 = vmatpush3.bf16.msra.mxu0 %v1627_v26 }
 0x567   : > { %1629 = vmatprep.subr.bf16.mxu0 %v2045_v0 }
 0x56a   : > { %1631 = vmatpush3.bf16.msra.mxu0 %v1630_v35 }
 0x56b   : > { %1632 = vmatprep.subr.bf16.mxu0 %v2045_v0 }
 0x56e   : > { %1634 = vmatpush3.bf16.msra.mxu0 %v1633_v39 }
 0x56f   : > { %1635 = vmatprep.subr.bf16.mxu0 %v2045_v0 }
 0x572   : > { %1637 = vmatpush3.bf16.msra.mxu0 %v1636_v42 }
 0x573   : > { %1638 = vmatprep.subr.bf16.mxu0 %v2045_v0 }
 0x576   : > { %1640 = vmatpush3.bf16.msra.mxu0 %v1639_v46 }
 0x57d   : > { %v698_v43 = vpop.xlane.xlu1 %697 }
 0x57e   : > { %1767 = vrcp.f32 %v698_v43 }
 0x588   : > { %v1768_v48 = vpop.eup %1767 }
 0x5e6   : > { %v1044_v47 = vpop.xlane.xlu1 %1043 }
 0x5e7   : > { %1769 = vrcp.f32 %v1044_v47 }
 0x5ea   : > { %v532_v0 = vpop.xlane.xlu1 %531 }
 0x5eb   : > { %1771 = vrcp.f32 %v532_v0 }
 0x5f1   : > { %v1770_v52 = vpop.eup %1769 }
 0x5f5   : > { %v1772_v56 = vpop.eup %1771 }
 0x5f6   : > { %v607_v57 = vmul.f32 %v1772_v56, %v2456_v36 }
 0x627   : > { %v776_v49 = vpop.f32.mrb[0].mxu0 }
 0x628   : > { %v781_v50 = vmul.f32 %v1768_v48, %v776_v49  ;;  %v1525_v51 = vpop.f32.mrb[1].mxu0 }
 0x62a   : > { %1127 = vrot.lane.b32.xlu1 %v781_v50, %s2050_s30 }
 0x62b   : > { %v1120_v53 = vpop.f32.mrb[2].mxu0 }
 0x62c   : > { %v1125_v54 = vmul.f32 %v1770_v52, %v1120_v53  ;;  %v1553_v55 = vpop.f32.mrb[3].mxu0 }
 0x62e   : > { %1135 = vrot.lane.b32.xlu1 %v1125_v54, %s2049_s10 }
 0x69c   : > { %v1128_v58 = vpop.permute.xlu1 %1127 }
 0x69d   : > { %v1138_v59 = vsel %vm443_vm1, %v607_v57, %v1128_v58 }
 0x69e   : > { %v1140_v61 = vsel %vm1139_vm4, %v1138_v59, %v1132_v60 }
 0x6a0   : > { %v1136_v62 = vpop.permute.xlu1 %1135 }
 0x6a1   : > { %v1142_v63 = vsel %vm1141_vm5, %v1140_v61, %v1136_v62 }
 0x6a2   : > { %1587 = vmatmul.mubr.f32.vlgmr.msra.gmra.mrb[4].mxu0 %v1142_v63 }
 0x775   : > { %v1226_v3 = vpop.f32.mrb[4].mxu0 }
 0x776   : > { %v1227_v4 = vadd.f32 %v1226_v3, %v1159_v2  ;;  %v1588_v36 = vpop.f32.mrb[5].mxu0 }
 0x778   : > { %1230 = vst [vmem:[%s429_s29] sm:$0xff] %v1227_v4 }
 0x779   : > { %1965 = shalt.err (!%p1962_p13)
}
 0x77a   : > { %s1966_s18 = scalar_lea.hbm %s2506_s4, 128  ;;  %s1970_s17 = scalar_lea.hbm %s2617_s19, 256 }
 0x77b   : > { %p1967_p7 = scmp.ne.s32.totalorder %s2506_s4, %s1966_s18  ;;  %p1971_p12 = scmp.lt.u32.totalorder %s2506_s4, %s2617_s19 }
 0x77c   : > { %p1972_p3 = scmp.lt.u32.totalorder %s1970_s17, %s1966_s18  ;;  %p1974_p1 = scmp.lt.u32.totalorder %s1966_s18, %s2506_s4 }
 0x77d   : > { %p1968_p9 = pnand %p1967_p7, %p2618_p6 }
 0x77e   : > { %p1973_p8 = por %p1972_p3, %p1971_p12 }
 0x77f   : > { %p1969_p2 = pneg %p1968_p9 }
 0x780   : > { %p1975_p5 = por %p1974_p1, %p1973_p8 }
 0x782   : > { %p1976_p4 = pnand %p1975_p5, %p1969_p2 }
 0x784   : > { %1979 = shalt.err (!%p1976_p4)
}
 0x785   : > { %1655 = dma.vmem_to_hbm [thread:$0]  (%p2618_p6), %s2508_s7, 128, %s2506_s4, %s1232_s13  }
 0x786 PF: > { %s2619_s1 = sld [smem:[#allocation20_spill]]  ;;  %s2620_s23 = sld [smem:[#allocation24_spill]] }
 0x787   : > { %p2622_p0 = scmp.ge.s32.totalorder %s2034_s24, 2 }
 0x78c   : > { %s1257_s20 = sand.u32 1, %s2619_s1   ;;  %p2621_p11 = scmp.ne.s32.totalorder %s2620_s23, 0 }
 0x78d   : > { %s1258_s8 = scalar_lea.sflag [#allocation4], %s1257_s20 }
 0x78e   : > { %p1678_p10 = pnand %p2622_p0, %p2621_p11 }
 0x790   : > { %2017 = dma.done.wait (!%p1678_p10), %s1258_s8, 128  }
 0x791   : > { %2019 = vsyncadd (!%p1678_p10), %s1258_s8, 4294967168  ;;  %s2623_s24 = sld [smem:[#allocation22_spill]]  ;;  %s2624_s10 = sld [smem:[#allocation21_spill]] }
 0x792   : > { %s2625_s23 = sld [smem:[#allocation23_spill]]  ;;  %s2626_s21 = smov %s2026_s22 }
 0x797   : > { %p28_p13 = scmp.ge.s32.totalorder %s2623_s24, 4   ;;  %s2627_s22 = smov %s2624_s10 }
 0x799   :  { %30 = sbr.rel (!%p28_p13) target bundleno = 15 (0xf), region = 143 }
 0x7a0   :  { %1263 = vsyncpa [#allocation3], 1 }
 0x7a1   :  { %1265 = vsyncpa [#allocation3 + $0x1], 1 }
 0x7a2   :  { %1266 = vsyncpa [#allocation6], 1 }
 0x7a3   :  { %1268 = vsyncpa [#allocation6 + $0x1], 1 }
 0x7a4   :  { %1269 = vsyncpa [#allocation9], 1 }
 0x7a5   :  { %1271 = vsyncpa [#allocation9 + $0x1], 1 }
 0x7a6   :  { %1272 = vsyncpa [#allocation12], 1 }
 0x7a7   :  { %1274 = vsyncpa [#allocation12 + $0x1], 1 }
 0x7a8   :  { %1275 = vsyncpa [#allocation4], 1 }
 0x7a9   :  { %1277 = vsyncpa [#allocation4 + $0x1], 1 }

</bundles_post_ra>
